<compile_context>
chip_gen: v6e
topology: v6e:2x2x1
jax: 0.10.0
libtpu: 0.0.40
codegen_flags: <defaults>
</compile_context>

<pallas_src>
import functools

import jax
import jax.numpy as jnp
from jax.experimental import pallas as pl
from jax.experimental.pallas import tpu as pltpu

KH, KW = 3, 3


def conv3x3_kernel(x_ref, w_ref, o_ref, xp_ref, patches_ref):
    # x_ref:       (1, H, W, Cin)        unpadded input tile (VMEM)
    # w_ref:       (KH*KW*Cin, Cout_pad) im2col weight matrix (VMEM)
    # o_ref:       (1, H*W, Cout_pad)    lane-dense output tile (VMEM)
    # xp_ref:      (H+2, W+2, Cin)       VMEM scratch, zero-padded input
    # patches_ref: (H*W, KH*KW*Cin)      VMEM scratch, im2col patch matrix
    H = x_ref.shape[1]
    W = x_ref.shape[2]
    Cin = x_ref.shape[3]

    # Fused "same" padding: zero the halo scratch, copy the interior.
    xp_ref[...] = jnp.zeros_like(xp_ref)
    xp_ref[1:H + 1, 1:W + 1, :] = x_ref[0]

    # im2col: materialize the (H*W, 9*Cin) patch matrix once in VMEM.
    # Column order is (kh, kw, cin), matching the weight reshape in the wrapper.
    for kh in range(KH):
        for kw in range(KW):
            tap = kh * KW + kw
            patches_ref[:, tap * Cin:(tap + 1) * Cin] = (
                xp_ref[kh:kh + H, kw:kw + W, :].reshape(H * W, Cin)
            )

    # Single long-K matmul on the MXU: (H*W, 9*Cin) x (9*Cin, Cout_pad).
    acc = jnp.dot(patches_ref[...], w_ref[...],
                  preferred_element_type=jnp.float32)
    o_ref[0] = acc.astype(o_ref.dtype)


def _round_up(x, m):
    return ((x + m - 1) // m) * m


def prepare_weights(w_oihw):
    """One-time weight transform: OIHW -> (KH*KW*Cin, Cout_pad), lane-dense."""
    Cout, Cin, kh, kw = w_oihw.shape
    assert (kh, kw) == (KH, KW)
    # OIHW -> HWIO -> (KH*KW*Cin, Cout); row index = kh*KW*Cin + kw*Cin + cin.
    w_mat = jnp.transpose(w_oihw, (2, 3, 1, 0)).reshape(KH * KW * Cin, Cout)
    cout_pad = _round_up(max(Cout, 128), 128)
    if cout_pad != Cout:
        w_mat = jnp.pad(w_mat, ((0, 0), (0, cout_pad - Cout)))
    return w_mat


@functools.partial(jax.jit, static_argnums=(2,))
def conv2d_3x3_same(x_nchw, w_mat, cout):
    """3x3, stride 1, padding 1, no bias. x: (N, Cin, H, W), w_mat from prepare_weights."""
    N, Cin, H, W = x_nchw.shape
    cout_pad = w_mat.shape[1]

    # NCHW -> NHWC (fused into the jitted program; padding happens in-kernel).
    x_nhwc = jnp.transpose(x_nchw, (0, 2, 3, 1))

    out = pl.pallas_call(
        conv3x3_kernel,
        out_shape=jax.ShapeDtypeStruct((N, H * W, cout_pad), x_nchw.dtype),
        grid_spec=pltpu.PrefetchScalarGridSpec(
            num_scalar_prefetch=0,
            grid=(N,),
            in_specs=[
                pl.BlockSpec((1, H, W, Cin), lambda n: (n, 0, 0, 0)),
                pl.BlockSpec((KH * KW * Cin, cout_pad), lambda n: (0, 0)),
            ],
            out_specs=pl.BlockSpec((1, H * W, cout_pad), lambda n: (n, 0, 0)),
            scratch_shapes=[
                pltpu.VMEM((H + 2, W + 2, Cin), x_nchw.dtype),
                pltpu.VMEM((H * W, KH * KW * Cin), x_nchw.dtype),
            ],
        ),
        compiler_params=pltpu.CompilerParams(
            dimension_semantics=("parallel",),
        ),
    )(x_nhwc, w_mat)

    # (N, H*W, Cout_pad) -> (N, Cout, H, W); slice off the zero lane padding.
    out = out[:, :, :cout].reshape(N, H, W, cout)
    return jnp.transpose(out, (0, 3, 1, 2))


if __name__ == "__main__":
    key = jax.random.PRNGKey(0)
    k_x, k_w = jax.random.split(key)

    # Shapes from the module: input (1, 128, 7, 7), Conv2d(128, 32, 3x3, pad=1, bias=False)
    N, Cin, H, W = 1, 128, 7, 7
    Cout = 32

    x = jax.random.normal(k_x, (N, Cin, H, W), dtype=jnp.float32)
    # Deterministic synthetic weights (OIHW, like torch Conv2d.weight).
    w = jax.random.normal(k_w, (Cout, Cin, KH, KW), dtype=jnp.float32) * 0.05

    # Weight transform hoisted out of the hot path (done once).
    w_mat = jax.block_until_ready(prepare_weights(w))

    out = conv2d_3x3_same(x, w_mat, Cout)
    out = jax.block_until_ready(out)

    # Sanity check against XLA's reference convolution.
    ref = jax.lax.conv_general_dilated(
        x, w, window_strides=(1, 1), padding=((1, 1), (1, 1)),
        dimension_numbers=("NCHW", "OIHW", "NCHW"),
    )
    ref = jax.block_until_ready(ref)
    assert out.shape == (N, Cout, H, W)
    assert jnp.allclose(out, ref, atol=1e-3, rtol=1e-3)

    print("KERNEL_OK")
</pallas_src>

<mosaic_0001>
module attributes {stable_mosaic.version = 11 : i64} {
  func.func @conv3x3_kernel(%arg0: i32, %arg1: memref<1x7x7x128xf32, #tpu.memory_space<vmem>>, %arg2: memref<1152x128xf32, #tpu.memory_space<vmem>>, %arg3: memref<1x49x128xf32, #tpu.memory_space<vmem>>, %arg4: memref<9x9x128xf32, #tpu.memory_space<vmem>>, %arg5: memref<49x1152xf32, #tpu.memory_space<vmem>>) attributes {dimension_semantics = [#tpu.dimension_semantics<parallel>], iteration_bounds = array<i64: 1>, scalar_prefetch = 0 : i64, scratch_operands = 2 : i64, tpu.core_type = #tpu.core_type<tc>, window_params = [{transform_indices = @transform_0, window_bounds = array<i64: 1, 7, 7, 128>}, {pipeline_mode = #tpu.pipeline_mode<synchronous>, transform_indices = @transform_1, window_bounds = array<i64: 1152, 128>}, {transform_indices = @transform_2, window_bounds = array<i64: 1, 49, 128>}]} {
    %cst = arith.constant 0.000000e+00 : f32
    %0 = vector.broadcast %cst : f32 to vector<9x9x128xf32>
    %c0 = arith.constant 0 : index
    %c0_0 = arith.constant 0 : index
    %c0_1 = arith.constant 0 : index
    %1 = vector.load %arg4[%c0, %c0_0, %c0_1] : memref<9x9x128xf32, #tpu.memory_space<vmem>>, vector<9x9x128xf32>
    tpu.vector_store %arg4[%c0, %c0_0, %c0_1], %0 {strides = array<i32>} : memref<9x9x128xf32, #tpu.memory_space<vmem>>, vector<9x9x128xf32>,
    %c0_2 = arith.constant 0 : index
    %c0_3 = arith.constant 0 : index
    %c0_4 = arith.constant 0 : index
    %c0_5 = arith.constant 0 : index
    %2 = vector.load %arg1[%c0_2, %c0_3, %c0_4, %c0_5] : memref<1x7x7x128xf32, #tpu.memory_space<vmem>>, vector<1x7x7x128xf32>
    %3 = vector.shape_cast %2 : vector<1x7x7x128xf32> to vector<7x7x128xf32>
    %c1 = arith.constant 1 : index
    %c1_6 = arith.constant 1 : index
    %c0_7 = arith.constant 0 : index
    %4 = vector.load %arg4[%c1, %c1_6, %c0_7] : memref<9x9x128xf32, #tpu.memory_space<vmem>>, vector<7x7x128xf32>
    tpu.vector_store %arg4[%c1, %c1_6, %c0_7], %3 {strides = array<i32>} : memref<9x9x128xf32, #tpu.memory_space<vmem>>, vector<7x7x128xf32>,
    %c0_8 = arith.constant 0 : index
    %c0_9 = arith.constant 0 : index
    %c0_10 = arith.constant 0 : index
    %5 = vector.load %arg4[%c0_8, %c0_9, %c0_10] : memref<9x9x128xf32, #tpu.memory_space<vmem>>, vector<7x7x128xf32>
    %6 = vector.shape_cast %5 : vector<7x7x128xf32> to vector<49x128xf32>
    %c0_11 = arith.constant 0 : index
    %c0_12 = arith.constant 0 : index
    %7 = vector.load %arg5[%c0_11, %c0_12] : memref<49x1152xf32, #tpu.memory_space<vmem>>, vector<49x128xf32>
    tpu.vector_store %arg5[%c0_11, %c0_12], %6 {strides = array<i32>} : memref<49x1152xf32, #tpu.memory_space<vmem>>, vector<49x128xf32>,
    %c0_13 = arith.constant 0 : index
    %c1_14 = arith.constant 1 : index
    %c0_15 = arith.constant 0 : index
    %8 = vector.load %arg4[%c0_13, %c1_14, %c0_15] : memref<9x9x128xf32, #tpu.memory_space<vmem>>, vector<7x7x128xf32>
    %9 = vector.shape_cast %8 : vector<7x7x128xf32> to vector<49x128xf32>
    %c0_16 = arith.constant 0 : index
    %c128 = arith.constant 128 : index
    %10 = vector.load %arg5[%c0_16, %c128] : memref<49x1152xf32, #tpu.memory_space<vmem>>, vector<49x128xf32>
    tpu.vector_store %arg5[%c0_16, %c128], %9 {strides = array<i32>} : memref<49x1152xf32, #tpu.memory_space<vmem>>, vector<49x128xf32>,
    %c0_17 = arith.constant 0 : index
    %c2 = arith.constant 2 : index
    %c0_18 = arith.constant 0 : index
    %11 = vector.load %arg4[%c0_17, %c2, %c0_18] : memref<9x9x128xf32, #tpu.memory_space<vmem>>, vector<7x7x128xf32>
    %12 = vector.shape_cast %11 : vector<7x7x128xf32> to vector<49x128xf32>
    %c0_19 = arith.constant 0 : index
    %c256 = arith.constant 256 : index
    %13 = vector.load %arg5[%c0_19, %c256] : memref<49x1152xf32, #tpu.memory_space<vmem>>, vector<49x128xf32>
    tpu.vector_store %arg5[%c0_19, %c256], %12 {strides = array<i32>} : memref<49x1152xf32, #tpu.memory_space<vmem>>, vector<49x128xf32>,
    %c1_20 = arith.constant 1 : index
    %c0_21 = arith.constant 0 : index
    %c0_22 = arith.constant 0 : index
    %14 = vector.load %arg4[%c1_20, %c0_21, %c0_22] : memref<9x9x128xf32, #tpu.memory_space<vmem>>, vector<7x7x128xf32>
    %15 = vector.shape_cast %14 : vector<7x7x128xf32> to vector<49x128xf32>
    %c0_23 = arith.constant 0 : index
    %c384 = arith.constant 384 : index
    %16 = vector.load %arg5[%c0_23, %c384] : memref<49x1152xf32, #tpu.memory_space<vmem>>, vector<49x128xf32>
    tpu.vector_store %arg5[%c0_23, %c384], %15 {strides = array<i32>} : memref<49x1152xf32, #tpu.memory_space<vmem>>, vector<49x128xf32>,
    %c1_24 = arith.constant 1 : index
    %c1_25 = arith.constant 1 : index
    %c0_26 = arith.constant 0 : index
    %17 = vector.load %arg4[%c1_24, %c1_25, %c0_26] : memref<9x9x128xf32, #tpu.memory_space<vmem>>, vector<7x7x128xf32>
    %18 = vector.shape_cast %17 : vector<7x7x128xf32> to vector<49x128xf32>
    %c0_27 = arith.constant 0 : index
    %c512 = arith.constant 512 : index
    %19 = vector.load %arg5[%c0_27, %c512] : memref<49x1152xf32, #tpu.memory_space<vmem>>, vector<49x128xf32>
    tpu.vector_store %arg5[%c0_27, %c512], %18 {strides = array<i32>} : memref<49x1152xf32, #tpu.memory_space<vmem>>, vector<49x128xf32>,
    %c1_28 = arith.constant 1 : index
    %c2_29 = arith.constant 2 : index
    %c0_30 = arith.constant 0 : index
    %20 = vector.load %arg4[%c1_28, %c2_29, %c0_30] : memref<9x9x128xf32, #tpu.memory_space<vmem>>, vector<7x7x128xf32>
    %21 = vector.shape_cast %20 : vector<7x7x128xf32> to vector<49x128xf32>
    %c0_31 = arith.constant 0 : index
    %c640 = arith.constant 640 : index
    %22 = vector.load %arg5[%c0_31, %c640] : memref<49x1152xf32, #tpu.memory_space<vmem>>, vector<49x128xf32>
    tpu.vector_store %arg5[%c0_31, %c640], %21 {strides = array<i32>} : memref<49x1152xf32, #tpu.memory_space<vmem>>, vector<49x128xf32>,
    %c2_32 = arith.constant 2 : index
    %c0_33 = arith.constant 0 : index
    %c0_34 = arith.constant 0 : index
    %23 = vector.load %arg4[%c2_32, %c0_33, %c0_34] : memref<9x9x128xf32, #tpu.memory_space<vmem>>, vector<7x7x128xf32>
    %24 = vector.shape_cast %23 : vector<7x7x128xf32> to vector<49x128xf32>
    %c0_35 = arith.constant 0 : index
    %c768 = arith.constant 768 : index
    %25 = vector.load %arg5[%c0_35, %c768] : memref<49x1152xf32, #tpu.memory_space<vmem>>, vector<49x128xf32>
    tpu.vector_store %arg5[%c0_35, %c768], %24 {strides = array<i32>} : memref<49x1152xf32, #tpu.memory_space<vmem>>, vector<49x128xf32>,
    %c2_36 = arith.constant 2 : index
    %c1_37 = arith.constant 1 : index
    %c0_38 = arith.constant 0 : index
    %26 = vector.load %arg4[%c2_36, %c1_37, %c0_38] : memref<9x9x128xf32, #tpu.memory_space<vmem>>, vector<7x7x128xf32>
    %27 = vector.shape_cast %26 : vector<7x7x128xf32> to vector<49x128xf32>
    %c0_39 = arith.constant 0 : index
    %c896 = arith.constant 896 : index
    %28 = vector.load %arg5[%c0_39, %c896] : memref<49x1152xf32, #tpu.memory_space<vmem>>, vector<49x128xf32>
    tpu.vector_store %arg5[%c0_39, %c896], %27 {strides = array<i32>} : memref<49x1152xf32, #tpu.memory_space<vmem>>, vector<49x128xf32>,
    %c2_40 = arith.constant 2 : index
    %c2_41 = arith.constant 2 : index
    %c0_42 = arith.constant 0 : index
    %29 = vector.load %arg4[%c2_40, %c2_41, %c0_42] : memref<9x9x128xf32, #tpu.memory_space<vmem>>, vector<7x7x128xf32>
    %30 = vector.shape_cast %29 : vector<7x7x128xf32> to vector<49x128xf32>
    %c0_43 = arith.constant 0 : index
    %c1024 = arith.constant 1024 : index
    %31 = vector.load %arg5[%c0_43, %c1024] : memref<49x1152xf32, #tpu.memory_space<vmem>>, vector<49x128xf32>
    tpu.vector_store %arg5[%c0_43, %c1024], %30 {strides = array<i32>} : memref<49x1152xf32, #tpu.memory_space<vmem>>, vector<49x128xf32>,
    %c0_44 = arith.constant 0 : index
    %c0_45 = arith.constant 0 : index
    %32 = vector.load %arg5[%c0_44, %c0_45] : memref<49x1152xf32, #tpu.memory_space<vmem>>, vector<49x1152xf32>
    %c0_46 = arith.constant 0 : index
    %c0_47 = arith.constant 0 : index
    %33 = vector.load %arg2[%c0_46, %c0_47] : memref<1152x128xf32, #tpu.memory_space<vmem>>, vector<1152x128xf32>
    %cst_48 = arith.constant dense<0.000000e+00> : vector<49x128xf32>
    %34 = tpu.matmul %32, %33, %cst_48 {dimension_numbers = #tpu.dot_dimension_numbers<[1], [0], [0], [1], [0, 0, 1, 1], [], []>} : vector<49x1152xf32>, vector<1152x128xf32>, vector<49x128xf32> -> vector<49x128xf32>
    %c0_49 = arith.constant 0 : index
    %c0_50 = arith.constant 0 : index
    %c0_51 = arith.constant 0 : index
    %35 = vector.load %arg3[%c0_49, %c0_50, %c0_51] : memref<1x49x128xf32, #tpu.memory_space<vmem>>, vector<1x49x128xf32>
    %36 = vector.shape_cast %35 : vector<1x49x128xf32> to vector<49x128xf32>
    %37 = vector.shape_cast %34 : vector<49x128xf32> to vector<1x49x128xf32>
    tpu.vector_store %arg3[%c0_49, %c0_50, %c0_51], %37 {strides = array<i32>} : memref<1x49x128xf32, #tpu.memory_space<vmem>>, vector<1x49x128xf32>,
    return
  }
  func.func @transform_0(%arg0: i32) -> (i32, i32, i32, i32) {
    %c0_i32 = arith.constant 0 : i32
    %c0_i32_0 = arith.constant 0 : i32
    %c0_i32_1 = arith.constant 0 : i32
    %c0_i32_2 = arith.constant 0 : i32
    return %arg0, %c0_i32, %c0_i32_0, %c0_i32_1 : i32, i32, i32, i32
  }
  func.func @transform_1(%arg0: i32) -> (i32, i32) {
    %c0_i32 = arith.constant 0 : i32
    %c0_i32_0 = arith.constant 0 : i32
    %c0_i32_1 = arith.constant 0 : i32
    return %c0_i32, %c0_i32_0 : i32, i32
  }
  func.func @transform_2(%arg0: i32) -> (i32, i32, i32) {
    %c0_i32 = arith.constant 0 : i32
    %c0_i32_0 = arith.constant 0 : i32
    %c0_i32_1 = arith.constant 0 : i32
    return %arg0, %c0_i32, %c0_i32_0 : i32, i32, i32
  }
}

</mosaic_0001>

<bundles_post_ra>
// kernel: conv2d_3x3_same.1
= control target key start
LH: loop header
LB: loop body
LE: loop exit
PB: predicated region body
PF: predicated region fallthrough
CT: control target
= control target key end

     0   :  { %7 = vsyncpa [#allocation5], 0  ;;  %s7284_s9 = smov [#allocation4]   ;;  %s8685_s0 = inlined_call_operand.vmem [shape: f32[1,7,7,128], index: 0, kind: input, shape index: {}]   ;;  %s8686_s1 = inlined_call_operand.hbm [shape: f32[1152,128], index: 1, kind: input, shape index: {}]   ;;  %s8687_s2 = inlined_call_operand.vmem [shape: f32[1,49,128], index: 2, kind: output, shape index: {}]  }
   0x1   :  { %s15_s10 = sshll.u32 %s7284_s9, 4  ;;  %s16_s10 = int_to_ptr.vmem [resolvable:$true] %s15_s10 }
   0x2   :  { %s7270_s11 = scalar_lea.vmem %s16_s10, 18432  ;;  %p7275_p1 = scmp.lt.s32.totalorder %s16_s10, %s16_s10 }
   0x3   :  { %p7271_p0 = scmp.ne.s32.totalorder %s16_s10, %s7270_s11  ;;  %p7276_p2 = scmp.lt.s32.totalorder %s7270_s11, %s7270_s11 }
   0x5   :  { %p7277_p3 = por %p7276_p2, %p7275_p1 }
   0x7   :  { %p7278_p4 = pnand %p7277_p3, %p7271_p0 }
   0x9   :  { %7281 = shalt.err (!%p7278_p4)
}
   0xa   :  { %s7285_s12 = smov 128   ;;  %s7286_s13 = smov 8  }
   0xb   :  { %21 = dma.hbm_to_vmem [thread:$0]  %s8686_s1, 18432, %s16_s10, [#allocation5], %s7285_s12, %s7285_s12, %s7286_s13  }
   0xc   :  { %7282 = dma.done.wait [#allocation5], 18432  }
   0xd   :  { %7283 = vsyncadd [#allocation5], 4294948864  ;;  %v7287_v0 = vmov 0.0   ;;  %v6201_v1 = vld [vmem:[#allocation4 + $0xf8] sm:$0xff]  ;;  %v6200_v3 = vld [vmem:[#allocation4 + $0xf0] sm:$0xff]  ;;  %v76_v26 = vlaneseq  ;;  %vm7289_vm0 = vmmov 0  }
   0xe   :  { %25 = vst [vmem:[#allocation2] sm:$0xff] %v7287_v0  ;;  %27 = vst [vmem:[#allocation2 + $0x10] sm:$0xff] %v7287_v0  ;;  %v6185_v2 = vld [vmem:[#allocation4 + $0x78] sm:$0xff]  ;;  %6871 = vmatprep.subr.mxu0 %v6201_v1  ;;  %v6184_v5 = vld [vmem:[#allocation4 + $0x70] sm:$0xff]  ;;  %v7288_v24 = vmov 1966171168  }
   0xf   :  { %26 = vst [vmem:[#allocation2 + $0x8] sm:$0x1] %v7287_v0  ;;  %28 = vst [vmem:[#allocation2 + $0x18] sm:$0x1] %v7287_v0  ;;  %v6233_v4 = vld [vmem:[#allocation4 + $0x1f8] sm:$0xff]  ;;  %6872 = vmatpush3.msra.mxu0 %v6185_v2  ;;  %v6199_v7 = vld [vmem:[#allocation4 + $0xe8] sm:$0xff]  ;;  %v74_v25 = vunpack.c.l.s4 %v7288_v24 }
  0x10   :  { %29 = vst [vmem:[#allocation2 + $0x20] sm:$0xff] %v7287_v0  ;;  %30 = vst [vmem:[#allocation2 + $0x28] sm:$0x1] %v7287_v0  ;;  %v6217_v6 = vld [vmem:[#allocation4 + $0x178] sm:$0xff]  ;;  %6924 = vmatprep.subr.mxu1 %v6233_v4  ;;  %v6232_v8 = vld [vmem:[#allocation4 + $0x1f0] sm:$0xff]  ;;  %6873 = vmatprep.subr.mxu0 %v6200_v3  ;;  %v77_v36 = vshrl.u32 %v76_v26, 7 }
  0x11   :  { %31 = vst [vmem:[#allocation2 + $0x30] sm:$0xff] %v7287_v0  ;;  %32 = vst [vmem:[#allocation2 + $0x38] sm:$0x1] %v7287_v0  ;;  %6925 = vmatpush3.msra.mxu1 %v6217_v6  ;;  %v6183_v9 = vld [vmem:[#allocation4 + $0x68] sm:$0xff]  ;;  %v6216_v10 = vld [vmem:[#allocation4 + $0x170] sm:$0xff]  ;;  %6874 = vmatpush3.msra.mxu0 %v6184_v5  ;;  %v75_v35 = vunpack.c.0.s8 %v74_v25 }
  0x12   :  { %33 = vst [vmem:[#allocation2 + $0x40] sm:$0xff] %v7287_v0  ;;  %34 = vst [vmem:[#allocation2 + $0x48] sm:$0x1] %v7287_v0  ;;  %v6231_v11 = vld [vmem:[#allocation4 + $0x1e8] sm:$0xff]  ;;  %6926 = vmatprep.subr.mxu1 %v6232_v8  ;;  %v6198_v12 = vld [vmem:[#allocation4 + $0xe0] sm:$0xff]  ;;  %6875 = vmatprep.subr.mxu0 %v6199_v7 }
  0x13   :  { %35 = vst [vmem:[#allocation2 + $0x50] sm:$0xff] %v7287_v0  ;;  %36 = vst [vmem:[#allocation2 + $0x58] sm:$0x1] %v7287_v0  ;;  %v6215_v13 = vld [vmem:[#allocation4 + $0x168] sm:$0xff]  ;;  %6927 = vmatpush3.msra.mxu1 %v6216_v10  ;;  %v6182_v14 = vld [vmem:[#allocation4 + $0x60] sm:$0xff]  ;;  %6876 = vmatpush3.msra.mxu0 %v6183_v9  ;;  %v7308_v45 = vsub.s32 %v75_v35, %v77_v36 }
  0x14   :  { %37 = vst [vmem:[#allocation2 + $0x60] sm:$0xff] %v7287_v0  ;;  %38 = vst [vmem:[#allocation2 + $0x68] sm:$0x1] %v7287_v0  ;;  %v6230_v15 = vld [vmem:[#allocation4 + $0x1e0] sm:$0xff]  ;;  %6928 = vmatprep.subr.mxu1 %v6231_v11  ;;  %v6197_v16 = vld [vmem:[#allocation4 + $0xd8] sm:$0xff]  ;;  %6877 = vmatprep.subr.mxu0 %v6198_v12 }
  0x15   :  { %39 = vst [vmem:[#allocation2 + $0x70] sm:$0xff] %v7287_v0  ;;  %40 = vst [vmem:[#allocation2 + $0x78] sm:$0x1] %v7287_v0  ;;  %v6214_v17 = vld [vmem:[#allocation4 + $0x160] sm:$0xff]  ;;  %6929 = vmatpush3.msra.mxu1 %v6215_v13  ;;  %v6181_v18 = vld [vmem:[#allocation4 + $0x58] sm:$0xff]  ;;  %6878 = vmatpush3.msra.mxu0 %v6182_v14 }
  0x16   :  { %41 = vst [vmem:[#allocation2 + $0x80] sm:$0xff] %v7287_v0  ;;  %42 = vst [vmem:[#allocation2 + $0x88] sm:$0x1] %v7287_v0  ;;  %v6229_v19 = vld [vmem:[#allocation4 + $0x1d8] sm:$0xff]  ;;  %6930 = vmatprep.subr.mxu1 %v6230_v15  ;;  %v6196_v20 = vld [vmem:[#allocation4 + $0xd0] sm:$0xff]  ;;  %6879 = vmatprep.subr.mxu0 %v6197_v16 }
  0x17   :  { %v6213_v21 = vld [vmem:[#allocation4 + $0x158] sm:$0xff]  ;;  %6931 = vmatpush3.msra.mxu1 %v6214_v17  ;;  %v6180_v22 = vld [vmem:[#allocation4 + $0x50] sm:$0xff]  ;;  %6880 = vmatpush3.msra.mxu0 %v6181_v18  ;;  %v6195_v27 = vld [vmem:[#allocation4 + $0xc8] sm:$0xff] }
  0x18   :  { %v6228_v23 = vld [vmem:[#allocation4 + $0x1d0] sm:$0xff]  ;;  %6932 = vmatprep.subr.mxu1 %v6229_v19  ;;  %6881 = vmatprep.subr.mxu0 %v6196_v20  ;;  %v6179_v29 = vld [vmem:[#allocation4 + $0x48] sm:$0xff]  ;;  %v6194_v31 = vld [vmem:[#allocation4 + $0xc0] sm:$0xff] }
  0x19   :  { %v6212_v28 = vld [vmem:[#allocation4 + $0x150] sm:$0xff]  ;;  %6933 = vmatpush3.msra.mxu1 %v6213_v21  ;;  %v6227_v30 = vld [vmem:[#allocation4 + $0x1c8] sm:$0xff]  ;;  %6882 = vmatpush3.msra.mxu0 %v6180_v22  ;;  %v6178_v33 = vld [vmem:[#allocation4 + $0x40] sm:$0xff] }
  0x1a   :  { %6934 = vmatprep.subr.mxu1 %v6228_v23  ;;  %v6211_v32 = vld [vmem:[#allocation4 + $0x148] sm:$0xff]  ;;  %6883 = vmatprep.subr.mxu0 %v6195_v27  ;;  %v6226_v34 = vld [vmem:[#allocation4 + $0x1c0] sm:$0xff]  ;;  %v6193_v37 = vld [vmem:[#allocation4 + $0xb8] sm:$0xff] }
  0x1b   :  { %6935 = vmatpush3.msra.mxu1 %v6212_v28  ;;  %6884 = vmatpush3.msra.mxu0 %v6179_v29  ;;  %v6210_v38 = vld [vmem:[#allocation4 + $0x140] sm:$0xff]  ;;  %v6177_v39 = vld [vmem:[#allocation4 + $0x38] sm:$0xff]  ;;  %v6192_v41 = vld [vmem:[#allocation4 + $0xb0] sm:$0xff] }
  0x1c   :  { %6936 = vmatprep.subr.mxu1 %v6227_v30  ;;  %6885 = vmatprep.subr.mxu0 %v6194_v31  ;;  %v6225_v40 = vld [vmem:[#allocation4 + $0x1b8] sm:$0xff]  ;;  %v6176_v43 = vld [vmem:[#allocation4 + $0x30] sm:$0xff]  ;;  %v6191_v46 = vld [vmem:[#allocation4 + $0xa8] sm:$0xff] }
  0x1d   :  { %6937 = vmatpush3.msra.mxu1 %v6211_v32  ;;  %6886 = vmatpush3.msra.mxu0 %v6178_v33  ;;  %v6209_v42 = vld [vmem:[#allocation4 + $0x138] sm:$0xff]  ;;  %v6224_v44 = vld [vmem:[#allocation4 + $0x1b0] sm:$0xff]  ;;  %v6175_v48 = vld [vmem:[#allocation4 + $0x28] sm:$0xff] }
  0x1e   :  { %6938 = vmatprep.subr.mxu1 %v6226_v34  ;;  %6887 = vmatprep.subr.mxu0 %v6193_v37  ;;  %v6208_v47 = vld [vmem:[#allocation4 + $0x130] sm:$0xff]  ;;  %v6190_v49 = vld [vmem:[#allocation4 + $0xa0] sm:$0xff]  ;;  %v6223_v50 = vld [vmem:[#allocation4 + $0x1a8] sm:$0xff] }
  0x1f   :  { %6939 = vmatpush3.msra.mxu1 %v6210_v38  ;;  %6888 = vmatpush3.msra.mxu0 %v6177_v39  ;;  %v6207_v51 = vld [vmem:[#allocation4 + $0x128] sm:$0xff]  ;;  %v43_v52 = vld [vmem:[%s8685_s0] sm:$0x7f]  ;;  %v6174_v54 = vld [vmem:[#allocation4 + $0x20] sm:$0xff] }
  0x20   :  { %6940 = vmatprep.subr.mxu1 %v6225_v40  ;;  %6889 = vmatprep.subr.mxu0 %v6192_v41  ;;  %v730_v53 = vld [vmem:[#allocation2 + $0x1] sm:$0x7f]  ;;  %v6222_v55 = vld [vmem:[#allocation4 + $0x1a0] sm:$0xff]  ;;  %51 = vst [vmem:[#allocation2 + $0x11] sm:$0x7f] %v43_v52  ;;  %v6188_v5 = vld [vmem:[#allocation4 + $0x90] sm:$0xff] }
  0x21   :  { %6941 = vmatpush3.msra.mxu1 %v6209_v42  ;;  %6890 = vmatpush3.msra.mxu0 %v6176_v43  ;;  %v744_v56 = vcombine.high %v730_v53, %v730_v53  ;;  %v751_v57 = vrot.slane %v730_v53, %v7308_v45  ;;  %v58_v58 = vld [vmem:[#allocation2] sm:$0x7f]  ;;  %v6206_v60 = vld [vmem:[#allocation4 + $0x120] sm:$0xff]  ;;  %v6172_v10 = vld [vmem:[#allocation4 + $0x10] sm:$0xff] }
  0x22   :  { %6942 = vmatprep.subr.mxu1 %v6224_v44  ;;  %6891 = vmatprep.subr.mxu0 %v6191_v46  ;;  %v6189_v59 = vld [vmem:[#allocation4 + $0x98] sm:$0xff]  ;;  %v72_v61 = vcombine.high %v58_v58, %v58_v58  ;;  %v79_v62 = vrot.slane %v58_v58, %v7308_v45  ;;  %v44_v4 = vld [vmem:[%s8685_s0 + $0x8] sm:$0x7f]  ;;  %v6220_v11 = vld [vmem:[#allocation4 + $0x190] sm:$0xff] }
  0x23   :  { %6943 = vmatpush3.msra.mxu1 %v6208_v47  ;;  %6892 = vmatpush3.msra.mxu0 %v6175_v48  ;;  %v6173_v63 = vld [vmem:[#allocation4 + $0x18] sm:$0xff]  ;;  %v758_v1 = vrot.slane %v744_v56, %v7308_v45  ;;  %v759_v2 = vcombine.high %v751_v57, %v751_v57  ;;  %v767_v3 = vrot.slane %v751_v57, %v7308_v45  ;;  %v6187_v15 = vld [vmem:[#allocation4 + $0x88] sm:$0xff]  ;;  %v6204_v16 = vld [vmem:[#allocation4 + $0x110] sm:$0xff] }
  0x24   :  { %6944 = vmatprep.subr.mxu1 %v6223_v50  ;;  %6893 = vmatprep.subr.mxu0 %v6190_v49  ;;  %v6221_v0 = vld [vmem:[#allocation4 + $0x198] sm:$0xff]  ;;  %v86_v7 = vrot.slane %v72_v61, %v7308_v45  ;;  %v87_v8 = vcombine.high %v79_v62, %v79_v62  ;;  %v7322_v9 = vrot.slane %v79_v62, %v7308_v45  ;;  %v45_v20 = vld [vmem:[%s8685_s0 + $0x10] sm:$0x7f]  ;;  %v6186_v22 = vld [vmem:[#allocation4 + $0x80] sm:$0xff] }
  0x25   :  { %6945 = vmatpush3.msra.mxu1 %v6207_v51  ;;  %6894 = vmatpush3.msra.mxu0 %v6174_v54  ;;  %v6205_v6 = vld [vmem:[#allocation4 + $0x118] sm:$0xff]  ;;  %52 = vst [vmem:[#allocation2 + $0x21] sm:$0x7f] %v44_v4  ;;  %v760_v12 = vcombine.high %v758_v1, %v758_v1  ;;  %v774_v13 = vrot.slane %v758_v1, %v7308_v45  ;;  %v6171_v21 = vld [vmem:[#allocation4 + $0x8] sm:$0xff]  ;;  %53 = vst [vmem:[#allocation2 + $0x31] sm:$0x7f] %v45_v20 }
  0x26   :  { %6946 = vmatprep.subr.mxu1 %v6222_v55  ;;  %6895 = vmatprep.subr.mxu0 %v6189_v59  ;;  %v781_v14 = vrot.slane %v759_v2, %v7308_v45  ;;  %v88_v17 = vcombine.high %v86_v7, %v86_v7  ;;  %v102_v18 = vrot.slane %v86_v7, %v7308_v45  ;;  %v6219_v23 = vld [vmem:[#allocation4 + $0x188] sm:$0xff]  ;;  %v6170_v33 = vld [vmem:[#allocation4] sm:$0xff]  ;;  %v6265_v41 = vld [vmem:[#allocation4 + $0x2f8] sm:$0xff] }
  0x27   :  { %6947 = vmatpush3.msra.mxu1 %v6206_v60  ;;  %6896 = vmatpush3.msra.mxu0 %v6173_v63  ;;  %v109_v19 = vrot.slane %v87_v8, %v7308_v45  ;;  %v788_v24 = vrot.slane %v760_v12, %v7308_v45  ;;  %v790_v25 = vcombine.high %v774_v13, %v774_v13  ;;  %v7332_v27 = vld [vmem:[#allocation2 + $0x11] sm:$0x7f]  ;;  %v6218_v37 = vld [vmem:[#allocation4 + $0x180] sm:$0xff]  ;;  %v46_v43 = vld [vmem:[%s8685_s0 + $0x18] sm:$0x7f] }
  0x28   :  { %6948 = vmatprep.subr.mxu1 %v6221_v0  ;;  %6897 = vmatprep.subr.mxu0 %v6188_v5  ;;  %v1080_v26 = vcombine.low %v767_v3, %v781_v14  ;;  %v6831_v28 = vcombine.high %v767_v3, %v781_v14  ;;  %v6203_v29 = vld [vmem:[#allocation4 + $0x108] sm:$0xff]  ;;  %v116_v31 = vrot.slane %v88_v17, %v7308_v45  ;;  %v6202_v48 = vld [vmem:[#allocation4 + $0x100] sm:$0xff]  ;;  %v6297_v53 = vld [vmem:[#allocation4 + $0x3f8] sm:$0xff] }
  0x29   :  { %6949 = vmatpush3.msra.mxu1 %v6205_v6  ;;  %6898 = vmatpush3.msra.mxu0 %v6172_v10  ;;  %v7334_v30 = vld [vmem:[#allocation2 + $0x10] sm:$0x7f]  ;;  %v118_v32 = vcombine.high %v102_v18, %v102_v18  ;;  %v792_v34 = vcombine.high %v7332_v27, %v7332_v27  ;;  %v7341_v35 = vrot.slane %v7332_v27, %v7308_v45  ;;  %v1402_v58 = vld [vmem:[#allocation2 + $0x2] sm:$0x7f] }
  0x2a   :  { %6950 = vmatprep.subr.mxu1 %v6220_v11  ;;  %6899 = vmatprep.subr.mxu0 %v6187_v15  ;;  %v1082_v36 = vcombine.low %v774_v13, %v788_v24  ;;  %v1090_v38 = vrot.slane %v1080_v26, %v7308_v45  ;;  %v1097_v39 = vrot.slane %v6831_v28, %v7308_v45  ;;  %v2074_v42 = vld [vmem:[#allocation2 + $0x10] sm:$0x7f]  ;;  %v47_v7 = vld [vmem:[%s8685_s0 + $0x20] sm:$0x7f] }
  0x2b   :  { %6951 = vmatpush3.msra.mxu1 %v6204_v16  ;;  %6900 = vmatpush3.msra.mxu0 %v6171_v21  ;;  %v7347_v40 = vrot.slane %v7334_v30, %v7308_v45  ;;  %v7354_v44 = vrot.slane %v7341_v35, %v7308_v45  ;;  %v408_v47 = vcombine.low %v7322_v9, %v109_v19  ;;  %v7385_v12 = vld [vmem:[#allocation2 + $0x12] sm:$0x7f] }
  0x2c   :  { %6952 = vmatprep.subr.mxu1 %v6219_v23  ;;  %6901 = vmatprep.subr.mxu0 %v6186_v22  ;;  %v1104_v46 = vrot.slane %v1082_v36, %v7308_v45  ;;  %54 = vst [vmem:[#allocation2 + $0x41] sm:$0x7f] %v46_v43  ;;  %v1112_v49 = vcombine.low %v1090_v38, %v1097_v39  ;;  %v7365_v56 = vld [vmem:[#allocation2 + $0x20] sm:$0x7f]  ;;  %55 = vst [vmem:[#allocation2 + $0x51] sm:$0x7f] %v47_v7 }
  0x2d   :  { %6953 = vmatpush3.msra.mxu1 %v6203_v29  ;;  %6902 = vmatpush3.msra.mxu0 %v6170_v33  ;;  %v7360_v50 = vrot.slane %v7347_v40, %v7308_v45  ;;  %v6826_v51 = vcombine.high %v7322_v9, %v109_v19  ;;  %v410_v52 = vcombine.low %v102_v18, %v116_v31  ;;  %v6249_v33 = vld [vmem:[#allocation4 + $0x278] sm:$0xff]  ;;  %v6264_v43 = vld [vmem:[#allocation4 + $0x2f0] sm:$0xff]  ;;  %v6262_v7 = vld [vmem:[#allocation4 + $0x2e0] sm:$0xff] }
  0x2e   :  { %v1083_v54 = vcombine.low %v790_v25, %v7354_v44  ;;  %v418_v55 = vrot.slane %v408_v47, %v7308_v45  ;;  %6954 = vmatprep.subr.mxu1 %v6218_v37  ;;  %6977 = vmatprep.subr.mxu0 %v6265_v41  ;;  %v2088_v57 = vcombine.high %v2074_v42, %v2074_v42  ;;  %v48_v25 = vld [vmem:[%s8685_s0 + $0x28] sm:$0x7f]  ;;  %v49_v47 = vld [vmem:[%s8685_s0 + $0x30] sm:$0x7f] }
  0x2f   :  { %v1120_v59 = vrot.slane %v1112_v49, %v7308_v45  ;;  %v411_v60 = vcombine.low %v118_v32, %v7360_v50  ;;  %v425_v61 = vrot.slane %v6826_v51, %v7308_v45  ;;  %v432_v62 = vrot.slane %v410_v52, %v7308_v45  ;;  %6955 = vmatpush3.msra.mxu1 %v6202_v48 }
  0x30   :  { %v1111_v63 = vrot.slane %v1083_v54, %v7308_v45  ;;  %v2095_v0 = vrot.slane %v2074_v42, %v7308_v45  ;;  %v2102_v1 = vrot.slane %v2088_v57, %v7308_v45  ;;  %v2136_v2 = vcombine.high %v7365_v56, %v7365_v56  ;;  %7030 = vmatprep.subr.mxu1 %v6297_v53  ;;  %v6248_v53 = vld [vmem:[#allocation4 + $0x270] sm:$0xff]  ;;  %v6263_v57 = vld [vmem:[#allocation4 + $0x2e8] sm:$0xff] }
  0x31   :  { %v439_v3 = vrot.slane %v411_v60, %v7308_v45  ;;  %v440_v4 = vcombine.low %v418_v55, %v425_v61  ;;  %v7379_v5 = vrot.slane %v7365_v56, %v7308_v45  ;;  %v1416_v6 = vcombine.high %v1402_v58, %v1402_v58  ;;  %56 = vst [vmem:[#allocation2 + $0x61] sm:$0x7f] %v48_v25  ;;  %v7455_v56 = vld [vmem:[#allocation2 + $0x30] sm:$0x7f] }
  0x32   :  { %v1113_v8 = vcombine.low %v1104_v46, %v1111_v63  ;;  %v2103_v9 = vcombine.high %v2095_v0, %v2095_v0  ;;  %v2104_v10 = vcombine.high %v2102_v1, %v2102_v1  ;;  %v2111_v11 = vrot.slane %v2095_v0, %v7308_v45  ;;  %57 = vst [vmem:[#allocation2 + $0x71] sm:$0x7f] %v49_v47  ;;  %v6247_v0 = vld [vmem:[#allocation4 + $0x268] sm:$0xff] }
  0x33   :  { %v441_v13 = vcombine.low %v432_v62, %v439_v3  ;;  %v448_v14 = vrot.slane %v440_v4, %v7308_v45  ;;  %v2118_v15 = vrot.slane %v2102_v1, %v7308_v45  ;;  %v7391_v16 = vrot.slane %v7379_v5, %v7308_v45 }
  0x34   :  { %v1127_v17 = vrot.slane %v1113_v8, %v7308_v45  ;;  %v2125_v18 = vrot.slane %v2103_v9, %v7308_v45  ;;  %v2132_v19 = vrot.slane %v2104_v10, %v7308_v45  ;;  %v1423_v20 = vrot.slane %v1402_v58, %v7308_v45  ;;  %v7434_v9 = vld [vmem:[#allocation2 + $0x21] sm:$0x7f]  ;;  %v6246_v10 = vld [vmem:[#allocation4 + $0x260] sm:$0xff] }
  0x35   :  { %v455_v21 = vrot.slane %v441_v13, %v7308_v45  ;;  %v2134_v22 = vcombine.high %v2118_v15, %v2118_v15  ;;  %v1430_v23 = vrot.slane %v1416_v6, %v7308_v45  ;;  %v7401_v24 = vrot.slane %v7385_v12, %v7308_v45 }
  0x36   :  { %v1128_v26 = vcombine.low %v1120_v59, %v1127_v17  ;;  %v2424_v28 = vcombine.low %v2111_v11, %v2125_v18  ;;  %v6841_v29 = vcombine.high %v2111_v11, %v2125_v18  ;;  %v2426_v31 = vcombine.low %v2118_v15, %v2132_v19 }
  0x37   :  { %v456_v32 = vcombine.low %v448_v14, %v455_v21  ;;  %v2427_v36 = vcombine.low %v2134_v22, %v7391_v16  ;;  %v1431_v37 = vcombine.high %v1423_v20, %v1423_v20  ;;  %v1432_v38 = vcombine.high %v1430_v23, %v1430_v23  ;;  %v6261_v21 = vld [vmem:[#allocation4 + $0x2d8] sm:$0xff] }
  0x38   :  { %6378 = vmatprep.mubr.f32.mxu0 %v1128_v26  ;;  %v2434_v39 = vrot.slane %v2424_v28, %v7308_v45  ;;  %v2441_v41 = vrot.slane %v6841_v29, %v7308_v45  ;;  %v2448_v42 = vrot.slane %v2426_v31, %v7308_v45  ;;  %v1439_v46 = vrot.slane %v1423_v20, %v7308_v45  ;;  %v6245_v28 = vld [vmem:[#allocation4 + $0x258] sm:$0xff] }
  0x39   :  { %6379 = vmatmul.mubr.f32.vlgmr.msra.gmra.mxu0 %v456_v32  ;;  %v2455_v48 = vrot.slane %v2427_v36, %v7308_v45  ;;  %v1446_v49 = vrot.slane %v1430_v23, %v7308_v45  ;;  %v1453_v51 = vrot.slane %v1431_v37, %v7308_v45  ;;  %v1460_v52 = vrot.slane %v1432_v38, %v7308_v45 }
  0x3a   :  { %6978 = vmatpush3.msra.mxu0 %v6249_v33  ;;  %v2456_v54 = vcombine.low %v2434_v39, %v2441_v41  ;;  %v7420_v55 = vrot.slane %v7401_v24, %v7308_v45  ;;  %v806_v58 = vrot.slane %v792_v34, %v7308_v45  ;;  %v807_v59 = vcombine.high %v7341_v35, %v7341_v35  ;;  %v6260_v33 = vld [vmem:[#allocation4 + $0x2d0] sm:$0xff] }
  0x3b   :  { %v2457_v60 = vcombine.low %v2448_v42, %v2455_v48  ;;  %6979 = vmatprep.subr.mxu0 %v6264_v43  ;;  %v1462_v61 = vcombine.high %v1446_v49, %v1446_v49  ;;  %v1752_v62 = vcombine.low %v1439_v46, %v1453_v51  ;;  %v6836_v63 = vcombine.high %v1439_v46, %v1453_v51 }
  0x3c   :  { %v2464_v1 = vrot.slane %v2456_v54, %v7308_v45  ;;  %v1754_v3 = vcombine.low %v1446_v49, %v1460_v52  ;;  %6980 = vmatpush3.msra.mxu0 %v6248_v53  ;;  %v808_v4 = vcombine.high %v806_v58, %v806_v58  ;;  %v822_v6 = vrot.slane %v806_v58, %v7308_v45  ;;  %v6281_v53 = vld [vmem:[#allocation4 + $0x378] sm:$0xff] }
  0x3d   :  { %v2471_v27 = vrot.slane %v2457_v60, %v7308_v45  ;;  %v1755_v34 = vcombine.low %v1462_v61, %v7420_v55  ;;  %v1762_v35 = vrot.slane %v1752_v62, %v7308_v45  ;;  %v1769_v8 = vrot.slane %v6836_v63, %v7308_v45  ;;  %6981 = vmatprep.subr.mxu0 %v6263_v57 }
  0x3e   :  { %v1776_v11 = vrot.slane %v1754_v3, %v7308_v45  ;;  %6982 = vmatpush3.msra.mxu0 %v6247_v0  ;;  %v829_v13 = vrot.slane %v807_v59, %v7308_v45  ;;  %v836_v14 = vrot.slane %v808_v4, %v7308_v45  ;;  %v837_v15 = vcombine.high %v7354_v44, %v7354_v44  ;;  %v6296_v59 = vld [vmem:[#allocation4 + $0x3f0] sm:$0xff]  ;;  %v7475_v4 = vld [vmem:[#allocation2 + $0x20] sm:$0x7f] }
  0x3f   :  { %v2472_v17 = vcombine.low %v2464_v1, %v2471_v27  ;;  %v1783_v18 = vrot.slane %v1755_v34, %v7308_v45  ;;  %v1784_v19 = vcombine.low %v1762_v35, %v1769_v8  ;;  %v838_v20 = vcombine.high %v822_v6, %v822_v6  ;;  %6983 = vmatprep.subr.mxu0 %v6262_v7  ;;  %v6295_v8 = vld [vmem:[#allocation4 + $0x3e8] sm:$0xff] }
  0x40   :  { %v839_v22 = vcombine.high %v829_v13, %v829_v13  ;;  %v847_v23 = vrot.slane %v7434_v9, %v7308_v45  ;;  %v1129_v25 = vcombine.low %v829_v13, %v837_v15  ;;  %v2150_v26 = vrot.slane %v2136_v2, %v7308_v45  ;;  %6984 = vmatpush3.msra.mxu0 %v6246_v10  ;;  %v6244_v2 = vld [vmem:[#allocation4 + $0x250] sm:$0xff] }
  0x41   :  { %6478 = vmatprep.mubr.f32.mxu1 %v2472_v17  ;;  %v1785_v44 = vcombine.low %v1776_v11, %v1783_v18  ;;  %v1792_v29 = vrot.slane %v1784_v19, %v7308_v45  ;;  %v1131_v31 = vcombine.low %v836_v14, %v838_v20  ;;  %v2151_v32 = vcombine.high %v7379_v5, %v7379_v5  ;;  %v6259_v5 = vld [vmem:[#allocation4 + $0x2c8] sm:$0xff]  ;;  %v6294_v20 = vld [vmem:[#allocation4 + $0x3e0] sm:$0xff] }
  0x42   :  { %v855_v36 = vcombine.high %v847_v23, %v847_v23  ;;  %v7452_v37 = vrot.slane %v847_v23, %v7308_v45  ;;  %v1130_v38 = vcombine.low %v839_v22, %v822_v6  ;;  %v1139_v39 = vrot.slane %v1129_v25, %v7308_v45  ;;  %6985 = vmatprep.subr.mxu0 %v6261_v21  ;;  %v6279_v14 = vld [vmem:[#allocation4 + $0x368] sm:$0xff]  ;;  %v6278_v25 = vld [vmem:[#allocation4 + $0x360] sm:$0xff] }
  0x43   :  { %v1799_v41 = vrot.slane %v1785_v44, %v7308_v45  ;;  %v1153_v42 = vrot.slane %v1131_v31, %v7308_v45  ;;  %v2152_v43 = vcombine.high %v2150_v26, %v2150_v26  ;;  %v2166_v46 = vrot.slane %v2150_v26, %v7308_v45  ;;  %6986 = vmatpush3.msra.mxu0 %v6245_v28 }
  0x44   :  { %v7461_v47 = vrot.slane %v855_v36, %v7308_v45  ;;  %v1146_v48 = vrot.slane %v1130_v38, %v7308_v45  ;;  %v2173_v49 = vrot.slane %v2151_v32, %v7308_v45  ;;  %v2181_v51 = vcombine.high %v7391_v16, %v7391_v16  ;;  %6987 = vmatprep.subr.mxu0 %v6260_v33  ;;  %v6280_v16 = vld [vmem:[#allocation4 + $0x370] sm:$0xff] }
  0x45   :  { %v1800_v52 = vcombine.low %v1792_v29, %v1799_v41  ;;  %v2180_v54 = vrot.slane %v2152_v43, %v7308_v45  ;;  %v2182_v57 = vcombine.high %v2166_v46, %v2166_v46  ;;  %v2191_v58 = vrot.slane %v7455_v56, %v7308_v45  ;;  %6988 = vmatpush3.msra.mxu0 %v6244_v2  ;;  %v6293_v29 = vld [vmem:[#allocation4 + $0x3d8] sm:$0xff] }
  0x46   :  { %v1132_v60 = vcombine.low %v7452_v37, %v7461_v47  ;;  %v1161_v61 = vcombine.low %v1139_v39, %v1146_v48  ;;  %v2183_v62 = vcombine.high %v2173_v49, %v2173_v49  ;;  %v2473_v63 = vcombine.low %v2173_v49, %v2181_v51  ;;  %6989 = vmatprep.subr.mxu0 %v6259_v5  ;;  %v7508_v48 = vld [vmem:[#allocation2 + $0x22] sm:$0x7f]  ;;  %v6292_v51 = vld [vmem:[#allocation4 + $0x3d0] sm:$0xff] }
  0x47   :  { %6479 = vmatmul.mubr.f32.vlgmr.msra.gmra.mxu1 %v1800_v52  ;;  %v2199_v0 = vcombine.high %v2191_v58, %v2191_v58  ;;  %v7473_v1 = vrot.slane %v2191_v58, %v7308_v45  ;;  %v2475_v3 = vcombine.low %v2180_v54, %v2182_v57  ;;  %v120_v6 = vcombine.high %v7334_v30, %v7334_v30  ;;  %v6243_v58 = vld [vmem:[#allocation4 + $0x248] sm:$0xff] }
  0x48   :  { %7031 = vmatpush3.msra.mxu1 %v6281_v53  ;;  %v1160_v7 = vrot.slane %v1132_v60, %v7308_v45  ;;  %v1169_v27 = vrot.slane %v1161_v61, %v7308_v45  ;;  %v2474_v34 = vcombine.low %v2183_v62, %v2166_v46  ;;  %v2483_v35 = vrot.slane %v2473_v63, %v7308_v45  ;;  %v6276_v62 = vld [vmem:[#allocation4 + $0x350] sm:$0xff] }
  0x49   :  { %7032 = vmatprep.subr.mxu1 %v6296_v59  ;;  %v7483_v10 = vrot.slane %v2199_v0, %v7308_v45  ;;  %v2497_v11 = vrot.slane %v2475_v3, %v7308_v45  ;;  %v134_v13 = vrot.slane %v120_v6, %v7308_v45  ;;  %v135_v30 = vcombine.high %v7347_v40, %v7347_v40 }
  0x4a   :  { %7033 = vmatpush3.msra.mxu1 %v6280_v16  ;;  %v1162_v15 = vcombine.low %v1153_v42, %v1160_v7  ;;  %v2490_v17 = vrot.slane %v2474_v34, %v7308_v45  ;;  %v165_v18 = vcombine.high %v7360_v50, %v7360_v50  ;;  %v175_v19 = vrot.slane %v7475_v4, %v7308_v45  ;;  %v6277_v42 = vld [vmem:[#allocation4 + $0x358] sm:$0xff] }
  0x4b   :  { %v2476_v21 = vcombine.low %v7473_v1, %v7483_v10  ;;  %7034 = vmatprep.subr.mxu1 %v6295_v8  ;;  %v136_v22 = vcombine.high %v134_v13, %v134_v13  ;;  %v150_v23 = vrot.slane %v134_v13, %v7308_v45  ;;  %v157_v40 = vrot.slane %v135_v30, %v7308_v45  ;;  %v7533_v13 = vld [vmem:[#allocation2 + $0x31] sm:$0x7f] }
  0x4c   :  { %v1176_v26 = vrot.slane %v1162_v15, %v7308_v45  ;;  %v2505_v28 = vcombine.low %v2483_v35, %v2490_v17  ;;  %v183_v44 = vcombine.high %v175_v19, %v175_v19  ;;  %v7500_v50 = vrot.slane %v175_v19, %v7308_v45  ;;  %7035 = vmatpush3.msra.mxu1 %v6279_v14  ;;  %v6291_v30 = vld [vmem:[#allocation4 + $0x3c8] sm:$0xff] }
  0x4d   :  { %v2504_v31 = vrot.slane %v2476_v21, %v7308_v45  ;;  %v164_v32 = vrot.slane %v136_v22, %v7308_v45  ;;  %v166_v33 = vcombine.high %v150_v23, %v150_v23  ;;  %v167_v36 = vcombine.high %v157_v40, %v157_v40  ;;  %7036 = vmatprep.subr.mxu1 %v6294_v20 }
  0x4e   :  { %v1177_v38 = vcombine.low %v1169_v27, %v1176_v26  ;;  %v2513_v39 = vrot.slane %v2505_v28, %v7308_v45  ;;  %v7506_v2 = vrot.slane %v183_v44, %v7308_v45  ;;  %v457_v41 = vcombine.low %v157_v40, %v165_v18  ;;  %7037 = vmatpush3.msra.mxu1 %v6278_v25  ;;  %v6258_v27 = vld [vmem:[#allocation4 + $0x2c0] sm:$0xff] }
  0x4f   :  { %v2506_v43 = vcombine.low %v2497_v11, %v2504_v31  ;;  %v458_v46 = vcombine.low %v167_v36, %v150_v23  ;;  %v459_v5 = vcombine.low %v164_v32, %v166_v33  ;;  %v1464_v49 = vcombine.high %v7385_v12, %v7385_v12  ;;  %7038 = vmatprep.subr.mxu1 %v6293_v29  ;;  %v6242_v18 = vld [vmem:[#allocation4 + $0x240] sm:$0xff]  ;;  %v6275_v23 = vld [vmem:[#allocation4 + $0x348] sm:$0xff]  ;;  %v6257_v33 = vld [vmem:[#allocation4 + $0x2b8] sm:$0xff] }
  0x50   :  { %6383 = vmatprep.mubr.f32.mxu0 %v1177_v38  ;;  %v460_v52 = vcombine.low %v7500_v50, %v7506_v2  ;;  %v467_v53 = vrot.slane %v457_v41, %v7308_v45  ;;  %v1479_v54 = vcombine.high %v7401_v24, %v7401_v24  ;;  %v1509_v57 = vcombine.high %v7420_v55, %v7420_v55 }
  0x51   :  { %v2520_v59 = vrot.slane %v2506_v43, %v7308_v45  ;;  %v474_v60 = vrot.slane %v458_v46, %v7308_v45  ;;  %v481_v12 = vrot.slane %v459_v5, %v7308_v45  ;;  %v1478_v61 = vrot.slane %v1464_v49, %v7308_v45  ;;  %7039 = vmatpush3.msra.mxu1 %v6277_v42  ;;  %v7553_v42 = vld [vmem:[#allocation2 + $0x40] sm:$0x7f] }
  0x52   :  { %v488_v63 = vrot.slane %v460_v52, %v7308_v45  ;;  %v1501_v16 = vrot.slane %v1479_v54, %v7308_v45  ;;  %v1519_v24 = vrot.slane %v7508_v48, %v7308_v45  ;;  %v840_v55 = vcombine.high %v7434_v9, %v7434_v9  ;;  %7040 = vmatprep.subr.mxu1 %v6292_v51  ;;  %v6241_v49 = vld [vmem:[#allocation4 + $0x238] sm:$0xff] }
  0x53   :  { %v2521_v0 = vcombine.low %v2513_v39, %v2520_v59  ;;  %v489_v3 = vcombine.low %v467_v53, %v474_v60  ;;  %v1480_v6 = vcombine.high %v1478_v61, %v1478_v61  ;;  %v1494_v7 = vrot.slane %v1478_v61, %v7308_v45  ;;  %6990 = vmatpush3.msra.mxu0 %v6243_v58  ;;  %v6256_v61 = vld [vmem:[#allocation4 + $0x2b0] sm:$0xff] }
  0x54   :  { %v490_v34 = vcombine.low %v481_v12, %v488_v63  ;;  %v1511_v35 = vcombine.high %v1501_v16, %v1501_v16  ;;  %v1527_v8 = vcombine.high %v1519_v24, %v1519_v24  ;;  %v7531_v11 = vrot.slane %v1519_v24, %v7308_v45  ;;  %7041 = vmatpush3.msra.mxu1 %v6276_v62 }
  0x55   :  { %6483 = vmatprep.mubr.f32.mxu1 %v2521_v0  ;;  %v497_v9 = vrot.slane %v489_v3, %v7308_v45  ;;  %v1508_v14 = vrot.slane %v1480_v6, %v7308_v45  ;;  %v1510_v15 = vcombine.high %v1494_v7, %v1494_v7  ;;  %v1801_v17 = vcombine.low %v1501_v16, %v1509_v57  ;;  %v6274_v57 = vld [vmem:[#allocation4 + $0x340] sm:$0xff] }
  0x56   :  { %v504_v19 = vrot.slane %v490_v34, %v7308_v45  ;;  %v7539_v20 = vrot.slane %v1527_v8, %v7308_v45  ;;  %v1802_v21 = vcombine.low %v1511_v35, %v1494_v7  ;;  %v854_v22 = vrot.slane %v840_v55, %v7308_v45  ;;  %6991 = vmatprep.subr.mxu0 %v6258_v27  ;;  %v6240_v7 = vld [vmem:[#allocation4 + $0x230] sm:$0xff] }
  0x57   :  { %v1803_v40 = vcombine.low %v1508_v14, %v1510_v15  ;;  %v1811_v25 = vrot.slane %v1801_v17, %v7308_v45  ;;  %v895_v26 = vrot.slane %v7533_v13, %v7308_v45  ;;  %v6832_v28 = vcombine.high %v7452_v37, %v7461_v47  ;;  %7042 = vmatprep.subr.mxu1 %v6291_v30  ;;  %v6290_v37 = vld [vmem:[#allocation4 + $0x3c0] sm:$0xff]  ;;  %v7576_v30 = vld [vmem:[#allocation2 + $0x30] sm:$0x7f]  ;;  %v6273_v15 = vld [vmem:[#allocation4 + $0x338] sm:$0xff] }
  0x58   :  { %v505_v44 = vcombine.low %v497_v9, %v504_v19  ;;  %v1804_v29 = vcombine.low %v7531_v11, %v7539_v20  ;;  %v1818_v31 = vrot.slane %v1802_v21, %v7308_v45  ;;  %v856_v32 = vcombine.high %v854_v22, %v854_v22  ;;  %6992 = vmatpush3.msra.mxu0 %v6242_v18 }
  0x59   :  { %v1825_v36 = vrot.slane %v1803_v40, %v7308_v45  ;;  %v870_v38 = vrot.slane %v854_v22, %v7308_v45  ;;  %v903_v39 = vcombine.high %v895_v26, %v895_v26  ;;  %v911_v41 = vrot.slane %v895_v26, %v7308_v45  ;;  %7043 = vmatpush3.msra.mxu1 %v6275_v23  ;;  %v6255_v22 = vld [vmem:[#allocation4 + $0x2a8] sm:$0xff] }
  0x5a   :  { %6384 = vmatmul.mubr.f32.gmra.mxu0 %v505_v44  ;;  %v1832_v47 = vrot.slane %v1804_v29, %v7308_v45  ;;  %v1833_v43 = vcombine.low %v1811_v25, %v1818_v31  ;;  %v884_v46 = vrot.slane %v856_v32, %v7308_v45  ;;  %v1188_v5 = vrot.slane %v6832_v28, %v7308_v45  ;;  %v6288_v28 = vld [vmem:[#allocation4 + $0x3b0] sm:$0xff] }
  0x5b   :  { %v886_v51 = vcombine.high %v870_v38, %v870_v38  ;;  %v7559_v52 = vrot.slane %v903_v39, %v7308_v45  ;;  %v933_v53 = vcombine.high %v911_v41, %v911_v41  ;;  %v2184_v54 = vcombine.high %v7455_v56, %v7455_v56  ;;  %6993 = vmatprep.subr.mxu0 %v6257_v33  ;;  %v6289_v56 = vld [vmem:[#allocation4 + $0x3b8] sm:$0xff]  ;;  %v6239_v33 = vld [vmem:[#allocation4 + $0x228] sm:$0xff] }
  0x5c   :  { %v1834_v58 = vcombine.low %v1825_v36, %v1832_v47  ;;  %v1841_v59 = vrot.slane %v1833_v43, %v7308_v45  ;;  %v1179_v60 = vcombine.low %v870_v38, %v884_v46  ;;  %v2239_v12 = vrot.slane %v7553_v42, %v7308_v45  ;;  %7044 = vmatprep.subr.mxu1 %v6290_v37 }
  0x5d   :  { %v1180_v62 = vcombine.low %v886_v51, %v911_v41  ;;  %v1181_v63 = vcombine.low %v7559_v52, %v933_v53  ;;  %v2198_v16 = vrot.slane %v2184_v54, %v7308_v45  ;;  %v6842_v24 = vcombine.high %v7473_v1, %v7483_v10  ;;  %6994 = vmatpush3.msra.mxu0 %v6241_v49  ;;  %v7595_v41 = vld [vmem:[#allocation2 + $0x32] sm:$0x7f]  ;;  %v6254_v53 = vld [vmem:[#allocation4 + $0x2a0] sm:$0xff] }
  0x5e   :  { %v1848_v55 = vrot.slane %v1834_v58, %v7308_v45  ;;  %v1195_v0 = vrot.slane %v1179_v60, %v7308_v45  ;;  %v2247_v3 = vcombine.high %v2239_v12, %v2239_v12  ;;  %v2255_v6 = vrot.slane %v2239_v12, %v7308_v45  ;;  %7045 = vmatpush3.msra.mxu1 %v6274_v57  ;;  %v6287_v60 = vld [vmem:[#allocation4 + $0x3a8] sm:$0xff] }
  0x5f   :  { %v1202_v27 = vrot.slane %v1180_v62, %v7308_v45  ;;  %v1209_v34 = vrot.slane %v1181_v63, %v7308_v45  ;;  %v2200_v35 = vcombine.high %v2198_v16, %v2198_v16  ;;  %v2214_v8 = vrot.slane %v2198_v16, %v7308_v45  ;;  %6995 = vmatprep.subr.mxu0 %v6256_v61  ;;  %v6238_v16 = vld [vmem:[#allocation4 + $0x220] sm:$0xff] }
  0x60   :  { %v1849_v1 = vcombine.low %v1841_v59, %v1848_v55  ;;  %v1210_v10 = vcombine.low %v1188_v5, %v1195_v0  ;;  %v7579_v9 = vrot.slane %v2247_v3, %v7308_v45  ;;  %v2277_v14 = vcombine.high %v2255_v6, %v2255_v6  ;;  %7046 = vmatprep.subr.mxu1 %v6289_v56  ;;  %v6271_v0 = vld [vmem:[#allocation4 + $0x328] sm:$0xff] }
  0x61   :  { %v1211_v17 = vcombine.low %v1202_v27, %v1209_v34  ;;  %v2228_v18 = vrot.slane %v2200_v35, %v7308_v45  ;;  %v2230_v19 = vcombine.high %v2214_v8, %v2214_v8  ;;  %v2532_v21 = vrot.slane %v6842_v24, %v7308_v45  ;;  %6996 = vmatpush3.msra.mxu0 %v6240_v7 }
  0x62   :  { %6484 = vmatmul.mubr.f32.gmra.mxu1 %v1849_v1  ;;  %v1218_v23 = vrot.slane %v1210_v10, %v7308_v45  ;;  %v2525_v40 = vcombine.low %v7579_v9, %v2277_v14  ;;  %v168_v25 = vcombine.high %v7475_v4, %v7475_v4  ;;  %v223_v26 = vrot.slane %v7576_v30, %v7308_v45  ;;  %v6253_v1 = vld [vmem:[#allocation4 + $0x298] sm:$0xff] }
  0x63   :  { %v1225_v44 = vrot.slane %v1211_v17, %v7308_v45  ;;  %v2523_v29 = vcombine.low %v2214_v8, %v2228_v18  ;;  %v2524_v31 = vcombine.low %v2230_v19, %v2255_v6  ;;  %v6827_v32 = vcombine.high %v7500_v50, %v7506_v2  ;;  %7047 = vmatpush3.msra.mxu1 %v6273_v15  ;;  %v6272_v50 = vld [vmem:[#allocation4 + $0x330] sm:$0xff]  ;;  %v7623_v8 = vld [vmem:[#allocation2 + $0x41] sm:$0x7f]  ;;  %v6286_v18 = vld [vmem:[#allocation4 + $0x3a0] sm:$0xff] }
  0x64   :  { %v2553_v36 = vrot.slane %v2525_v40, %v7308_v45  ;;  %v182_v38 = vrot.slane %v168_v25, %v7308_v45  ;;  %v231_v39 = vcombine.high %v223_v26, %v223_v26  ;;  %v239_v4 = vrot.slane %v223_v26, %v7308_v45  ;;  %6997 = vmatprep.subr.mxu0 %v6255_v22  ;;  %v6237_v40 = vld [vmem:[#allocation4 + $0x218] sm:$0xff] }
  0x65   :  { %v1226_v37 = vcombine.low %v1218_v23, %v1225_v44  ;;  %v2539_v47 = vrot.slane %v2523_v29, %v7308_v45  ;;  %v2546_v43 = vrot.slane %v2524_v31, %v7308_v45  ;;  %v7600_v46 = vrot.slane %v6827_v32, %v7308_v45  ;;  %7048 = vmatprep.subr.mxu1 %v6288_v28  ;;  %v6270_v29 = vld [vmem:[#allocation4 + $0x320] sm:$0xff] }
  0x66   :  { %v184_v2 = vcombine.high %v182_v38, %v182_v38  ;;  %v198_v5 = vrot.slane %v182_v38, %v7308_v45  ;;  %v7604_v49 = vrot.slane %v231_v39, %v7308_v45  ;;  %v261_v51 = vcombine.high %v239_v4, %v239_v4  ;;  %6998 = vmatpush3.msra.mxu0 %v6239_v33 }
  0x67   :  { %6388 = vmatprep.mubr.f32.mxu0 %v1226_v37  ;;  %v2554_v54 = vcombine.low %v2532_v21, %v2539_v47  ;;  %v2555_v57 = vcombine.low %v2546_v43, %v2553_v36  ;;  %v1512_v58 = vcombine.high %v7508_v48, %v7508_v48  ;;  %v1567_v59 = vrot.slane %v7595_v41, %v7308_v45  ;;  %v6285_v37 = vld [vmem:[#allocation4 + $0x398] sm:$0xff] }
  0x68   :  { %v212_v12 = vrot.slane %v184_v2, %v7308_v45  ;;  %v214_v61 = vcombine.high %v198_v5, %v198_v5  ;;  %v509_v62 = vcombine.low %v7604_v49, %v261_v51  ;;  %v6837_v63 = vcombine.high %v7531_v11, %v7539_v20  ;;  %7049 = vmatpush3.msra.mxu1 %v6272_v50 }
  0x69   :  { %v2562_v24 = vrot.slane %v2554_v54, %v7308_v45  ;;  %v2569_v56 = vrot.slane %v2555_v57, %v7308_v45  ;;  %v1526_v48 = vrot.slane %v1512_v58, %v7308_v45  ;;  %v1575_v55 = vcombine.high %v1567_v59, %v1567_v59  ;;  %6999 = vmatprep.subr.mxu0 %v6254_v53  ;;  %v6236_v53 = vld [vmem:[#allocation4 + $0x210] sm:$0xff] }
  0x6a   :  { %v507_v3 = vcombine.low %v198_v5, %v212_v12  ;;  %v508_v6 = vcombine.low %v214_v61, %v239_v4  ;;  %v537_v7 = vrot.slane %v509_v62, %v7308_v45  ;;  %v1583_v27 = vrot.slane %v1567_v59, %v7308_v45  ;;  %7050 = vmatprep.subr.mxu1 %v6287_v60  ;;  %v6269_v60 = vld [vmem:[#allocation4 + $0x318] sm:$0xff] }
  0x6b   :  { %v2570_v34 = vcombine.low %v2562_v24, %v2569_v56  ;;  %v1528_v11 = vcombine.high %v1526_v48, %v1526_v48  ;;  %v1542_v20 = vrot.slane %v1526_v48, %v7308_v45  ;;  %v7621_v35 = vrot.slane %v1575_v55, %v7308_v45  ;;  %7000 = vmatpush3.msra.mxu0 %v6238_v16  ;;  %v6251_v16 = vld [vmem:[#allocation4 + $0x288] sm:$0xff] }
  0x6c   :  { %v523_v10 = vrot.slane %v507_v3, %v7308_v45  ;;  %v530_v14 = vrot.slane %v508_v6, %v7308_v45  ;;  %v1605_v15 = vcombine.high %v1583_v27, %v1583_v27  ;;  %v1860_v17 = vrot.slane %v6837_v63, %v7308_v45  ;;  %7051 = vmatpush3.msra.mxu1 %v6271_v0  ;;  %v7652_v55 = vld [vmem:[#allocation2 + $0x50] sm:$0x7f]  ;;  %v6284_v3 = vld [vmem:[#allocation4 + $0x390] sm:$0xff] }
  0x6d   :  { %6488 = vmatprep.mubr.f32.mxu1 %v2570_v34  ;;  %v1556_v19 = vrot.slane %v1528_v11, %v7308_v45  ;;  %v1558_v21 = vcombine.high %v1542_v20, %v1542_v20  ;;  %v888_v22 = vcombine.high %v7533_v13, %v7533_v13  ;;  %v935_v23 = vcombine.high %v7559_v52, %v7559_v52  ;;  %v6252_v52 = vld [vmem:[#allocation4 + $0x290] sm:$0xff]  ;;  %v7659_v11 = vld [vmem:[#allocation2 + $0x40] sm:$0x7f] }
  0x6e   :  { %v538_v25 = vcombine.low %v7600_v46, %v523_v10  ;;  %v539_v26 = vcombine.low %v530_v14, %v537_v7  ;;  %v1853_v28 = vcombine.low %v7621_v35, %v1605_v15  ;;  %v943_v44 = vrot.slane %v7623_v8, %v7308_v45  ;;  %7001 = vmatprep.subr.mxu0 %v6253_v1  ;;  %v6235_v15 = vld [vmem:[#allocation4 + $0x208] sm:$0xff] }
  0x6f   :  { %v1851_v31 = vcombine.low %v1542_v20, %v1556_v19  ;;  %v1852_v32 = vcombine.low %v1558_v21, %v1583_v27  ;;  %v902_v33 = vrot.slane %v888_v22, %v7308_v45  ;;  %v2232_v13 = vcombine.high %v7553_v42, %v7553_v42  ;;  %7052 = vmatprep.subr.mxu1 %v6286_v18  ;;  %v6268_v22 = vld [vmem:[#allocation4 + $0x310] sm:$0xff] }
  0x70   :  { %v546_v36 = vrot.slane %v538_v25, %v7308_v45  ;;  %v553_v38 = vrot.slane %v539_v26, %v7308_v45  ;;  %v1881_v39 = vrot.slane %v1853_v28, %v7308_v45  ;;  %v951_v4 = vcombine.high %v943_v44, %v943_v44  ;;  %7002 = vmatpush3.msra.mxu0 %v6237_v40  ;;  %v6250_v26 = vld [vmem:[#allocation4 + $0x280] sm:$0xff] }
  0x71   :  { %v1867_v47 = vrot.slane %v1851_v31, %v7308_v45  ;;  %v1874_v43 = vrot.slane %v1852_v32, %v7308_v45  ;;  %v904_v46 = vcombine.high %v902_v33, %v902_v33  ;;  %v918_v50 = vrot.slane %v902_v33, %v7308_v45  ;;  %7053 = vmatpush3.msra.mxu1 %v6270_v29  ;;  %v6283_v31 = vld [vmem:[#allocation4 + $0x388] sm:$0xff] }
  0x72   :  { %v554_v42 = vcombine.low %v546_v36, %v553_v38  ;;  %v959_v2 = vrot.slane %v943_v44, %v7308_v45  ;;  %v973_v5 = vrot.slane %v951_v4, %v7308_v45  ;;  %v2246_v51 = vrot.slane %v2232_v13, %v7308_v45  ;;  %7003 = vmatprep.subr.mxu0 %v6252_v52  ;;  %v6234_v52 = vld [vmem:[#allocation4 + $0x200] sm:$0xff] }
  0x73   :  { %v1882_v54 = vcombine.low %v1860_v17, %v1867_v47  ;;  %v1883_v57 = vcombine.low %v1874_v43, %v1881_v39  ;;  %v932_v58 = vrot.slane %v904_v46, %v7308_v45  ;;  %v934_v59 = vcombine.high %v918_v50, %v918_v50  ;;  %7054 = vmatprep.subr.mxu1 %v6285_v37 }
  0x74   :  { %6389 = vmatmul.mubr.f32.gmra.mxu0 %v554_v42  ;;  %v1227_v12 = vcombine.low %v935_v23, %v918_v50  ;;  %v1229_v61 = vcombine.low %v959_v2, %v973_v5  ;;  %v6833_v62 = vcombine.high %v959_v2, %v973_v5  ;;  %v2248_v63 = vcombine.high %v2246_v51, %v2246_v51  ;;  %v6267_v50 = vld [vmem:[#allocation4 + $0x308] sm:$0xff] }
  0x75   :  { %v1890_v24 = vrot.slane %v1882_v54, %v7308_v45  ;;  %v1897_v56 = vrot.slane %v1883_v57, %v7308_v45  ;;  %v1228_v48 = vcombine.low %v932_v58, %v934_v59  ;;  %v2262_v0 = vrot.slane %v2246_v51, %v7308_v45  ;;  %7004 = vmatpush3.msra.mxu0 %v6236_v53  ;;  %v6282_v53 = vld [vmem:[#allocation4 + $0x380] sm:$0xff] }
  0x76   :  { %v1237_v6 = vrot.slane %v1227_v12, %v7308_v45  ;;  %v1251_v7 = vrot.slane %v1229_v61, %v7308_v45  ;;  %v1258_v27 = vrot.slane %v6833_v62, %v7308_v45  ;;  %v2276_v34 = vrot.slane %v2248_v63, %v7308_v45  ;;  %7055 = vmatpush3.msra.mxu1 %v6269_v60  ;;  %v7688_v61 = vld [vmem:[#allocation2 + $0x42] sm:$0x7f] }
  0x77   :  { %v1898_v20 = vcombine.low %v1890_v24, %v1897_v56  ;;  %v1244_v1 = vrot.slane %v1228_v48, %v7308_v45  ;;  %v2278_v10 = vcombine.high %v2262_v0, %v2262_v0  ;;  %v2279_v14 = vcombine.high %v7579_v9, %v7579_v9  ;;  %7005 = vmatprep.subr.mxu0 %v6251_v16  ;;  %v6266_v63 = vld [vmem:[#allocation4 + $0x300] sm:$0xff] }
  0x78   :  { %v1260_v17 = vcombine.low %v1251_v7, %v1258_v27  ;;  %v2287_v18 = vrot.slane %v7652_v55, %v7308_v45  ;;  %v216_v19 = vcombine.high %v7576_v30, %v7576_v30  ;;  %v263_v21 = vcombine.high %v7604_v49, %v7604_v49  ;;  %7056 = vmatprep.subr.mxu1 %v6284_v3  ;;  %v735_v27 = vld [vmem:[#allocation2 + $0x51] sm:$0x7f] }
  0x79   :  { %6489 = vmatmul.mubr.f32.gmra.mxu1 %v1898_v20  ;;  %v1259_v23 = vcombine.low %v1237_v6, %v1244_v1  ;;  %v2571_v40 = vcombine.low %v2279_v14, %v2262_v0  ;;  %v2572_v25 = vcombine.low %v2276_v34, %v2278_v10  ;;  %v271_v9 = vrot.slane %v7659_v11, %v7308_v45  ;;  %v7698_v34 = vld [vmem:[#allocation2] sm:$0xff] }
  0x7a   :  { %v1274_v28 = vrot.slane %v1260_v17, %v7308_v45  ;;  %v2295_v44 = vcombine.high %v2287_v18, %v2287_v18  ;;  %v2303_v29 = vrot.slane %v2287_v18, %v7308_v45  ;;  %v230_v30 = vrot.slane %v216_v19, %v7308_v45  ;;  %7006 = vmatpush3.msra.mxu0 %v6235_v15 }
  0x7b   :  { %v1267_v49 = vrot.slane %v1259_v23, %v7308_v45  ;;  %v2581_v32 = vrot.slane %v2571_v40, %v7308_v45  ;;  %v2588_v33 = vrot.slane %v2572_v25, %v7308_v45  ;;  %v279_v13 = vcombine.high %v271_v9, %v271_v9  ;;  %7057 = vmatpush3.msra.mxu1 %v6268_v22 }
  0x7c   :  { %v2317_v36 = vrot.slane %v2295_v44, %v7308_v45  ;;  %v232_v38 = vcombine.high %v230_v30, %v230_v30  ;;  %v246_v39 = vrot.slane %v230_v30, %v7308_v45  ;;  %v287_v4 = vrot.slane %v271_v9, %v7308_v45  ;;  %7007 = vmatprep.subr.mxu0 %v6250_v26 }
  0x7d   :  { %v1275_v37 = vcombine.low %v1267_v49, %v1274_v28  ;;  %v2603_v47 = vcombine.low %v2581_v32, %v2588_v33  ;;  %v301_v43 = vrot.slane %v279_v13, %v7308_v45  ;;  %v1560_v46 = vcombine.high %v7595_v41, %v7595_v41  ;;  %7058 = vmatprep.subr.mxu1 %v6283_v31 }
  0x7e   :  { %v2573_v42 = vcombine.low %v2303_v29, %v2317_v36  ;;  %v6843_v2 = vcombine.high %v2303_v29, %v2317_v36  ;;  %v260_v5 = vrot.slane %v232_v38, %v7308_v45  ;;  %v262_v51 = vcombine.high %v246_v39, %v246_v39  ;;  %7008 = vmatpush3.msra.mxu0 %v6234_v52 }
  0x7f   :  { %6393 = vmatprep.mubr.f32.mxu0 %v1275_v37  ;;  %v2611_v54 = vrot.slane %v2603_v47, %v7308_v45  ;;  %v555_v57 = vcombine.low %v263_v21, %v246_v39  ;;  %v557_v58 = vcombine.low %v287_v4, %v301_v43  ;;  %v6828_v59 = vcombine.high %v287_v4, %v301_v43 }
  0x80   :  { %v2595_v60 = vrot.slane %v2573_v42, %v7308_v45  ;;  %v2602_v12 = vrot.slane %v6843_v2, %v7308_v45  ;;  %v556_v41 = vcombine.low %v260_v5, %v262_v51  ;;  %v1574_v62 = vrot.slane %v1560_v46, %v7308_v45  ;;  %7059 = vmatpush3.msra.mxu1 %v6267_v50  ;;  %v2079_v42 = vld [vmem:[#allocation2 + $0x60] sm:$0x7f] }
  0x81   :  { %v565_v16 = vrot.slane %v555_v57, %v7308_v45  ;;  %v579_v24 = vrot.slane %v557_v58, %v7308_v45  ;;  %v586_v56 = vrot.slane %v6828_v59, %v7308_v45  ;;  %v1607_v48 = vcombine.high %v7621_v35, %v7621_v35  ;;  %7060 = vmatprep.subr.mxu1 %v6282_v53 }
  0x82   :  { %v2604_v0 = vcombine.low %v2595_v60, %v2602_v12  ;;  %v572_v3 = vrot.slane %v556_v41, %v7308_v45  ;;  %v1576_v6 = vcombine.high %v1574_v62, %v1574_v62  ;;  %v1590_v7 = vrot.slane %v1574_v62, %v7308_v45  ;;  %7106 = vmatprep.subr.mxu0 %v7698_v34 }
  0x83   :  { %v588_v20 = vcombine.low %v579_v24, %v586_v56  ;;  %v1615_v1 = vrot.slane %v7688_v61, %v7308_v45  ;;  %v936_v10 = vcombine.high %v7623_v8, %v7623_v8  ;;  %v984_v35 = vcombine.high %v735_v27, %v735_v27  ;;  %7061 = vmatpush3.msra.mxu1 %v6266_v63 }
  0x84   :  { %v2618_v14 = vrot.slane %v2604_v0, %v7308_v45  ;;  %v587_v15 = vcombine.low %v565_v16, %v572_v3  ;;  %v1604_v17 = vrot.slane %v1576_v6, %v7308_v45  ;;  %v1606_v18 = vcombine.high %v1590_v7, %v1590_v7  ;;  %7159 = vmatprep.subr.mxu1 %v7698_v34 }
  0x85   :  { %v602_v19 = vrot.slane %v588_v20, %v7308_v45  ;;  %v1623_v21 = vcombine.high %v1615_v1, %v1615_v1  ;;  %v1631_v22 = vrot.slane %v1615_v1, %v7308_v45  ;;  %v1899_v23 = vcombine.low %v1607_v48, %v1590_v7  ;;  %v63_v1 = vld [vmem:[#allocation2 + $0x50] sm:$0x7f] }
  0x86   :  { %v2619_v40 = vcombine.low %v2611_v54, %v2618_v14  ;;  %v595_v25 = vrot.slane %v587_v15, %v7308_v45  ;;  %v1900_v8 = vcombine.low %v1604_v17, %v1606_v18  ;;  %v950_v9 = vrot.slane %v936_v10, %v7308_v45 }
  0x87   :  { %v1645_v26 = vrot.slane %v1623_v21, %v7308_v45  ;;  %v1909_v28 = vrot.slane %v1899_v23, %v7308_v45  ;;  %v991_v44 = vrot.slane %v735_v27, %v7308_v45  ;;  %v7716_v29 = vrot.slane %v984_v35, %v7308_v45 }
  0x88   :  { %6493 = vmatprep.mubr.f32.mxu1 %v2619_v40  ;;  %v603_v30 = vcombine.low %v595_v25, %v602_v19  ;;  %v1916_v31 = vrot.slane %v1900_v8, %v7308_v45  ;;  %v952_v49 = vcombine.high %v950_v9, %v950_v9  ;;  %v966_v32 = vrot.slane %v950_v9, %v7308_v45 }
  0x89   :  { %v1901_v33 = vcombine.low %v1631_v22, %v1645_v26  ;;  %v6838_v13 = vcombine.high %v1631_v22, %v1645_v26  ;;  %v999_v52 = vcombine.high %v991_v44, %v991_v44  ;;  %v1007_v36 = vrot.slane %v991_v44, %v7308_v45 }
  0x8a   :  { %6394 = vmatmul.mubr.f32.gmra.mxu0 %v603_v30  ;;  %v1931_v38 = vcombine.low %v1909_v28, %v1916_v31  ;;  %v980_v39 = vrot.slane %v952_v49, %v7308_v45  ;;  %v982_v4 = vcombine.high %v966_v32, %v966_v32  ;;  %v7724_v37 = vrot.slane %v7716_v29, %v7308_v45 }
  0x8b   :  { %v1923_v47 = vrot.slane %v1901_v33, %v7308_v45  ;;  %v1930_v43 = vrot.slane %v6838_v13, %v7308_v45  ;;  %v1021_v46 = vrot.slane %v999_v52, %v7308_v45  ;;  %v1029_v50 = vcombine.high %v1007_v36, %v1007_v36 }
  0x8c   :  { %v1939_v2 = vrot.slane %v1931_v38, %v7308_v45  ;;  %v1276_v5 = vcombine.low %v966_v32, %v980_v39  ;;  %v1277_v51 = vcombine.low %v982_v4, %v1007_v36  ;;  %v2280_v53 = vcombine.high %v7652_v55, %v7652_v55 }
  0x8d   :  { %v1932_v54 = vcombine.low %v1923_v47, %v1930_v43  ;;  %v1031_v57 = vcombine.high %v1021_v46, %v1021_v46  ;;  %v1278_v58 = vcombine.low %v1021_v46, %v1029_v50  ;;  %v2328_v59 = vcombine.high %v2079_v42, %v2079_v42  ;;  %v1407_v46 = vld [vmem:[#allocation2 + $0x52] sm:$0x7f] }
  0x8e   :  { %v1286_v60 = vrot.slane %v1276_v5, %v7308_v45  ;;  %v1293_v12 = vrot.slane %v1277_v51, %v7308_v45  ;;  %v2294_v41 = vrot.slane %v2280_v53, %v7308_v45  ;;  %v2335_v62 = vrot.slane %v2079_v42, %v7308_v45 }
  0x8f   :  { %v1946_v63 = vrot.slane %v1932_v54, %v7308_v45  ;;  %v1279_v16 = vcombine.low %v1031_v57, %v7724_v37  ;;  %v1300_v24 = vrot.slane %v1278_v58, %v7308_v45  ;;  %v7740_v55 = vrot.slane %v2328_v59, %v7308_v45 }
  0x90   :  { %v1308_v56 = vcombine.low %v1286_v60, %v1293_v12  ;;  %v2296_v48 = vcombine.high %v2294_v41, %v2294_v41  ;;  %v2310_v0 = vrot.slane %v2294_v41, %v7308_v45  ;;  %v2343_v3 = vcombine.high %v2335_v62, %v2335_v62 }
  0x91   :  { %v1947_v6 = vcombine.low %v1939_v2, %v1946_v63  ;;  %v1307_v7 = vrot.slane %v1279_v16, %v7308_v45  ;;  %v2351_v27 = vrot.slane %v2335_v62, %v7308_v45  ;;  %v7747_v20 = vrot.slane %v7740_v55, %v7308_v45 }
  0x92   :  { %v1316_v10 = vrot.slane %v1308_v56, %v7308_v45  ;;  %v2324_v35 = vrot.slane %v2296_v48, %v7308_v45  ;;  %v2326_v14 = vcombine.high %v2310_v0, %v2310_v0  ;;  %v2365_v15 = vrot.slane %v2343_v3, %v7308_v45 }
  0x93   :  { %6494 = vmatmul.mubr.f32.gmra.mxu1 %v1947_v6  ;;  %v1309_v17 = vcombine.low %v1300_v24, %v1307_v7  ;;  %v2373_v18 = vcombine.high %v2351_v27, %v2351_v27  ;;  %v264_v19 = vcombine.high %v7659_v11, %v7659_v11  ;;  %v312_v21 = vcombine.high %v63_v1, %v63_v1 }
  0x94   :  { %v2375_v22 = vcombine.high %v2365_v15, %v2365_v15  ;;  %v2620_v23 = vcombine.low %v2310_v0, %v2324_v35  ;;  %v2621_v40 = vcombine.low %v2326_v14, %v2351_v27  ;;  %v319_v25 = vrot.slane %v63_v1, %v7308_v45  ;;  %v736_v14 = vld [vmem:[#allocation2 + $0x61] sm:$0x7f] }
  0x95   :  { %v1323_v8 = vrot.slane %v1309_v17, %v7308_v45  ;;  %v2622_v9 = vcombine.low %v2365_v15, %v2373_v18  ;;  %v278_v26 = vrot.slane %v264_v19, %v7308_v45  ;;  %v7758_v28 = vrot.slane %v312_v21, %v7308_v45 }
  0x96   :  { %v2623_v44 = vcombine.low %v2375_v22, %v7747_v20  ;;  %v2630_v30 = vrot.slane %v2620_v23, %v7308_v45  ;;  %v2637_v11 = vrot.slane %v2621_v40, %v7308_v45  ;;  %v327_v31 = vcombine.high %v319_v25, %v319_v25 }
  0x97   :  { %v1324_v49 = vcombine.low %v1316_v10, %v1323_v8  ;;  %v2644_v32 = vrot.slane %v2622_v9, %v7308_v45  ;;  %v280_v33 = vcombine.high %v278_v26, %v278_v26  ;;  %v294_v13 = vrot.slane %v278_v26, %v7308_v45 }
  0x98   :  { %v2651_v52 = vrot.slane %v2623_v44, %v7308_v45  ;;  %v2652_v36 = vcombine.low %v2630_v30, %v2637_v11  ;;  %v335_v38 = vrot.slane %v319_v25, %v7308_v45  ;;  %v7769_v39 = vrot.slane %v7758_v28, %v7308_v45 }
  0x99   :  { %6398 = vmatprep.mubr.f32.mxu0 %v1324_v49  ;;  %v308_v4 = vrot.slane %v280_v33, %v7308_v45  ;;  %v310_v47 = vcombine.high %v294_v13, %v294_v13  ;;  %v349_v43 = vrot.slane %v327_v31, %v7308_v45  ;;  %v1608_v50 = vcombine.high %v7688_v61, %v7688_v61 }
  0x9a   :  { %v2653_v42 = vcombine.low %v2644_v32, %v2651_v52  ;;  %v2660_v2 = vrot.slane %v2652_v36, %v7308_v45  ;;  %v357_v5 = vcombine.high %v335_v38, %v335_v38  ;;  %v1656_v51 = vcombine.high %v1407_v46, %v1407_v46 }
  0x9b   :  { %v359_v53 = vcombine.high %v349_v43, %v349_v43  ;;  %v604_v54 = vcombine.low %v294_v13, %v308_v4  ;;  %v605_v57 = vcombine.low %v310_v47, %v335_v38  ;;  %v1622_v58 = vrot.slane %v1608_v50, %v7308_v45  ;;  %v2080_v4 = vld [vmem:[#allocation2 + $0x70] sm:$0x7f] }
  0x9c   :  { %v2667_v59 = vrot.slane %v2653_v42, %v7308_v45  ;;  %v606_v60 = vcombine.low %v349_v43, %v357_v5  ;;  %v1663_v12 = vrot.slane %v1407_v46, %v7308_v45  ;;  %v7780_v41 = vrot.slane %v1656_v51, %v7308_v45 }
  0x9d   :  { %v607_v61 = vcombine.low %v359_v53, %v7769_v39  ;;  %v614_v62 = vrot.slane %v604_v54, %v7308_v45  ;;  %v621_v63 = vrot.slane %v605_v57, %v7308_v45  ;;  %v1624_v16 = vcombine.high %v1622_v58, %v1622_v58 }
  0x9e   :  { %v2668_v24 = vcombine.low %v2660_v2, %v2667_v59  ;;  %v628_v56 = vrot.slane %v606_v60, %v7308_v45  ;;  %v1638_v48 = vrot.slane %v1622_v58, %v7308_v45  ;;  %v1671_v0 = vcombine.high %v1663_v12, %v1663_v12 }
  0x9f   :  { %v635_v3 = vrot.slane %v607_v61, %v7308_v45  ;;  %v636_v6 = vcombine.low %v614_v62, %v621_v63  ;;  %v1652_v7 = vrot.slane %v1624_v16, %v7308_v45  ;;  %v1679_v27 = vrot.slane %v1663_v12, %v7308_v45  ;;  %v64_v16 = vld [vmem:[#allocation2 + $0x60] sm:$0x7f] }
  0xa0   :  { %6498 = vmatprep.mubr.f32.mxu1 %v2668_v24  ;;  %v1654_v1 = vcombine.high %v1638_v48, %v1638_v48  ;;  %v7792_v10 = vrot.slane %v7780_v41, %v7308_v45  ;;  %v1693_v35 = vrot.slane %v1671_v0, %v7308_v45  ;;  %v1000_v15 = vcombine.high %v7716_v29, %v7716_v29 }
  0xa1   :  { %v637_v17 = vcombine.low %v628_v56, %v635_v3  ;;  %v644_v18 = vrot.slane %v636_v6, %v7308_v45  ;;  %v1701_v19 = vcombine.high %v1679_v27, %v1679_v27  ;;  %v1948_v21 = vcombine.low %v1638_v48, %v1652_v7 }
  0xa2   :  { %v1703_v22 = vcombine.high %v1693_v35, %v1693_v35  ;;  %v1949_v23 = vcombine.low %v1654_v1, %v1679_v27  ;;  %v1028_v40 = vrot.slane %v1000_v15, %v7308_v45  ;;  %v1030_v25 = vcombine.high %v7724_v37, %v7724_v37 }
  0xa3   :  { %v651_v8 = vrot.slane %v637_v17, %v7308_v45  ;;  %v1950_v9 = vcombine.low %v1693_v35, %v1701_v19  ;;  %v1958_v26 = vrot.slane %v1948_v21, %v7308_v45  ;;  %v1032_v44 = vcombine.high %v736_v14, %v736_v14 }
  0xa4   :  { %v1951_v29 = vcombine.low %v1703_v22, %v7792_v10  ;;  %v1965_v30 = vrot.slane %v1949_v23, %v7308_v45  ;;  %v1039_v11 = vrot.slane %v736_v14, %v7308_v45  ;;  %v1325_v31 = vcombine.low %v1028_v40, %v1030_v25 }
  0xa5   :  { %v652_v49 = vcombine.low %v644_v18, %v651_v8  ;;  %v1972_v32 = vrot.slane %v1950_v9, %v7308_v45  ;;  %v1046_v33 = vrot.slane %v1032_v44, %v7308_v45  ;;  %v2344_v37 = vcombine.high %v7740_v55, %v7740_v55 }
  0xa6   :  { %v1979_v13 = vrot.slane %v1951_v29, %v7308_v45  ;;  %v1980_v52 = vcombine.low %v1958_v26, %v1965_v30  ;;  %v1047_v36 = vcombine.high %v1039_v11, %v1039_v11  ;;  %v1055_v38 = vrot.slane %v1039_v11, %v7308_v45  ;;  %v1408_v11 = vld [vmem:[#allocation2 + $0x62] sm:$0x7f] }
  0xa7   :  { %6399 = vmatmul.mubr.f32.gmra.mxu0 %v652_v49  ;;  %v1048_v47 = vcombine.high %v1046_v33, %v1046_v33  ;;  %v7813_v43 = vrot.slane %v1046_v33, %v7308_v45  ;;  %v1335_v46 = vrot.slane %v1325_v31, %v7308_v45  ;;  %v2372_v50 = vrot.slane %v2344_v37, %v7308_v45 }
  0xa8   :  { %v1981_v42 = vcombine.low %v1972_v32, %v1979_v13  ;;  %v1988_v2 = vrot.slane %v1980_v52, %v7308_v45  ;;  %v1069_v55 = vrot.slane %v1047_v36, %v7308_v45  ;;  %v2374_v5 = vcombine.high %v7747_v20, %v7747_v20 }
  0xa9   :  { %v1076_v51 = vrot.slane %v1048_v47, %v7308_v45  ;;  %v2376_v53 = vcombine.high %v2080_v4, %v2080_v4  ;;  %v2383_v54 = vrot.slane %v2080_v4, %v7308_v45  ;;  %v328_v57 = vcombine.high %v7758_v28, %v7758_v28 }
  0xaa   :  { %v1995_v58 = vrot.slane %v1981_v42, %v7308_v45  ;;  %v1326_v59 = vcombine.low %v1055_v38, %v1069_v55  ;;  %v6834_v60 = vcombine.high %v1055_v38, %v1069_v55  ;;  %v2669_v12 = vcombine.low %v2372_v50, %v2374_v5 }
  0xab   :  { %v1328_v61 = vcombine.low %v7813_v43, %v1076_v51  ;;  %v2390_v62 = vrot.slane %v2376_v53, %v7308_v45  ;;  %v2391_v63 = vcombine.high %v2383_v54, %v2383_v54  ;;  %v2399_v20 = vrot.slane %v2383_v54, %v7308_v45 }
  0xac   :  { %v1996_v24 = vcombine.low %v1988_v2, %v1995_v58  ;;  %v1342_v56 = vrot.slane %v1326_v59, %v7308_v45  ;;  %v1349_v48 = vrot.slane %v6834_v60, %v7308_v45  ;;  %v2679_v28 = vrot.slane %v2669_v12, %v7308_v45 }
  0xad   :  { %v1356_v0 = vrot.slane %v1328_v61, %v7308_v45  ;;  %v2392_v3 = vcombine.high %v2390_v62, %v2390_v62  ;;  %v7834_v6 = vrot.slane %v2390_v62, %v7308_v45  ;;  %v2413_v7 = vrot.slane %v2391_v63, %v7308_v45 }
  0xae   :  { %6499 = vmatmul.mubr.f32.gmra.mxu1 %v1996_v24  ;;  %v1357_v27 = vcombine.low %v1335_v46, %v1342_v56  ;;  %v356_v1 = vrot.slane %v328_v57, %v7308_v45  ;;  %v358_v35 = vcombine.high %v7769_v39, %v7769_v39  ;;  %v360_v14 = vcombine.high %v64_v16, %v64_v16 }
  0xaf   :  { %v1358_v15 = vcombine.low %v1349_v48, %v1356_v0  ;;  %v2420_v17 = vrot.slane %v2392_v3, %v7308_v45  ;;  %v2670_v18 = vcombine.low %v2399_v20, %v2413_v7  ;;  %v6844_v19 = vcombine.high %v2399_v20, %v2413_v7  ;;  %v3418_v0 = vld [vmem:[#allocation2 + $0x12] sm:$0x7f] }
  0xb0   :  { %v1365_v21 = vrot.slane %v1357_v27, %v7308_v45  ;;  %v367_v22 = vrot.slane %v64_v16, %v7308_v45  ;;  %v374_v23 = vrot.slane %v360_v14, %v7308_v45  ;;  %v653_v40 = vcombine.low %v356_v1, %v358_v35  ;;  %v7878_v35 = vld [vmem:[#allocation2 + $0x22] sm:$0x7f] }
  0xb1   :  { %v1372_v25 = vrot.slane %v1358_v15, %v7308_v45  ;;  %v2672_v8 = vcombine.low %v7834_v6, %v2420_v17  ;;  %v2686_v9 = vrot.slane %v2670_v18, %v7308_v45  ;;  %v2693_v39 = vrot.slane %v6844_v19, %v7308_v45  ;;  %v2746_v18 = vld [vmem:[#allocation2 + $0x11] sm:$0x7f] }
  0xb2   :  { %v375_v26 = vcombine.high %v367_v22, %v367_v22  ;;  %v376_v44 = vcombine.high %v374_v23, %v374_v23  ;;  %v383_v29 = vrot.slane %v367_v22, %v7308_v45  ;;  %v390_v30 = vrot.slane %v374_v23, %v7308_v45 }
  0xb3   :  { %v1373_v31 = vcombine.low %v1365_v21, %v1372_v25  ;;  %v2700_v49 = vrot.slane %v2672_v8, %v7308_v45  ;;  %v2701_v32 = vcombine.low %v2679_v28, %v2686_v9  ;;  %v663_v33 = vrot.slane %v653_v40, %v7308_v45 }
  0xb4   :  { %v397_v37 = vrot.slane %v375_v26, %v7308_v45  ;;  %v404_v13 = vrot.slane %v376_v44, %v7308_v45  ;;  %v1672_v52 = vcombine.high %v7780_v41, %v7780_v41  ;;  %v1702_v36 = vcombine.high %v7792_v10, %v7792_v10 }
  0xb5   :  { %6403 = vmatprep.mubr.f32.mxu0 %v1373_v31  ;;  %v2702_v38 = vcombine.low %v2693_v39, %v2700_v49  ;;  %v2709_v4 = vrot.slane %v2701_v32, %v7308_v45  ;;  %v1704_v47 = vcombine.high %v1408_v11, %v1408_v11  ;;  %v1711_v46 = vrot.slane %v1408_v11, %v7308_v45 }
  0xb6   :  { %v654_v50 = vcombine.low %v383_v29, %v397_v37  ;;  %v6829_v42 = vcombine.high %v383_v29, %v397_v37  ;;  %v656_v2 = vcombine.low %v390_v30, %v404_v13  ;;  %v1700_v55 = vrot.slane %v1672_v52, %v7308_v45 }
  0xb7   :  { %v2716_v5 = vrot.slane %v2702_v38, %v7308_v45  ;;  %v1718_v51 = vrot.slane %v1704_v47, %v7308_v45  ;;  %v1719_v41 = vcombine.high %v1711_v46, %v1711_v46  ;;  %v1727_v53 = vrot.slane %v1711_v46, %v7308_v45  ;;  %v7905_v46 = vld [vmem:[#allocation2 + $0x21] sm:$0x7f] }
  0xb8   :  { %v670_v10 = vrot.slane %v654_v50, %v7308_v45  ;;  %v677_v54 = vrot.slane %v6829_v42, %v7308_v45  ;;  %v684_v57 = vrot.slane %v656_v2, %v7308_v45  ;;  %v1997_v58 = vcombine.low %v1700_v55, %v1702_v36 }
  0xb9   :  { %v2717_v59 = vcombine.low %v2709_v4, %v2716_v5  ;;  %v1720_v60 = vcombine.high %v1718_v51, %v1718_v51  ;;  %v1734_v12 = vrot.slane %v1718_v51, %v7308_v45  ;;  %v1741_v61 = vrot.slane %v1719_v41, %v7308_v45 }
  0xba   :  { %v685_v62 = vcombine.low %v663_v33, %v670_v10  ;;  %v686_v63 = vcombine.low %v677_v54, %v684_v57  ;;  %v2007_v20 = vrot.slane %v1997_v58, %v7308_v45  ;;  %v1078_v16 = vcombine.high %v7813_v43, %v7813_v43 }
  0xbb   :  { %6503 = vmatprep.mubr.f32.mxu1 %v2717_v59  ;;  %v1748_v24 = vrot.slane %v1720_v60, %v7308_v45  ;;  %v1998_v56 = vcombine.low %v1727_v53, %v1741_v61  ;;  %v6839_v48 = vcombine.high %v1727_v53, %v1741_v61  ;;  %v2422_v28 = vcombine.high %v7834_v6, %v7834_v6 }
  0xbc   :  { %v693_v3 = vrot.slane %v685_v62, %v7308_v45  ;;  %v700_v7 = vrot.slane %v686_v63, %v7308_v45  ;;  %v1380_v27 = vrot.slane %v1078_v16, %v7308_v45  ;;  %v406_v1 = vcombine.high %v390_v30, %v390_v30  ;;  %v4763_v63 = vld [vmem:[#allocation2 + $0x21] sm:$0x7f] }
  0xbd   :  { %v2000_v14 = vcombine.low %v1734_v12, %v1748_v24  ;;  %v2014_v43 = vrot.slane %v1998_v56, %v7308_v45  ;;  %v2021_v15 = vrot.slane %v6839_v48, %v7308_v45  ;;  %v2724_v17 = vrot.slane %v2422_v28, %v7308_v45  ;;  %v7919_v56 = vld [vmem:[#allocation2 + $0x31] sm:$0x7f] }
  0xbe   :  { %v701_v19 = vcombine.low %v693_v3, %v700_v7  ;;  %6835 = vst.sshfl [vmem:[#allocation3 + $0x1b8] sm:$0x1 pattern:$0x73625140] %v1380_v27  ;;  %v708_v6 = vrot.slane %v406_v1, %v7308_v45  ;;  %v1750_v21 = vcombine.high %v1734_v12, %v1734_v12  ;;  %v3432_v22 = vcombine.high %v3418_v0, %v3418_v0 }
  0xbf   :  { %v2028_v23 = vrot.slane %v2000_v14, %v7308_v45  ;;  %v2029_v40 = vcombine.low %v2007_v20, %v2014_v43  ;;  %6845 = vst.sshfl [vmem:[#allocation3 + $0x1c8] sm:$0x1 pattern:$0x73625140] %v2724_v17  ;;  %v3439_v25 = vrot.slane %v3418_v0, %v7308_v45  ;;  %v7888_v8 = vrot.slane %v7878_v35, %v7308_v45 }
  0xc0   :  { %6404 = vmatmul.mubr.f32.gmra.mxu0 %v701_v19  ;;  %6830 = vst.sshfl [vmem:[#allocation3 + $0x1b0] sm:$0x1 pattern:$0x73625140] %v708_v6  ;;  %v2052_v9 = vrot.slane %v1750_v21, %v7308_v45  ;;  %v3446_v39 = vrot.slane %v3432_v22, %v7308_v45  ;;  %v2760_v26 = vcombine.high %v2746_v18, %v2746_v18 }
  0xc1   :  { %v2767_v44 = vrot.slane %v2746_v18, %v7308_v45  ;;  %v2030_v29 = vcombine.low %v2021_v15, %v2028_v23  ;;  %v2037_v30 = vrot.slane %v2029_v40, %v7308_v45  ;;  %v3447_v11 = vcombine.high %v3439_v25, %v3439_v25  ;;  %v4091_v15 = vld [vmem:[#allocation2 + $0x20] sm:$0x7f] }
  0xc2   :  { %v3455_v31 = vrot.slane %v3439_v25, %v7308_v45  ;;  %6840 = vst.sshfl [vmem:[#allocation3 + $0x1c0] sm:$0x1 pattern:$0x73625140] %v2052_v9  ;;  %v3448_v49 = vcombine.high %v3446_v39, %v3446_v39  ;;  %v3462_v32 = vrot.slane %v3446_v39, %v7308_v45  ;;  %v7898_v33 = vrot.slane %v7888_v8, %v7308_v45 }
  0xc3   :  { %v2774_v37 = vrot.slane %v2760_v26, %v7308_v45  ;;  %v2044_v13 = vrot.slane %v2030_v29, %v7308_v45  ;;  %v3469_v52 = vrot.slane %v3447_v11, %v7308_v45  ;;  %v2775_v36 = vcombine.high %v2767_v44, %v2767_v44  ;;  %v7943_v26 = vld [vmem:[#allocation2 + $0x30] sm:$0x7f] }
  0xc4   :  { %v2783_v38 = vrot.slane %v2767_v44, %v7308_v45  ;;  %v3476_v4 = vrot.slane %v3448_v49, %v7308_v45  ;;  %v3478_v47 = vcombine.high %v3462_v32, %v3462_v32  ;;  %v7915_v61 = vrot.slane %v7905_v46, %v7308_v45 }
  0xc5   :  { %v2776_v50 = vcombine.high %v2774_v37, %v2774_v37  ;;  %v2790_v42 = vrot.slane %v2774_v37, %v7308_v45  ;;  %v2045_v2 = vcombine.low %v2037_v30, %v2044_v13  ;;  %v6162_v55 = vld [vmem:[#allocation3 + $0x1b8] sm:$0x1]  ;;  %v3768_v5 = vcombine.low %v3455_v31, %v3469_v52 }
  0xc6   :  { %v6851_v51 = vcombine.high %v3455_v31, %v3469_v52  ;;  %v2797_v41 = vrot.slane %v2775_v36, %v7308_v45  ;;  %6408 = vmatprep.mubr.f32.mxu0 %v6162_v55  ;;  %v6164_v53 = vld [vmem:[#allocation3 + $0x1c8] sm:$0x1]  ;;  %v3770_v10 = vcombine.low %v3462_v32, %v3476_v4  ;;  %v3771_v54 = vcombine.low %v3478_v47, %v7898_v33 }
  0xc7   :  { %v2804_v57 = vrot.slane %v2776_v50, %v7308_v45  ;;  %v2806_v58 = vcombine.high %v2790_v42, %v2790_v42  ;;  %6504 = vmatmul.mubr.f32.gmra.mxu1 %v2045_v2  ;;  %v6161_v59 = vld [vmem:[#allocation3 + $0x1b0] sm:$0x1]  ;;  %v3778_v60 = vrot.slane %v3768_v5, %v7308_v45  ;;  %v7923_v0 = vrot.slane %v7915_v61, %v7308_v45 }
  0xc8   :  { %v3785_v12 = vrot.slane %v6851_v51, %v7308_v45  ;;  %v3096_v62 = vcombine.low %v2783_v38, %v2797_v41  ;;  %6508 = vmatprep.mubr.f32.mxu1 %v6164_v53  ;;  %6409 = vmatmul.mubr.f32.gmra.mxu0 %v6161_v59  ;;  %v3792_v20 = vrot.slane %v3770_v10, %v7308_v45 }
  0xc9   :  { %v3799_v16 = vrot.slane %v3771_v54, %v7308_v45  ;;  %v6846_v24 = vcombine.high %v2783_v38, %v2797_v41  ;;  %v6163_v48 = vld [vmem:[#allocation3 + $0x1c0] sm:$0x1]  ;;  %v3098_v3 = vcombine.low %v2790_v42, %v2804_v57  ;;  %v4777_v14 = vcombine.high %v4763_v63, %v4763_v63  ;;  %v7962_v57 = vld [vmem:[#allocation4 + $0x478] sm:$0xff] }
  0xca   :  { %v3800_v28 = vcombine.low %v3778_v60, %v3785_v12  ;;  %v3106_v7 = vrot.slane %v3096_v62, %v7308_v45  ;;  %v4784_v43 = vrot.slane %v4763_v63, %v7308_v45  ;;  %v3099_v18 = vcombine.low %v2806_v58, %v7923_v0 }
  0xcb   :  { %v3801_v27 = vcombine.low %v3792_v20, %v3799_v16  ;;  %v3113_v1 = vrot.slane %v6846_v24, %v7308_v45  ;;  %6509 = vmatmul.mubr.f32.gmra.mxu1 %v6163_v48  ;;  %v3120_v19 = vrot.slane %v3098_v3, %v7308_v45  ;;  %v7933_v6 = vrot.slane %v7919_v56, %v7308_v45  ;;  %v7974_v24 = vld [vmem:[#allocation4 + $0x470] sm:$0xff] }
  0xcc   :  { %v3808_v17 = vrot.slane %v3800_v28, %v7308_v45  ;;  %v4791_v23 = vrot.slane %v4777_v14, %v7308_v45  ;;  %v4792_v40 = vcombine.high %v4784_v43, %v4784_v43  ;;  %v3127_v25 = vrot.slane %v3099_v18, %v7308_v45  ;;  %v7980_v14 = vld [vmem:[#allocation2 + $0x32] sm:$0x7f] }
  0xcd   :  { %v3815_v21 = vrot.slane %v3801_v27, %v7308_v45  ;;  %v3128_v22 = vcombine.low %v3106_v7, %v3113_v1  ;;  %v4800_v9 = vrot.slane %v4784_v43, %v7308_v45  ;;  %v7941_v39 = vrot.slane %v7933_v6, %v7308_v45 }
  0xce   :  { %v4105_v44 = vcombine.high %v4091_v15, %v4091_v15  ;;  %v4793_v11 = vcombine.high %v4791_v23, %v4791_v23  ;;  %v4807_v31 = vrot.slane %v4791_v23, %v7308_v45  ;;  %v3129_v49 = vcombine.low %v3120_v19, %v3127_v25 }
  0xcf   :  { %v3816_v29 = vcombine.low %v3808_v17, %v3815_v21  ;;  %v3136_v30 = vrot.slane %v3128_v22, %v7308_v45  ;;  %v4814_v32 = vrot.slane %v4792_v40, %v7308_v45  ;;  %v4112_v37 = vrot.slane %v4091_v15, %v7308_v45  ;;  %v7984_v17 = vld [vmem:[#allocation4 + $0x468] sm:$0xff] }
  0xd0   :  { %v4119_v13 = vrot.slane %v4105_v44, %v7308_v45  ;;  %v4821_v52 = vrot.slane %v4793_v11, %v7308_v45  ;;  %v4823_v36 = vcombine.high %v4807_v31, %v4807_v31  ;;  %v7953_v38 = vrot.slane %v7943_v26, %v7308_v45  ;;  %v8001_v11 = vld [vmem:[#allocation4 + $0x460] sm:$0xff] }
  0xd1   :  { %6578 = vmatprep.mubr.f32.mxu0 %v3816_v29  ;;  %v3480_v4 = vcombine.high %v7878_v35, %v7878_v35  ;;  %v3143_v47 = vrot.slane %v3129_v49, %v7308_v45  ;;  %v5113_v50 = vcombine.low %v4800_v9, %v4814_v32  ;;  %v6861_v42 = vcombine.high %v4800_v9, %v4814_v32 }
  0xd2   :  { %v4120_v2 = vcombine.high %v4112_v37, %v4112_v37  ;;  %v5115_v55 = vcombine.low %v4807_v31, %v4821_v52  ;;  %v5116_v5 = vcombine.low %v4823_v36, %v7941_v39  ;;  %v4121_v51 = vcombine.high %v4119_v13, %v4119_v13 }
  0xd3   :  { %v4128_v41 = vrot.slane %v4112_v37, %v7308_v45  ;;  %v3144_v53 = vcombine.low %v3136_v30, %v3143_v47  ;;  %v5123_v10 = vrot.slane %v5113_v50, %v7308_v45  ;;  %v5130_v54 = vrot.slane %v6861_v42, %v7308_v45 }
  0xd4   :  { %v4135_v35 = vrot.slane %v4119_v13, %v7308_v45  ;;  %v5137_v58 = vrot.slane %v5115_v55, %v7308_v45  ;;  %v5144_v59 = vrot.slane %v5116_v5, %v7308_v45  ;;  %v4142_v60 = vrot.slane %v4120_v2, %v7308_v45  ;;  %v8013_v2 = vld [vmem:[#allocation2 + $0x31] sm:$0x7f] }
  0xd5   :  { %v4149_v12 = vrot.slane %v4121_v51, %v7308_v45  ;;  %6579 = vmatmul.mubr.f32.vlgmr.msra.gmra.mxu0 %v3144_v53  ;;  %v5145_v62 = vcombine.low %v5123_v10, %v5130_v54  ;;  %v7971_v20 = vrot.slane %v7953_v38, %v7308_v45  ;;  %v3494_v16 = vrot.slane %v3480_v4, %v7308_v45  ;;  %v8010_v4 = vld [vmem:[#allocation4 + $0x458] sm:$0xff] }
  0xd6   :  { %v4151_v63 = vcombine.high %v4135_v35, %v4135_v35  ;;  %v5146_v48 = vcombine.low %v5137_v58, %v5144_v59  ;;  %7107 = vmatpush3.msra.mxu0 %v7962_v57  ;;  %v4441_v28 = vcombine.low %v4128_v41, %v4142_v60  ;;  %v6856_v3 = vcombine.high %v4128_v41, %v4142_v60 }
  0xd7   :  { %v4443_v7 = vcombine.low %v4135_v35, %v4149_v12  ;;  %v5153_v27 = vrot.slane %v5145_v62, %v7308_v45  ;;  %7108 = vmatprep.subr.mxu0 %v7698_v34  ;;  %v3495_v43 = vcombine.high %v7888_v8, %v7888_v8  ;;  %v3496_v15 = vcombine.high %v3494_v16, %v3494_v16 }
  0xd8   :  { %v4444_v1 = vcombine.low %v4151_v63, %v7971_v20  ;;  %v5160_v18 = vrot.slane %v5146_v48, %v7308_v45  ;;  %v4451_v19 = vrot.slane %v4441_v28, %v7308_v45  ;;  %v4458_v21 = vrot.slane %v6856_v3, %v7308_v45  ;;  %7109 = vmatpush3.msra.mxu0 %v7974_v24 }
  0xd9   :  { %v4465_v22 = vrot.slane %v4443_v7, %v7308_v45  ;;  %v3510_v40 = vrot.slane %v3494_v16, %v7308_v45  ;;  %v3517_v25 = vrot.slane %v3495_v43, %v7308_v45  ;;  %v3524_v8 = vrot.slane %v3496_v15, %v7308_v45  ;;  %7110 = vmatprep.subr.mxu0 %v7698_v34 }
  0xda   :  { %v4472_v23 = vrot.slane %v4444_v1, %v7308_v45  ;;  %v5161_v9 = vcombine.low %v5153_v27, %v5160_v18  ;;  %v4473_v44 = vcombine.low %v4451_v19, %v4458_v21  ;;  %v3525_v29 = vcombine.high %v7898_v33, %v7898_v33  ;;  %7111 = vmatpush3.msra.mxu0 %v7984_v17  ;;  %v8054_v19 = vld [vmem:[#allocation2 + $0x41] sm:$0x7f] }
  0xdb   :  { %v3535_v30 = vrot.slane %v7980_v14, %v7308_v45  ;;  %v3526_v49 = vcombine.high %v3510_v40, %v3510_v40  ;;  %v3527_v32 = vcombine.high %v3517_v25, %v3517_v25  ;;  %v2808_v37 = vcombine.high %v7905_v46, %v7905_v46  ;;  %7112 = vmatprep.subr.mxu0 %v7698_v34 }
  0xdc   :  { %v4474_v31 = vcombine.low %v4465_v22, %v4472_v23  ;;  %6678 = vmatprep.mubr.f32.mxu1 %v5161_v9  ;;  %v4481_v13 = vrot.slane %v4473_v44, %v7308_v45  ;;  %v3817_v36 = vcombine.low %v3517_v25, %v3525_v29  ;;  %7113 = vmatpush3.msra.mxu0 %v8001_v11 }
  0xdd   :  { %v3543_v52 = vcombine.high %v3535_v30, %v3535_v30  ;;  %v8008_v33 = vrot.slane %v3535_v30, %v7308_v45  ;;  %v3818_v50 = vcombine.low %v3527_v32, %v3510_v40  ;;  %v3819_v42 = vcombine.low %v3524_v8, %v3526_v49  ;;  %7114 = vmatprep.subr.mxu0 %v7698_v34 }
  0xde   :  { %v4488_v47 = vrot.slane %v4474_v31, %v7308_v45  ;;  %v2822_v46 = vrot.slane %v2808_v37, %v7308_v45  ;;  %v3827_v5 = vrot.slane %v3817_v36, %v7308_v45  ;;  %v2823_v51 = vcombine.high %v7915_v61, %v7915_v61  ;;  %7115 = vmatpush3.msra.mxu0 %v8010_v4 }
  0xdf   :  { %v8018_v55 = vrot.slane %v3543_v52, %v7308_v45  ;;  %v2853_v41 = vcombine.high %v7923_v0, %v7923_v0  ;;  %v3834_v10 = vrot.slane %v3818_v50, %v7308_v45  ;;  %v3841_v54 = vrot.slane %v3819_v42, %v7308_v45  ;;  %7116 = vmatprep.subr.mxu0 %v7698_v34 }
  0xe0   :  { %v4489_v53 = vcombine.low %v4481_v13, %v4488_v47  ;;  %v2824_v35 = vcombine.high %v2822_v46, %v2822_v46  ;;  %v2838_v59 = vrot.slane %v2822_v46, %v7308_v45  ;;  %v2845_v61 = vrot.slane %v2823_v51, %v7308_v45 }
  0xe1   :  { %v3820_v58 = vcombine.low %v8008_v33, %v8018_v55  ;;  %v2863_v0 = vrot.slane %v8013_v2, %v7308_v45  ;;  %v3849_v60 = vcombine.low %v3827_v5, %v3834_v10  ;;  %v4825_v62 = vcombine.high %v7919_v56, %v7919_v56  ;;  %v8080_v5 = vld [vmem:[#allocation2 + $0x40] sm:$0x7f] }
  0xe2   :  { %6679 = vmatmul.mubr.f32.vlgmr.msra.gmra.mxu1 %v4489_v53  ;;  %v2852_v12 = vrot.slane %v2824_v35, %v7308_v45  ;;  %v4840_v63 = vcombine.high %v7933_v6, %v7933_v6  ;;  %v2854_v48 = vcombine.high %v2838_v59, %v2838_v59  ;;  %v2855_v28 = vcombine.high %v2845_v61, %v2845_v61 }
  0xe3   :  { %v3848_v16 = vrot.slane %v3820_v58, %v7308_v45  ;;  %7175 = vmatpush3.msra.mxu1 %v7962_v57  ;;  %v2871_v3 = vcombine.high %v2863_v0, %v2863_v0  ;;  %v3857_v7 = vrot.slane %v3849_v60, %v7308_v45  ;;  %v8045_v27 = vrot.slane %v2863_v0, %v7308_v45 }
  0xe4   :  { %v3145_v1 = vcombine.low %v2845_v61, %v2853_v41  ;;  %7160 = vmatprep.subr.mxu1 %v7698_v34  ;;  %v4839_v56 = vrot.slane %v4825_v62, %v7308_v45  ;;  %v3146_v15 = vcombine.low %v2855_v28, %v2838_v59  ;;  %v3147_v18 = vcombine.low %v2852_v12, %v2854_v48  ;;  %v8104_v12 = vld [vmem:[#allocation2 + $0x42] sm:$0x7f]  ;;  %v6307_v62 = vld [vmem:[#allocation4 + $0x448] sm:$0xff] }
  0xe5   :  { %v3850_v43 = vcombine.low %v3841_v54, %v3848_v16  ;;  %v8050_v6 = vrot.slane %v2871_v3, %v7308_v45  ;;  %7176 = vmatpush3.msra.mxu1 %v7974_v24  ;;  %v4862_v23 = vrot.slane %v4840_v63, %v7308_v45  ;;  %v4870_v44 = vcombine.high %v7941_v39, %v7941_v39  ;;  %v6308_v39 = vld [vmem:[#allocation4 + $0x450] sm:$0xff] }
  0xe6   :  { %v3155_v57 = vrot.slane %v3145_v1, %v7308_v45  ;;  %v4841_v21 = vcombine.high %v4839_v56, %v4839_v56  ;;  %v4855_v22 = vrot.slane %v4839_v56, %v7308_v45  ;;  %7161 = vmatprep.subr.mxu1 %v7698_v34  ;;  %v3162_v8 = vrot.slane %v3146_v15, %v7308_v45 }
  0xe7   :  { %v3864_v40 = vrot.slane %v3850_v43, %v7308_v45  ;;  %v3148_v25 = vcombine.low %v8045_v27, %v8050_v6  ;;  %v3169_v24 = vrot.slane %v3147_v18, %v7308_v45  ;;  %7177 = vmatpush3.msra.mxu1 %v7984_v17  ;;  %v4872_v30 = vcombine.high %v4862_v23, %v4862_v23 }
  0xe8   :  { %v4869_v9 = vrot.slane %v4841_v21, %v7308_v45  ;;  %v4871_v29 = vcombine.high %v4855_v22, %v4855_v22  ;;  %7162 = vmatprep.subr.mxu1 %v7698_v34  ;;  %v3177_v32 = vcombine.low %v3155_v57, %v3162_v8  ;;  %v4880_v37 = vrot.slane %v8054_v19, %v7308_v45 }
  0xe9   :  { %v3865_v31 = vcombine.low %v3857_v7, %v3864_v40  ;;  %v3176_v49 = vrot.slane %v3148_v25, %v7308_v45  ;;  %7178 = vmatpush3.msra.mxu1 %v8001_v11  ;;  %v5162_v13 = vcombine.low %v4862_v23, %v4870_v44  ;;  %v5163_v17 = vcombine.low %v4872_v30, %v4855_v22  ;;  %v6306_v40 = vld [vmem:[#allocation4 + $0x440] sm:$0xff] }
  0xea   :  { %v5164_v52 = vcombine.low %v4869_v9, %v4871_v29  ;;  %v4153_v36 = vcombine.high %v7943_v26, %v7943_v26  ;;  %7163 = vmatprep.subr.mxu1 %v7698_v34  ;;  %v3185_v50 = vrot.slane %v3177_v32, %v7308_v45  ;;  %v4888_v42 = vcombine.high %v4880_v37, %v4880_v37 }
  0xeb   :  { %6583 = vmatprep.mubr.f32.mxu0 %v3865_v31  ;;  %v3178_v47 = vcombine.low %v3169_v24, %v3176_v49  ;;  %v8078_v46 = vrot.slane %v4880_v37, %v7308_v45  ;;  %v5172_v11 = vrot.slane %v5162_v13, %v7308_v45  ;;  %v5179_v51 = vrot.slane %v5163_v17, %v7308_v45  ;;  %v8136_v37 = vld [vmem:[#allocation2 + $0x41] sm:$0x7f] }
  0xec   :  { %v5186_v41 = vrot.slane %v5164_v52, %v7308_v45  ;;  %v4167_v26 = vrot.slane %v4153_v36, %v7308_v45  ;;  %7179 = vmatpush3.msra.mxu1 %v8010_v4  ;;  %v8089_v53 = vrot.slane %v4888_v42, %v7308_v45  ;;  %v4168_v10 = vcombine.high %v7953_v38, %v7953_v38  ;;  %v8098_v4 = vld [vmem:[#allocation2] sm:$0xff] }
  0xed   :  { %v3192_v34 = vrot.slane %v3178_v47, %v7308_v45  ;;  %v4198_v54 = vcombine.high %v7971_v20, %v7971_v20  ;;  %7117 = vmatpush3.msra.mxu0 %v6308_v39  ;;  %v5194_v35 = vcombine.low %v5172_v11, %v5179_v51  ;;  %v4208_v61 = vrot.slane %v8080_v5, %v7308_v45  ;;  %v6305_v11 = vld [vmem:[#allocation4 + $0x438] sm:$0xff] }
  0xee   :  { %v4169_v58 = vcombine.high %v4167_v26, %v4167_v26  ;;  %v4183_v59 = vrot.slane %v4167_v26, %v7308_v45  ;;  %7164 = vmatprep.subr.mxu1 %v8098_v4  ;;  %v5165_v60 = vcombine.low %v8078_v46, %v8089_v53  ;;  %v4190_v38 = vrot.slane %v4168_v10, %v7308_v45 }
  0xef   :  { %v3193_v0 = vcombine.low %v3185_v50, %v3192_v34  ;;  %v3528_v20 = vcombine.high %v7980_v14, %v7980_v14  ;;  %7118 = vmatprep.subr.mxu0 %v8098_v4  ;;  %v5202_v63 = vrot.slane %v5194_v35, %v7308_v45  ;;  %v4216_v28 = vcombine.high %v4208_v61, %v4208_v61 }
  0xf0   :  { %v4197_v16 = vrot.slane %v4169_v58, %v7308_v45  ;;  %v4199_v48 = vcombine.high %v4183_v59, %v4183_v59  ;;  %7180 = vmatpush3.msra.mxu1 %v6308_v39  ;;  %v5193_v3 = vrot.slane %v5165_v60, %v7308_v45  ;;  %v4200_v7 = vcombine.high %v4190_v38, %v4190_v38  ;;  %v8158_v60 = vld [vmem:[#allocation2 + $0x51] sm:$0x7f] }
  0xf1   :  { %6584 = vmatmul.mubr.f32.gmra.mxu0 %v3193_v0  ;;  %v8113_v1 = vrot.slane %v4208_v61, %v7308_v45  ;;  %v4490_v56 = vcombine.low %v4190_v38, %v4198_v54  ;;  %v8116_v14 = vrot.slane %v4216_v28, %v7308_v45  ;;  %v3542_v15 = vrot.slane %v3528_v20, %v7308_v45  ;;  %v6304_v28 = vld [vmem:[#allocation4 + $0x430] sm:$0xff] }
  0xf2   :  { %v4492_v43 = vcombine.low %v4197_v16, %v4199_v48  ;;  %v3583_v18 = vrot.slane %v8104_v12, %v7308_v45  ;;  %7119 = vmatpush3.msra.mxu0 %v6307_v62  ;;  %v5195_v57 = vcombine.low %v5186_v41, %v5193_v3  ;;  %v4491_v21 = vcombine.low %v4200_v7, %v4183_v59 }
  0xf3   :  { %v4500_v22 = vrot.slane %v4490_v56, %v7308_v45  ;;  %v6852_v23 = vcombine.high %v8008_v33, %v8018_v55  ;;  %7165 = vmatprep.subr.mxu1 %v8098_v4  ;;  %v4493_v25 = vcombine.low %v8113_v1, %v8116_v14  ;;  %v3544_v24 = vcombine.high %v3542_v15, %v3542_v15 }
  0xf4   :  { %v4514_v8 = vrot.slane %v4492_v43, %v7308_v45  ;;  %v3558_v9 = vrot.slane %v3542_v15, %v7308_v45  ;;  %7120 = vmatprep.subr.mxu0 %v8098_v4  ;;  %v5209_v44 = vrot.slane %v5195_v57, %v7308_v45  ;;  %v4507_v29 = vrot.slane %v4491_v21, %v7308_v45 }
  0xf5   :  { %v3591_v30 = vcombine.high %v3583_v18, %v3583_v18  ;;  %v3599_v33 = vrot.slane %v3583_v18, %v7308_v45  ;;  %7181 = vmatpush3.msra.mxu1 %v6307_v62  ;;  %v4521_v55 = vrot.slane %v4493_v25, %v7308_v45  ;;  %v3572_v31 = vrot.slane %v3544_v24, %v7308_v45 }
  0xf6   :  { %v3574_v49 = vcombine.high %v3558_v9, %v3558_v9  ;;  %v3876_v32 = vrot.slane %v6852_v23, %v7308_v45  ;;  %7121 = vmatpush3.msra.mxu0 %v6306_v40  ;;  %v5210_v13 = vcombine.low %v5202_v63, %v5209_v44  ;;  %v4522_v17 = vcombine.low %v4500_v22, %v4507_v29  ;;  %v8180_v44 = vld [vmem:[#allocation2 + $0x50] sm:$0x7f] }
  0xf7   :  { %v8139_v52 = vrot.slane %v3591_v30, %v7308_v45  ;;  %v3621_v36 = vcombine.high %v3599_v33, %v3599_v33  ;;  %7166 = vmatprep.subr.mxu1 %v8098_v4  ;;  %v4523_v39 = vcombine.low %v4514_v8, %v4521_v55  ;;  %v3867_v47 = vcombine.low %v3558_v9, %v3572_v31 }
  0xf8   :  { %v3868_v50 = vcombine.low %v3574_v49, %v3599_v33  ;;  %v2856_v42 = vcombine.high %v8013_v2, %v8013_v2  ;;  %7122 = vmatprep.subr.mxu0 %v8098_v4  ;;  %6683 = vmatprep.mubr.f32.mxu1 %v5210_v13  ;;  %v4530_v51 = vrot.slane %v4522_v17, %v7308_v45  ;;  %v6303_v33 = vld [vmem:[#allocation4 + $0x428] sm:$0xff] }
  0xf9   :  { %v3869_v41 = vcombine.low %v8139_v52, %v3621_v36  ;;  %v2911_v26 = vrot.slane %v8136_v37, %v7308_v45  ;;  %v6847_v34 = vcombine.high %v8045_v27, %v8050_v6  ;;  %v4537_v10 = vrot.slane %v4523_v39, %v7308_v45  ;;  %7182 = vmatpush3.msra.mxu1 %v6306_v40 }
  0xfa   :  { %v3883_v54 = vrot.slane %v3867_v47, %v7308_v45  ;;  %v3890_v2 = vrot.slane %v3868_v50, %v7308_v45  ;;  %v2870_v35 = vrot.slane %v2856_v42, %v7308_v45  ;;  %7123 = vmatpush3.msra.mxu0 %v6305_v11  ;;  %7167 = vmatprep.subr.mxu1 %v8098_v4 }
  0xfb   :  { %v3897_v58 = vrot.slane %v3869_v41, %v7308_v45  ;;  %v2919_v59 = vcombine.high %v2911_v26, %v2911_v26  ;;  %v2927_v61 = vrot.slane %v2911_v26, %v7308_v45  ;;  %v3204_v0 = vrot.slane %v6847_v34, %v7308_v45  ;;  %7124 = vmatprep.subr.mxu0 %v8098_v4  ;;  %v6302_v34 = vld [vmem:[#allocation4 + $0x420] sm:$0xff] }
  0xfc   :  { %v4538_v27 = vcombine.low %v4530_v51, %v4537_v10  ;;  %v3898_v6 = vcombine.low %v3876_v32, %v3883_v54  ;;  %v2872_v38 = vcombine.high %v2870_v35, %v2870_v35  ;;  %v2886_v20 = vrot.slane %v2870_v35, %v7308_v45  ;;  %7183 = vmatpush3.msra.mxu1 %v6305_v11 }
  0xfd   :  { %v3899_v62 = vcombine.low %v3890_v2, %v3897_v58  ;;  %v8163_v63 = vrot.slane %v2919_v59, %v7308_v45  ;;  %v2949_v16 = vcombine.high %v2927_v61, %v2927_v61  ;;  %v4873_v48 = vcombine.high %v8054_v19, %v8054_v19  ;;  %7125 = vmatpush3.msra.mxu0 %v6304_v28  ;;  %v8206_v58 = vld [vmem:[#allocation2 + $0x52] sm:$0x7f] }
  0xfe   :  { %6684 = vmatmul.mubr.f32.gmra.mxu1 %v4538_v27  ;;  %v3906_v3 = vrot.slane %v3898_v6, %v7308_v45  ;;  %v2900_v7 = vrot.slane %v2872_v38, %v7308_v45  ;;  %v2902_v56 = vcombine.high %v2886_v20, %v2886_v20  ;;  %v4928_v43 = vrot.slane %v8158_v60, %v7308_v45 }
  0xff   :  { %v3913_v15 = vrot.slane %v3899_v62, %v7308_v45  ;;  %v3197_v18 = vcombine.low %v8163_v63, %v2949_v16  ;;  %v4887_v57 = vrot.slane %v4873_v48, %v7308_v45  ;;  %v6862_v19 = vcombine.high %v8078_v46, %v8089_v53  ;;  %7168 = vmatprep.subr.mxu1 %v8098_v4 }
 0x100   :  { %v3195_v21 = vcombine.low %v2886_v20, %v2900_v7  ;;  %v3196_v22 = vcombine.low %v2902_v56, %v2927_v61  ;;  %v4936_v23 = vcombine.high %v4928_v43, %v4928_v43  ;;  %v4944_v40 = vrot.slane %v4928_v43, %v7308_v45  ;;  %7126 = vmatprep.subr.mxu0 %v8098_v4  ;;  %v6301_v43 = vld [vmem:[#allocation4 + $0x418] sm:$0xff] }
 0x101   :  { %v3914_v25 = vcombine.low %v3906_v3, %v3913_v15  ;;  %v3225_v8 = vrot.slane %v3197_v18, %v7308_v45  ;;  %v4889_v24 = vcombine.high %v4887_v57, %v4887_v57  ;;  %v4903_v9 = vrot.slane %v4887_v57, %v7308_v45  ;;  %7184 = vmatpush3.msra.mxu1 %v6304_v28 }
 0x102   :  { %v3211_v29 = vrot.slane %v3195_v21, %v7308_v45  ;;  %v3218_v46 = vrot.slane %v3196_v22, %v7308_v45  ;;  %v8186_v53 = vrot.slane %v4936_v23, %v7308_v45  ;;  %v4966_v30 = vcombine.high %v4944_v40, %v4944_v40  ;;  %7127 = vmatpush3.msra.mxu0 %v6303_v33 }
 0x103   :  { %6588 = vmatprep.mubr.f32.mxu0 %v3914_v25  ;;  %v4917_v55 = vrot.slane %v4889_v24, %v7308_v45  ;;  %v4919_v31 = vcombine.high %v4903_v9, %v4903_v9  ;;  %v5221_v49 = vrot.slane %v6862_v19, %v7308_v45  ;;  %v4201_v32 = vcombine.high %v8080_v5, %v8080_v5 }
 0x104   :  { %v3226_v13 = vcombine.low %v3204_v0, %v3211_v29  ;;  %v3227_v17 = vcombine.low %v3218_v46, %v3225_v8  ;;  %v5214_v36 = vcombine.low %v8186_v53, %v4966_v30  ;;  %v4256_v39 = vrot.slane %v8180_v44, %v7308_v45  ;;  %7169 = vmatprep.subr.mxu1 %v8098_v4 }
 0x105   :  { %v5212_v47 = vcombine.low %v4903_v9, %v4917_v55  ;;  %v5213_v50 = vcombine.low %v4919_v31, %v4944_v40  ;;  %v4215_v42 = vrot.slane %v4201_v32, %v7308_v45  ;;  %v6857_v11 = vcombine.high %v8113_v1, %v8116_v14  ;;  %7128 = vmatprep.subr.mxu0 %v8098_v4 }
 0x106   :  { %v3234_v51 = vrot.slane %v3226_v13, %v7308_v45  ;;  %v3241_v5 = vrot.slane %v3227_v17, %v7308_v45  ;;  %v5242_v41 = vrot.slane %v5214_v36, %v7308_v45  ;;  %v4264_v26 = vcombine.high %v4256_v39, %v4256_v39  ;;  %7185 = vmatpush3.msra.mxu1 %v6303_v33 }
 0x107   :  { %v5228_v10 = vrot.slane %v5212_v47, %v7308_v45  ;;  %v5235_v54 = vrot.slane %v5213_v50, %v7308_v45  ;;  %v4217_v2 = vcombine.high %v4215_v42, %v4215_v42  ;;  %v4231_v35 = vrot.slane %v4215_v42, %v7308_v45  ;;  %7129 = vmatpush3.msra.mxu0 %v6302_v34 }
 0x108   :  { %v3242_v1 = vcombine.low %v3234_v51, %v3241_v5  ;;  %v4272_v14 = vrot.slane %v4256_v39, %v7308_v45  ;;  %v8211_v59 = vrot.slane %v4264_v26, %v7308_v45  ;;  %v4549_v61 = vrot.slane %v6857_v11, %v7308_v45  ;;  %7170 = vmatprep.subr.mxu1 %v8098_v4 }
 0x109   :  { %v5243_v0 = vcombine.low %v5221_v49, %v5228_v10  ;;  %v5244_v27 = vcombine.low %v5235_v54, %v5242_v41  ;;  %v4245_v6 = vrot.slane %v4217_v2, %v7308_v45  ;;  %v4247_v38 = vcombine.high %v4231_v35, %v4231_v35  ;;  %7130 = vmatprep.subr.mxu0 %v8098_v4  ;;  %v6300_v49 = vld [vmem:[#allocation4 + $0x410] sm:$0xff]  ;;  %v8252_v41 = vld [vmem:[#allocation2 + $0x61] sm:$0x7f] }
 0x10a   :  { %6589 = vmatmul.mubr.f32.gmra.mxu0 %v3242_v1  ;;  %v4294_v20 = vcombine.high %v4272_v14, %v4272_v14  ;;  %v3576_v62 = vcombine.high %v8104_v12, %v8104_v12  ;;  %v3623_v16 = vcombine.high %v8139_v52, %v8139_v52  ;;  %v3631_v48 = vrot.slane %v8206_v58, %v7308_v45  ;;  %v8227_v52 = vld [vmem:[#allocation2 + $0x51] sm:$0x7f] }
 0x10b   :  { %v5251_v28 = vrot.slane %v5243_v0, %v7308_v45  ;;  %v5258_v3 = vrot.slane %v5244_v27, %v7308_v45  ;;  %v4540_v7 = vcombine.low %v4231_v35, %v4245_v6  ;;  %v4541_v56 = vcombine.low %v4247_v38, %v4272_v14  ;;  %7186 = vmatpush3.msra.mxu1 %v6302_v34 }
 0x10c   :  { %v4542_v15 = vcombine.low %v8211_v59, %v4294_v20  ;;  %v3590_v18 = vrot.slane %v3576_v62, %v7308_v45  ;;  %v3639_v12 = vcombine.high %v3631_v48, %v3631_v48  ;;  %v3647_v57 = vrot.slane %v3631_v48, %v7308_v45  ;;  %7131 = vmatpush3.msra.mxu0 %v6301_v43 }
 0x10d   :  { %v5259_v19 = vcombine.low %v5251_v28, %v5258_v3  ;;  %v4556_v21 = vrot.slane %v4540_v7, %v7308_v45  ;;  %v4563_v22 = vrot.slane %v4541_v56, %v7308_v45  ;;  %v2904_v23 = vcombine.high %v8136_v37, %v8136_v37  ;;  %7171 = vmatprep.subr.mxu1 %v8098_v4 }
 0x10e   :  { %v4570_v40 = vrot.slane %v4542_v15, %v7308_v45  ;;  %v3592_v25 = vcombine.high %v3590_v18, %v3590_v18  ;;  %v3606_v8 = vrot.slane %v3590_v18, %v7308_v45  ;;  %v3661_v24 = vrot.slane %v3639_v12, %v7308_v45  ;;  %7132 = vmatprep.subr.mxu0 %v8098_v4 }
 0x10f   :  { %6688 = vmatprep.mubr.f32.mxu1 %v5259_v19  ;;  %v4571_v9 = vcombine.low %v4549_v61, %v4556_v21  ;;  %v2918_v29 = vrot.slane %v2904_v23, %v7308_v45  ;;  %v2951_v46 = vcombine.high %v8163_v63, %v8163_v63  ;;  %v2959_v30 = vrot.slane %v8227_v52, %v7308_v45  ;;  %v6299_v61 = vld [vmem:[#allocation4 + $0x408] sm:$0xff]  ;;  %v6298_v21 = vld [vmem:[#allocation4 + $0x400] sm:$0xff] }
 0x110   :  { %v4572_v37 = vcombine.low %v4563_v22, %v4570_v40  ;;  %v3620_v33 = vrot.slane %v3592_v25, %v7308_v45  ;;  %v3622_v55 = vcombine.high %v3606_v8, %v3606_v8  ;;  %v3915_v31 = vcombine.low %v3623_v16, %v3606_v8  ;;  %7187 = vmatpush3.msra.mxu1 %v6301_v43  ;;  %v8279_v40 = vld [vmem:[#allocation2 + $0x60] sm:$0x7f] }
 0x111   :  { %v4579_v32 = vrot.slane %v4571_v9, %v7308_v45  ;;  %v3917_v13 = vcombine.low %v3647_v57, %v3661_v24  ;;  %v6853_v17 = vcombine.high %v3647_v57, %v3661_v24  ;;  %v2920_v36 = vcombine.high %v2918_v29, %v2918_v29  ;;  %7133 = vmatpush3.msra.mxu0 %v6300_v49 }
 0x112   :  { %v4586_v63 = vrot.slane %v4572_v37, %v7308_v45  ;;  %v3916_v39 = vcombine.low %v3620_v33, %v3622_v55  ;;  %v3925_v47 = vrot.slane %v3915_v31, %v7308_v45  ;;  %v2934_v50 = vrot.slane %v2918_v29, %v7308_v45  ;;  %7172 = vmatprep.subr.mxu1 %v8098_v4 }
 0x113   :  { %v3939_v42 = vrot.slane %v3917_v13, %v7308_v45  ;;  %v3946_v11 = vrot.slane %v6853_v17, %v7308_v45  ;;  %v2948_v51 = vrot.slane %v2920_v36, %v7308_v45  ;;  %v2967_v5 = vcombine.high %v2959_v30, %v2959_v30  ;;  %7134 = vmatprep.subr.mxu0 %v8098_v4 }
 0x114   :  { %v4587_v26 = vcombine.low %v4579_v32, %v4586_v63  ;;  %v3932_v34 = vrot.slane %v3916_v39, %v7308_v45  ;;  %v2950_v10 = vcombine.high %v2934_v50, %v2934_v50  ;;  %v2975_v54 = vrot.slane %v2959_v30, %v7308_v45  ;;  %7188 = vmatpush3.msra.mxu1 %v6300_v49  ;;  %v3423_v63 = vld [vmem:[#allocation2 + $0x62] sm:$0x7f] }
 0x115   :  { %v3948_v2 = vcombine.low %v3939_v42, %v3946_v11  ;;  %v2989_v35 = vrot.slane %v2967_v5, %v7308_v45  ;;  %v3243_v1 = vcombine.low %v2951_v46, %v2934_v50  ;;  %v4921_v14 = vcombine.high %v8158_v60, %v8158_v60  ;;  %7135 = vmatpush3.msra.mxu0 %v6299_v61 }
 0x116   :  { %6689 = vmatmul.mubr.f32.gmra.mxu1 %v4587_v26  ;;  %v3947_v0 = vcombine.low %v3925_v47, %v3932_v34  ;;  %v3244_v27 = vcombine.low %v2948_v51, %v2950_v10  ;;  %v4968_v6 = vcombine.high %v8186_v53, %v8186_v53  ;;  %v4976_v38 = vrot.slane %v8252_v41, %v7308_v45 }
 0x117   :  { %v3962_v20 = vrot.slane %v3948_v2, %v7308_v45  ;;  %v3245_v62 = vcombine.low %v2975_v54, %v2989_v35  ;;  %v6848_v16 = vcombine.high %v2975_v54, %v2989_v35  ;;  %v3253_v48 = vrot.slane %v3243_v1, %v7308_v45  ;;  %7173 = vmatprep.subr.mxu1 %v8098_v4 }
 0x118   :  { %v3955_v60 = vrot.slane %v3947_v0, %v7308_v45  ;;  %v3260_v28 = vrot.slane %v3244_v27, %v7308_v45  ;;  %v4935_v3 = vrot.slane %v4921_v14, %v7308_v45  ;;  %v4984_v7 = vcombine.high %v4976_v38, %v4976_v38  ;;  %7136 = vmatprep.subr.mxu0 %v8098_v4 }
 0x119   :  { %v3267_v53 = vrot.slane %v3245_v62, %v7308_v45  ;;  %v3274_v56 = vrot.slane %v6848_v16, %v7308_v45  ;;  %v4992_v43 = vrot.slane %v4976_v38, %v7308_v45  ;;  %v4249_v15 = vcombine.high %v8180_v44, %v8180_v44  ;;  %7189 = vmatpush3.msra.mxu1 %v6299_v61 }
 0x11a   :  { %v3963_v18 = vcombine.low %v3955_v60, %v3962_v20  ;;  %v3275_v12 = vcombine.low %v3253_v48, %v3260_v28  ;;  %v4937_v57 = vcombine.high %v4935_v3, %v4935_v3  ;;  %v4951_v19 = vrot.slane %v4935_v3, %v7308_v45  ;;  %7137 = vmatpush3.msra.mxu0 %v6298_v21 }
 0x11b   :  { %v3276_v22 = vcombine.low %v3267_v53, %v3274_v56  ;;  %v5006_v23 = vrot.slane %v4984_v7, %v7308_v45  ;;  %v4263_v25 = vrot.slane %v4249_v15, %v7308_v45  ;;  %v4296_v44 = vcombine.high %v8211_v59, %v8211_v59  ;;  %7174 = vmatprep.subr.mxu1 %v8098_v4 }
 0x11c   :  { %6593 = vmatprep.mubr.f32.mxu0 %v3963_v18  ;;  %v3283_v8 = vrot.slane %v3275_v12, %v7308_v45  ;;  %v4965_v24 = vrot.slane %v4937_v57, %v7308_v45  ;;  %v4967_v9 = vcombine.high %v4951_v19, %v4951_v19  ;;  %v5260_v29 = vcombine.low %v4968_v6, %v4951_v19 }
 0x11d   :  { %v3290_v46 = vrot.slane %v3276_v22, %v7308_v45  ;;  %v5262_v30 = vcombine.low %v4992_v43, %v5006_v23  ;;  %v6863_v37 = vcombine.high %v4992_v43, %v5006_v23  ;;  %v4265_v33 = vcombine.high %v4263_v25, %v4263_v25  ;;  %7190 = vmatpush3.msra.mxu1 %v6298_v21  ;;  %v2751_v43 = vld [vmem:[#allocation2 + $0x61] sm:$0x7f] }
 0x11e   :  { %v5261_v55 = vcombine.low %v4965_v24, %v4967_v9  ;;  %v5270_v31 = vrot.slane %v5260_v29, %v7308_v45  ;;  %v4279_v49 = vrot.slane %v4263_v25, %v7308_v45  ;;  %v4304_v59 = vrot.slane %v8279_v40, %v7308_v45 }
 0x11f   :  { %v3291_v32 = vcombine.low %v3283_v8, %v3290_v46  ;;  %v5284_v13 = vrot.slane %v5262_v30, %v7308_v45  ;;  %v5291_v17 = vrot.slane %v6863_v37, %v7308_v45  ;;  %v4293_v36 = vrot.slane %v4265_v33, %v7308_v45 }
 0x120   :  { %v5277_v39 = vrot.slane %v5261_v55, %v7308_v45  ;;  %v4295_v47 = vcombine.high %v4279_v49, %v4279_v49  ;;  %v4312_v50 = vcombine.high %v4304_v59, %v4304_v59  ;;  %v4320_v42 = vrot.slane %v4304_v59, %v7308_v45 }
 0x121   :  { %6594 = vmatmul.mubr.f32.gmra.mxu0 %v3291_v32  ;;  %v5293_v11 = vcombine.low %v5284_v13, %v5291_v17  ;;  %v4588_v51 = vcombine.low %v4296_v44, %v4279_v49  ;;  %v3624_v4 = vcombine.high %v8206_v58, %v8206_v58  ;;  %v3672_v5 = vcombine.high %v3423_v63, %v3423_v63 }
 0x122   :  { %v5292_v26 = vcombine.low %v5270_v31, %v5277_v39  ;;  %v4334_v34 = vrot.slane %v4312_v50, %v7308_v45  ;;  %v4589_v10 = vcombine.low %v4293_v36, %v4295_v47  ;;  %v3679_v54 = vrot.slane %v3423_v63, %v7308_v45  ;;  %v4768_v63 = vld [vmem:[#allocation2 + $0x71] sm:$0x7f] }
 0x123   :  { %v5307_v2 = vrot.slane %v5293_v11, %v7308_v45  ;;  %v4598_v35 = vrot.slane %v4588_v51, %v7308_v45  ;;  %v3638_v1 = vrot.slane %v3624_v4, %v7308_v45  ;;  %v8305_v14 = vrot.slane %v3672_v5, %v7308_v45 }
 0x124   :  { %v5300_v61 = vrot.slane %v5292_v26, %v7308_v45  ;;  %v4590_v0 = vcombine.low %v4320_v42, %v4334_v34  ;;  %v6858_v58 = vcombine.high %v4320_v42, %v4334_v34  ;;  %v4605_v27 = vrot.slane %v4589_v10, %v7308_v45 }
 0x125   :  { %v3640_v6 = vcombine.high %v3638_v1, %v3638_v1  ;;  %v3654_v38 = vrot.slane %v3638_v1, %v7308_v45  ;;  %v3687_v20 = vcombine.high %v3679_v54, %v3679_v54  ;;  %v3695_v62 = vrot.slane %v3679_v54, %v7308_v45 }
 0x126   :  { %v5308_v16 = vcombine.low %v5300_v61, %v5307_v2  ;;  %v4612_v48 = vrot.slane %v4590_v0, %v7308_v45  ;;  %v4619_v60 = vrot.slane %v6858_v58, %v7308_v45  ;;  %v4620_v28 = vcombine.low %v4598_v35, %v4605_v27 }
 0x127   :  { %v3668_v3 = vrot.slane %v3640_v6, %v7308_v45  ;;  %v3670_v7 = vcombine.high %v3654_v38, %v3654_v38  ;;  %v8316_v53 = vrot.slane %v8305_v14, %v7308_v45  ;;  %v3709_v56 = vrot.slane %v3687_v20, %v7308_v45 }
 0x128   :  { %6693 = vmatprep.mubr.f32.mxu1 %v5308_v16  ;;  %v4621_v15 = vcombine.low %v4612_v48, %v4619_v60  ;;  %v4628_v18 = vrot.slane %v4620_v28, %v7308_v45  ;;  %v3717_v12 = vcombine.high %v3695_v62, %v3695_v62  ;;  %v2952_v57 = vcombine.high %v8227_v52, %v8227_v52 }
 0x129   :  { %v3719_v19 = vcombine.high %v3709_v56, %v3709_v56  ;;  %v3964_v21 = vcombine.low %v3654_v38, %v3668_v3  ;;  %v3965_v22 = vcombine.low %v3670_v7, %v3695_v62  ;;  %v3000_v23 = vcombine.high %v2751_v43, %v2751_v43  ;;  %v4096_v3 = vld [vmem:[#allocation2 + $0x70] sm:$0x7f] }
 0x12a   :  { %v4635_v25 = vrot.slane %v4621_v15, %v7308_v45  ;;  %v3966_v44 = vcombine.low %v3709_v56, %v3717_v12  ;;  %v2966_v8 = vrot.slane %v2952_v57, %v7308_v45  ;;  %v3007_v24 = vrot.slane %v2751_v43, %v7308_v45 }
 0x12b   :  { %v3967_v9 = vcombine.low %v3719_v19, %v8316_v53  ;;  %v3974_v29 = vrot.slane %v3964_v21, %v7308_v45  ;;  %v3981_v46 = vrot.slane %v3965_v22, %v7308_v45  ;;  %v8329_v30 = vrot.slane %v3000_v23, %v7308_v45 }
 0x12c   :  { %v4636_v52 = vcombine.low %v4628_v18, %v4635_v25  ;;  %v3988_v37 = vrot.slane %v3966_v44, %v7308_v45  ;;  %v2968_v33 = vcombine.high %v2966_v8, %v2966_v8  ;;  %v2982_v55 = vrot.slane %v2966_v8, %v7308_v45 }
 0x12d   :  { %v3995_v31 = vrot.slane %v3967_v9, %v7308_v45  ;;  %v3996_v49 = vcombine.low %v3974_v29, %v3981_v46  ;;  %v3015_v59 = vcombine.high %v3007_v24, %v3007_v24  ;;  %v3023_v32 = vrot.slane %v3007_v24, %v7308_v45 }
 0x12e   :  { %6694 = vmatmul.mubr.f32.gmra.mxu1 %v4636_v52  ;;  %v2996_v13 = vrot.slane %v2968_v33, %v7308_v45  ;;  %v2998_v17 = vcombine.high %v2982_v55, %v2982_v55  ;;  %v8338_v36 = vrot.slane %v8329_v30, %v7308_v45  ;;  %v4969_v39 = vcombine.high %v8252_v41, %v8252_v41 }
 0x12f   :  { %v3997_v47 = vcombine.low %v3988_v37, %v3995_v31  ;;  %v4004_v50 = vrot.slane %v3996_v49, %v7308_v45  ;;  %v3037_v42 = vrot.slane %v3015_v59, %v7308_v45  ;;  %v3045_v11 = vcombine.high %v3023_v32, %v3023_v32 }
 0x130   :  { %v3292_v51 = vcombine.low %v2982_v55, %v2996_v13  ;;  %v3293_v4 = vcombine.low %v2998_v17, %v3023_v32  ;;  %v4983_v5 = vrot.slane %v4969_v39, %v7308_v45  ;;  %v5017_v26 = vcombine.high %v4768_v63, %v4768_v63 }
 0x131   :  { %v4011_v34 = vrot.slane %v3997_v47, %v7308_v45  ;;  %v3047_v10 = vcombine.high %v3037_v42, %v3037_v42  ;;  %v3294_v54 = vcombine.low %v3037_v42, %v3045_v11  ;;  %v5024_v2 = vrot.slane %v4768_v63, %v7308_v45  ;;  %v3424_v63 = vld [vmem:[#allocation2 + $0x72] sm:$0x7f] }
 0x132   :  { %v3302_v35 = vrot.slane %v3292_v51, %v7308_v45  ;;  %v3309_v41 = vrot.slane %v3293_v4, %v7308_v45  ;;  %v4985_v1 = vcombine.high %v4983_v5, %v4983_v5  ;;  %v4999_v61 = vrot.slane %v4983_v5, %v7308_v45 }
 0x133   :  { %v4012_v0 = vcombine.low %v4004_v50, %v4011_v34  ;;  %v3295_v58 = vcombine.low %v3047_v10, %v8338_v36  ;;  %v3316_v27 = vrot.slane %v3294_v54, %v7308_v45  ;;  %v8353_v6 = vrot.slane %v5017_v26, %v7308_v45 }
 0x134   :  { %v3324_v38 = vcombine.low %v3302_v35, %v3309_v41  ;;  %v5013_v20 = vrot.slane %v4985_v1, %v7308_v45  ;;  %v5015_v62 = vcombine.high %v4999_v61, %v4999_v61  ;;  %v5032_v16 = vcombine.high %v5024_v2, %v5024_v2 }
 0x135   :  { %6598 = vmatprep.mubr.f32.mxu0 %v4012_v0  ;;  %v3323_v48 = vrot.slane %v3295_v58, %v7308_v45  ;;  %v5040_v60 = vrot.slane %v5024_v2, %v7308_v45  ;;  %v8360_v28 = vrot.slane %v8353_v6, %v7308_v45  ;;  %v4297_v7 = vcombine.high %v8279_v40, %v8279_v40 }
 0x136   :  { %v3332_v56 = vrot.slane %v3324_v38, %v7308_v45  ;;  %v5054_v43 = vrot.slane %v5032_v16, %v7308_v45  ;;  %v5309_v15 = vcombine.low %v4999_v61, %v5013_v20  ;;  %v4345_v18 = vcombine.high %v4096_v3, %v4096_v3 }
 0x137   :  { %v3325_v12 = vcombine.low %v3316_v27, %v3323_v48  ;;  %v5062_v57 = vcombine.high %v5040_v60, %v5040_v60  ;;  %v5310_v19 = vcombine.low %v5015_v62, %v5040_v60  ;;  %v4311_v21 = vrot.slane %v4297_v7, %v7308_v45  ;;  %v2752_v62 = vld [vmem:[#allocation2 + $0x71] sm:$0x7f] }
 0x138   :  { %v5064_v22 = vcombine.high %v5054_v43, %v5054_v43  ;;  %v5319_v23 = vrot.slane %v5309_v15, %v7308_v45  ;;  %v4352_v25 = vrot.slane %v4096_v3, %v7308_v45  ;;  %v8370_v44 = vrot.slane %v4345_v18, %v7308_v45 }
 0x139   :  { %v3339_v40 = vrot.slane %v3325_v12, %v7308_v45  ;;  %v5311_v8 = vcombine.low %v5054_v43, %v5062_v57  ;;  %v5326_v24 = vrot.slane %v5310_v19, %v7308_v45  ;;  %v4313_v9 = vcombine.high %v4311_v21, %v4311_v21 }
 0x13a   :  { %v5312_v29 = vcombine.low %v5064_v22, %v8360_v28  ;;  %v4327_v46 = vrot.slane %v4311_v21, %v7308_v45  ;;  %v4360_v52 = vcombine.high %v4352_v25, %v4352_v25  ;;  %v4368_v37 = vrot.slane %v4352_v25, %v7308_v45 }
 0x13b   :  { %v3340_v33 = vcombine.low %v3332_v56, %v3339_v40  ;;  %v5333_v55 = vrot.slane %v5311_v8, %v7308_v45  ;;  %v5341_v31 = vcombine.low %v5319_v23, %v5326_v24  ;;  %v4341_v49 = vrot.slane %v4313_v9, %v7308_v45 }
 0x13c   :  { %v5340_v59 = vrot.slane %v5312_v29, %v7308_v45  ;;  %v4343_v32 = vcombine.high %v4327_v46, %v4327_v46  ;;  %v8382_v13 = vrot.slane %v8370_v44, %v7308_v45  ;;  %v4382_v17 = vrot.slane %v4360_v52, %v7308_v45 }
 0x13d   :  { %6599 = vmatmul.mubr.f32.gmra.mxu0 %v3340_v33  ;;  %v5349_v39 = vrot.slane %v5341_v31, %v7308_v45  ;;  %v4390_v47 = vcombine.high %v4368_v37, %v4368_v37  ;;  %v4637_v50 = vcombine.low %v4327_v46, %v4341_v49  ;;  %v3688_v42 = vcombine.high %v8305_v14, %v8305_v14 }
 0x13e   :  { %v5342_v11 = vcombine.low %v5333_v55, %v5340_v59  ;;  %v4392_v51 = vcombine.high %v4382_v17, %v4382_v17  ;;  %v4638_v4 = vcombine.low %v4343_v32, %v4368_v37  ;;  %v3718_v5 = vcombine.high %v8316_v53, %v8316_v53  ;;  %v4769_v55 = vld [vmem:[#allocation2 + $0x81] sm:$0x7f] }
 0x13f   :  { %v4639_v26 = vcombine.low %v4382_v17, %v4390_v47  ;;  %v4647_v34 = vrot.slane %v4637_v50, %v7308_v45  ;;  %v3716_v10 = vrot.slane %v3688_v42, %v7308_v45  ;;  %v3720_v54 = vcombine.high %v3424_v63, %v3424_v63 }
 0x140   :  { %v5356_v2 = vrot.slane %v5342_v11, %v7308_v45  ;;  %v4640_v35 = vcombine.low %v4392_v51, %v8382_v13  ;;  %v4654_v41 = vrot.slane %v4638_v4, %v7308_v45  ;;  %v3727_v14 = vrot.slane %v3424_v63, %v7308_v45 }
 0x141   :  { %v4661_v1 = vrot.slane %v4639_v26, %v7308_v45  ;;  %v3734_v61 = vrot.slane %v3720_v54, %v7308_v45  ;;  %v4013_v0 = vcombine.low %v3716_v10, %v3718_v5  ;;  %v3016_v53 = vcombine.high %v8329_v30, %v8329_v30 }
 0x142   :  { %v5357_v58 = vcombine.low %v5349_v39, %v5356_v2  ;;  %v4668_v27 = vrot.slane %v4640_v35, %v7308_v45  ;;  %v4669_v38 = vcombine.low %v4647_v34, %v4654_v41  ;;  %v3735_v20 = vcombine.high %v3727_v14, %v3727_v14  ;;  %v4097_v35 = vld [vmem:[#allocation2 + $0x80] sm:$0x7f] }
 0x143   :  { %v3736_v16 = vcombine.high %v3734_v61, %v3734_v61  ;;  %v3743_v48 = vrot.slane %v3727_v14, %v7308_v45  ;;  %v8403_v60 = vrot.slane %v3734_v61, %v7308_v45  ;;  %v4023_v3 = vrot.slane %v4013_v0, %v7308_v45 }
 0x144   :  { %6698 = vmatprep.mubr.f32.mxu1 %v5357_v58  ;;  %v4670_v7 = vcombine.low %v4661_v1, %v4668_v27  ;;  %v4677_v56 = vrot.slane %v4669_v38, %v7308_v45  ;;  %v3757_v30 = vrot.slane %v3735_v20, %v7308_v45  ;;  %v3044_v43 = vrot.slane %v3016_v53, %v7308_v45 }
 0x145   :  { %v3764_v15 = vrot.slane %v3736_v16, %v7308_v45  ;;  %v3046_v18 = vcombine.high %v8338_v36, %v8338_v36  ;;  %v3048_v12 = vcombine.high %v2752_v62, %v2752_v62  ;;  %v3055_v57 = vrot.slane %v2752_v62, %v7308_v45 }
 0x146   :  { %v4684_v19 = vrot.slane %v4670_v7, %v7308_v45  ;;  %v4014_v21 = vcombine.low %v3743_v48, %v3757_v30  ;;  %v6854_v22 = vcombine.high %v3743_v48, %v3757_v30  ;;  %v5033_v23 = vcombine.high %v8353_v6, %v8353_v6 }
 0x147   :  { %v4016_v25 = vcombine.low %v8403_v60, %v3764_v15  ;;  %v3062_v40 = vrot.slane %v3048_v12, %v7308_v45  ;;  %v3063_v8 = vcombine.high %v3055_v57, %v3055_v57  ;;  %v3071_v24 = vrot.slane %v3055_v57, %v7308_v45 }
 0x148   :  { %v4685_v9 = vcombine.low %v4677_v56, %v4684_v19  ;;  %v4030_v36 = vrot.slane %v4014_v21, %v7308_v45  ;;  %v4037_v29 = vrot.slane %v6854_v22, %v7308_v45  ;;  %v3341_v46 = vcombine.low %v3044_v43, %v3046_v18 }
 0x149   :  { %v4044_v52 = vrot.slane %v4016_v25, %v7308_v45  ;;  %v3064_v37 = vcombine.high %v3062_v40, %v3062_v40  ;;  %v8423_v33 = vrot.slane %v3062_v40, %v7308_v45  ;;  %v3085_v6 = vrot.slane %v3063_v8, %v7308_v45 }
 0x14a   :  { %6699 = vmatmul.mubr.f32.gmra.mxu1 %v4685_v9  ;;  %v4045_v31 = vcombine.low %v4023_v3, %v4030_v36  ;;  %v3351_v49 = vrot.slane %v3341_v46, %v7308_v45  ;;  %v5061_v59 = vrot.slane %v5033_v23, %v7308_v45  ;;  %v5063_v32 = vcombine.high %v8360_v28, %v8360_v28 }
 0x14b   :  { %v4046_v17 = vcombine.low %v4037_v29, %v4044_v52  ;;  %v3092_v63 = vrot.slane %v3064_v37, %v7308_v45  ;;  %v3342_v39 = vcombine.low %v3071_v24, %v3085_v6  ;;  %v6849_v47 = vcombine.high %v3071_v24, %v3085_v6 }
 0x14c   :  { %v4053_v50 = vrot.slane %v4045_v31, %v7308_v45  ;;  %v5065_v42 = vcombine.high %v4769_v55, %v4769_v55  ;;  %v5072_v11 = vrot.slane %v4769_v55, %v7308_v45  ;;  %v5358_v51 = vcombine.low %v5061_v59, %v5063_v32  ;;  %v5435_v55 = vld [vmem:[#allocation2 + $0x22] sm:$0x7f] }
 0x14d   :  { %v4060_v4 = vrot.slane %v4046_v17, %v7308_v45  ;;  %v3344_v5 = vcombine.low %v8423_v33, %v3092_v63  ;;  %v3358_v26 = vrot.slane %v3342_v39, %v7308_v45  ;;  %v3365_v34 = vrot.slane %v6849_v47, %v7308_v45  ;;  %v8469_v17 = vld [vmem:[#allocation2 + $0x32] sm:$0x7f]  ;;  %v8471_v63 = vld [vmem:[#allocation2 + $0x62] sm:$0x7f] }
 0x14e   :  { %v5079_v28 = vrot.slane %v5065_v42, %v7308_v45  ;;  %v5080_v10 = vcombine.high %v5072_v11, %v5072_v11  ;;  %v5088_v54 = vrot.slane %v5072_v11, %v7308_v45  ;;  %v5368_v2 = vrot.slane %v5358_v51, %v7308_v45 }
 0x14f   :  { %v4061_v41 = vcombine.low %v4053_v50, %v4060_v4  ;;  %v3372_v14 = vrot.slane %v3344_v5, %v7308_v45  ;;  %v3373_v1 = vcombine.low %v3351_v49, %v3358_v26  ;;  %v4361_v61 = vcombine.high %v8370_v44, %v8370_v44 }
 0x150   :  { %v5081_v0 = vcombine.high %v5079_v28, %v5079_v28  ;;  %v5095_v53 = vrot.slane %v5079_v28, %v7308_v45  ;;  %v5102_v58 = vrot.slane %v5080_v10, %v7308_v45  ;;  %v4391_v27 = vcombine.high %v8382_v13, %v8382_v13 }
 0x151   :  { %6603 = vmatprep.mubr.f32.mxu0 %v4061_v41  ;;  %v3374_v38 = vcombine.low %v3365_v34, %v3372_v14  ;;  %v3381_v20 = vrot.slane %v3373_v1, %v7308_v45  ;;  %v4389_v62 = vrot.slane %v4361_v61, %v7308_v45  ;;  %v4393_v16 = vcombine.high %v4097_v35, %v4097_v35 }
 0x152   :  { %v5109_v48 = vrot.slane %v5081_v0, %v7308_v45  ;;  %v5359_v3 = vcombine.low %v5088_v54, %v5102_v58  ;;  %v6864_v7 = vcombine.high %v5088_v54, %v5102_v58  ;;  %v4400_v44 = vrot.slane %v4097_v35, %v7308_v45  ;;  %v5440_v35 = vld [vmem:[#allocation2 + $0x72] sm:$0x7f] }
 0x153   :  { %v3388_v56 = vrot.slane %v3374_v38, %v7308_v45  ;;  %v4407_v30 = vrot.slane %v4393_v16, %v7308_v45  ;;  %v4686_v43 = vcombine.low %v4389_v62, %v4391_v27  ;;  %v3766_v13 = vcombine.high %v8403_v60, %v8403_v60 }
 0x154   :  { %v5361_v15 = vcombine.low %v5095_v53, %v5109_v48  ;;  %v5375_v18 = vrot.slane %v5359_v3, %v7308_v45  ;;  %v5382_v12 = vrot.slane %v6864_v7, %v7308_v45  ;;  %v4408_v57 = vcombine.high %v4400_v44, %v4400_v44 }
 0x155   :  { %v3389_v19 = vcombine.low %v3381_v20, %v3388_v56  ;;  %v4409_v21 = vcombine.high %v4407_v30, %v4407_v30  ;;  %v4416_v22 = vrot.slane %v4400_v44, %v7308_v45  ;;  %v4423_v23 = vrot.slane %v4407_v30, %v7308_v45 }
 0x156   :  { %v5389_v25 = vrot.slane %v5361_v15, %v7308_v45  ;;  %v5390_v40 = vcombine.low %v5368_v2, %v5375_v18  ;;  %v4430_v8 = vrot.slane %v4408_v57, %v7308_v45  ;;  %v4696_v24 = vrot.slane %v4686_v43, %v7308_v45 }
 0x157   :  { %6604 = vmatmul.mubr.f32.gmra.mxu0 %v3389_v19  ;;  %v4437_v60 = vrot.slane %v4409_v21, %v7308_v45  ;;  %v4068_v9 = vrot.slane %v3766_v13, %v7308_v45  ;;  %v3094_v36 = vcombine.high %v8423_v33, %v8423_v33  ;;  %v5111_v29 = vcombine.high %v5095_v53, %v5095_v53 }
 0x158   :  { %v5391_v46 = vcombine.low %v5382_v12, %v5389_v25  ;;  %v5398_v52 = vrot.slane %v5390_v40, %v7308_v45  ;;  %v4687_v37 = vcombine.low %v4416_v22, %v4430_v8  ;;  %v6859_v6 = vcombine.high %v4416_v22, %v4430_v8 }
 0x159   :  { %v4689_v31 = vcombine.low %v4423_v23, %v4437_v60  ;;  %6855 = vst.sshfl [vmem:[#allocation3 + $0x1d8] sm:$0x1 pattern:$0x73625140] %v4068_v9  ;;  %v3396_v49 = vrot.slane %v3094_v36, %v7308_v45  ;;  %v5413_v59 = vrot.slane %v5111_v29, %v7308_v45  ;;  %v4439_v32 = vcombine.high %v4423_v23, %v4423_v23  ;;  %v8505_v23 = vld [vmem:[#allocation2] sm:$0xff] }
 0x15a   :  { %v5405_v33 = vrot.slane %v5391_v46, %v7308_v45  ;;  %v4703_v39 = vrot.slane %v4687_v37, %v7308_v45  ;;  %v4710_v47 = vrot.slane %v6859_v6, %v7308_v45  ;;  %v5449_v11 = vcombine.high %v5435_v55, %v5435_v55  ;;  %v8520_v6 = vpop.f32.mrf.mxu0 }
 0x15b   :  { %v4717_v50 = vrot.slane %v4689_v31, %v7308_v45  ;;  %6850 = vst.sshfl [vmem:[#allocation3 + $0x1d0] sm:$0x1 pattern:$0x73625140] %v3396_v49  ;;  %v4741_v42 = vrot.slane %v4439_v32, %v7308_v45  ;;  %v5456_v51 = vrot.slane %v5435_v55, %v7308_v45  ;;  %v8481_v26 = vrot.slane %v8469_v17, %v7308_v45 }
 0x15c   :  { %6865 = vst.sshfl [vmem:[#allocation3 + $0x1e8] sm:$0x1 pattern:$0x73625140] %v5413_v59  ;;  %v5406_v4 = vcombine.low %v5398_v52, %v5405_v33  ;;  %v4718_v5 = vcombine.low %v4696_v24, %v4703_v39  ;;  %v5641_v34 = vcombine.high %v8471_v63, %v8471_v63  ;;  %v5463_v10 = vrot.slane %v5449_v11, %v7308_v45 }
 0x15d   :  { %v4719_v28 = vcombine.low %v4710_v47, %v4717_v50  ;;  %6860 = vst.sshfl [vmem:[#allocation3 + $0x1e0] sm:$0x1 pattern:$0x73625140] %v4741_v42  ;;  %v5464_v54 = vcombine.high %v5456_v51, %v5456_v51  ;;  %v5472_v2 = vrot.slane %v5456_v51, %v7308_v45  ;;  %v8490_v14 = vrot.slane %v8481_v26, %v7308_v45  ;;  %v5437_v47 = vld [vmem:[#allocation2 + $0x42] sm:$0x7f] }
 0x15e   :  { %6703 = vmatprep.mubr.f32.mxu1 %v5406_v4  ;;  %v4726_v41 = vrot.slane %v4718_v5, %v7308_v45  ;;  %v5655_v1 = vrot.slane %v5641_v34, %v7308_v45  ;;  %v5689_v61 = vcombine.high %v5440_v35, %v5440_v35  ;;  %v5465_v53 = vcombine.high %v5463_v10, %v5463_v10 }
 0x15f   :  { %v4733_v0 = vrot.slane %v4719_v28, %v7308_v45  ;;  %v5479_v58 = vrot.slane %v5463_v10, %v7308_v45  ;;  %v5486_v27 = vrot.slane %v5464_v54, %v7308_v45  ;;  %v5696_v16 = vrot.slane %v5440_v35, %v7308_v45  ;;  %v8537_v28 = vpop.f32.mrf.mxu0 }
 0x160   :  { %v6166_v38 = vld [vmem:[#allocation3 + $0x1d8] sm:$0x1]  ;;  %v5657_v20 = vcombine.high %v5655_v1, %v5655_v1  ;;  %v5671_v62 = vrot.slane %v5655_v1, %v7308_v45  ;;  %v8499_v48 = vrot.slane %v5689_v61, %v7308_v45  ;;  %v5493_v7 = vrot.slane %v5465_v53, %v7308_v45 }
 0x161   :  { %v4734_v3 = vcombine.low %v4726_v41, %v4733_v0  ;;  %6608 = vmatprep.mubr.f32.mxu0 %v6166_v38  ;;  %v5495_v44 = vcombine.high %v5479_v58, %v5479_v58  ;;  %v5785_v56 = vcombine.low %v5472_v2, %v5486_v27  ;;  %v6866_v13 = vcombine.high %v5472_v2, %v5486_v27  ;;  %v5441_v0 = vld [vmem:[#allocation2 + $0x82] sm:$0x7f]  ;;  %v8543_v53 = vpop.f32.mrf.mxu0 }
 0x162   :  { %v6165_v30 = vld [vmem:[#allocation3 + $0x1d0] sm:$0x1]  ;;  %v5685_v15 = vrot.slane %v5657_v20, %v7308_v45  ;;  %v5687_v18 = vcombine.high %v5671_v62, %v5671_v62  ;;  %v5704_v12 = vcombine.high %v5696_v16, %v5696_v16  ;;  %v5787_v57 = vcombine.low %v5479_v58, %v5493_v7 }
 0x163   :  { %v6168_v43 = vld [vmem:[#allocation3 + $0x1e8] sm:$0x1]  ;;  %6704 = vmatmul.mubr.f32.gmra.mxu1 %v4734_v3  ;;  %6609 = vmatmul.mubr.f32.gmra.mxu0 %v6165_v30  ;;  %v5788_v19 = vcombine.low %v5495_v44, %v8490_v14  ;;  %v5795_v21 = vrot.slane %v5785_v56, %v7308_v45  ;;  %v5802_v25 = vrot.slane %v6866_v13, %v7308_v45 }
 0x164   :  { %6708 = vmatprep.mubr.f32.mxu1 %v6168_v43  ;;  %v6167_v22 = vld [vmem:[#allocation3 + $0x1e0] sm:$0x1]  ;;  %7138 = vmatprep.mubr.msk.f32.mxu0 %vm7289_vm0, %v8505_v23  ;;  %v5712_v40 = vrot.slane %v5696_v16, %v7308_v45  ;;  %v8513_v8 = vrot.slane %v8499_v48, %v7308_v45  ;;  %v5809_v24 = vrot.slane %v5787_v57, %v7308_v45  ;;  %v8559_v57 = vpop.f32.mrf.mxu0 }
 0x165   :  { %v5816_v60 = vrot.slane %v5788_v19, %v7308_v45  ;;  %v5726_v9 = vrot.slane %v5704_v12, %v7308_v45  ;;  %v5981_v36 = vcombine.low %v5671_v62, %v5685_v15  ;;  %v5817_v29 = vcombine.low %v5795_v21, %v5802_v25 }
 0x166   :  { %v5734_v46 = vcombine.high %v5712_v40, %v5712_v40  ;;  %v5982_v52 = vcombine.low %v5687_v18, %v5712_v40  ;;  %v5497_v37 = vcombine.high %v8469_v17, %v8469_v17  ;;  %v5512_v59 = vcombine.high %v8481_v26, %v8481_v26 }
 0x167   :  { %6709 = vmatmul.mubr.f32.gmra.mxu1 %v6167_v22  ;;  %v5818_v55 = vcombine.low %v5809_v24, %v5816_v60  ;;  %v5736_v31 = vcombine.high %v5726_v9, %v5726_v9  ;;  %v5991_v49 = vrot.slane %v5981_v36, %v7308_v45  ;;  %v5825_v32 = vrot.slane %v5817_v29, %v7308_v45  ;;  %v5438_v24 = vld [vmem:[#allocation2 + $0x52] sm:$0x7f] }
 0x168   :  { %7150 = vmatprep.mubr.msk.f32.mxu1 %vm7289_vm0, %v8505_v23  ;;  %v5983_v33 = vcombine.low %v5726_v9, %v5734_v46  ;;  %v5998_v39 = vrot.slane %v5982_v52, %v7308_v45  ;;  %v5511_v17 = vrot.slane %v5497_v37, %v7308_v45  ;;  %v5534_v11 = vrot.slane %v5512_v59, %v7308_v45 }
 0x169   :  { %v5832_v50 = vrot.slane %v5818_v55, %v7308_v45  ;;  %v5984_v42 = vcombine.low %v5736_v31, %v8513_v8  ;;  %v5542_v51 = vcombine.high %v8490_v14, %v8490_v14  ;;  %v5552_v35 = vrot.slane %v5437_v47, %v7308_v45 }
 0x16a   :  { %v6005_v4 = vrot.slane %v5983_v33, %v7308_v45  ;;  %v6013_v5 = vcombine.low %v5991_v49, %v5998_v39  ;;  %v5513_v26 = vcombine.high %v5511_v17, %v5511_v17  ;;  %v5527_v34 = vrot.slane %v5511_v17, %v7308_v45  ;;  %v8572_v49 = vpop.f32.mrf.mxu0 }
 0x16b   :  { %v5833_v10 = vcombine.low %v5825_v32, %v5832_v50  ;;  %v6012_v54 = vrot.slane %v5984_v42, %v7308_v45  ;;  %v5544_v2 = vcombine.high %v5534_v11, %v5534_v11  ;;  %v5834_v14 = vcombine.low %v5534_v11, %v5542_v51 }
 0x16c   :  { %v6021_v41 = vrot.slane %v6013_v5, %v7308_v45  ;;  %v5541_v1 = vrot.slane %v5513_v26, %v7308_v45  ;;  %v5543_v61 = vcombine.high %v5527_v34, %v5527_v34  ;;  %v5560_v27 = vcombine.high %v5552_v35, %v5552_v35 }
 0x16d   :  { %7139 = vmatmul.mubr.f32.vlgmr.msra.gmra.mxu0 %v5833_v10  ;;  %v6014_v58 = vcombine.low %v6005_v4, %v6012_v54  ;;  %v5568_v38 = vrot.slane %v5552_v35, %v7308_v45  ;;  %v5835_v20 = vcombine.low %v5544_v2, %v5527_v34  ;;  %v5844_v16 = vrot.slane %v5834_v14, %v7308_v45  ;;  %v8582_v2 = vpop.f32.mrf.mxu0 }
 0x16e   :  { %7141 = vmatprep.mubr.msk.f32.mxu0 %vm7289_vm0, %v8505_v23  ;;  %v5836_v62 = vcombine.low %v5541_v1, %v5543_v61  ;;  %v5705_v3 = vcombine.high %v8499_v48, %v8499_v48  ;;  %v5735_v7 = vcombine.high %v8513_v8, %v8513_v8  ;;  %v5582_v56 = vrot.slane %v5560_v27, %v7308_v45 }
 0x16f   :  { %v6028_v44 = vrot.slane %v6014_v58, %v7308_v45  ;;  %v5851_v30 = vrot.slane %v5835_v20, %v7308_v45  ;;  %v5737_v43 = vcombine.high %v5441_v0, %v5441_v0  ;;  %v5744_v18 = vrot.slane %v5441_v0, %v7308_v45 }
 0x170   :  { %v5858_v13 = vrot.slane %v5836_v62, %v7308_v45  ;;  %v5733_v15 = vrot.slane %v5705_v3, %v7308_v45  ;;  %v5545_v12 = vcombine.high %v5437_v47, %v5437_v47  ;;  %v5837_v19 = vcombine.low %v5568_v38, %v5582_v56 }
 0x171   :  { %v6029_v48 = vcombine.low %v6021_v41, %v6028_v44  ;;  %v5866_v21 = vcombine.low %v5844_v16, %v5851_v30  ;;  %v5751_v22 = vrot.slane %v5737_v43, %v7308_v45  ;;  %v5752_v25 = vcombine.high %v5744_v18, %v5744_v18  ;;  %v6912_v30 = vpop.f32.mrf.mxu0 }
 0x172   :  { %v5760_v40 = vrot.slane %v5744_v18, %v7308_v45  ;;  %v6030_v8 = vcombine.low %v5733_v15, %v5735_v7  ;;  %v5559_v60 = vrot.slane %v5545_v12, %v7308_v45  ;;  %v5865_v9 = vrot.slane %v5837_v19, %v7308_v45 }
 0x173   :  { %7151 = vmatmul.mubr.f32.vlgmr.msra.gmra.mxu1 %v6029_v48  ;;  %v5874_v36 = vrot.slane %v5866_v21, %v7308_v45  ;;  %v5753_v29 = vcombine.high %v5751_v22, %v5751_v22  ;;  %v5767_v46 = vrot.slane %v5751_v22, %v7308_v45  ;;  %v5774_v52 = vrot.slane %v5752_v25, %v7308_v45 }
 0x174   :  { %7153 = vmatprep.mubr.msk.f32.mxu1 %vm7289_vm0, %v8505_v23  ;;  %v6040_v37 = vrot.slane %v6030_v8, %v7308_v45  ;;  %v5561_v55 = vcombine.high %v5559_v60, %v5559_v60  ;;  %v5575_v31 = vrot.slane %v5559_v60, %v7308_v45  ;;  %v5867_v59 = vcombine.low %v5858_v13, %v5865_v9  ;;  %v6913_v8 = vpop.f32.mrf.mxu0 }
 0x175   :  { %v5781_v32 = vrot.slane %v5753_v29, %v7308_v45  ;;  %v5600_v33 = vrot.slane %v5438_v24, %v7308_v45  ;;  %v6867_v39 = vcombine.high %v5568_v38, %v5582_v56  ;;  %v6031_v47 = vcombine.low %v5760_v40, %v5774_v52 }
 0x176   :  { %v6869_v17 = vcombine.high %v5760_v40, %v5774_v52  ;;  %v5589_v50 = vrot.slane %v5561_v55, %v7308_v45  ;;  %v5591_v42 = vcombine.high %v5575_v31, %v5575_v31  ;;  %v5881_v11 = vrot.slane %v5867_v59, %v7308_v45 }
 0x177   :  { %v6033_v51 = vcombine.low %v5767_v46, %v5781_v32  ;;  %v5608_v4 = vcombine.high %v5600_v33, %v5600_v33  ;;  %v5616_v5 = vrot.slane %v5600_v33, %v7308_v45  ;;  %v6047_v26 = vrot.slane %v6031_v47, %v7308_v45 }
 0x178   :  { %v6054_v34 = vrot.slane %v6869_v17, %v7308_v45  ;;  %v5884_v10 = vcombine.low %v5575_v31, %v5589_v50  ;;  %v5893_v54 = vrot.slane %v6867_v39, %v7308_v45  ;;  %v5882_v35 = vcombine.low %v5874_v36, %v5881_v11 }
 0x179   :  { %v6061_v41 = vrot.slane %v6033_v51, %v7308_v45  ;;  %v5630_v1 = vrot.slane %v5608_v4, %v7308_v45  ;;  %v5638_v61 = vcombine.high %v5616_v5, %v5616_v5  ;;  %v6062_v14 = vcombine.low %v6040_v37, %v6047_v26  ;;  %v6956_v51 = vpop.f32.mrf.mxu1 }
 0x17a   :  { %v5885_v0 = vcombine.low %v5591_v42, %v5616_v5  ;;  %v5900_v58 = vrot.slane %v5884_v10, %v7308_v45  ;;  %v5783_v27 = vcombine.high %v5767_v46, %v5767_v46  ;;  %7142 = vmatmul.mubr.f32.gmra.mxu0 %v5882_v35  ;;  %v5593_v62 = vcombine.high %v5438_v24, %v5438_v24 }
 0x17b   :  { %v6063_v38 = vcombine.low %v6054_v34, %v6061_v41  ;;  %v5886_v20 = vcombine.low %v5630_v1, %v5638_v61  ;;  %v5640_v16 = vcombine.high %v5630_v1, %v5630_v1  ;;  %v6070_v3 = vrot.slane %v6062_v14, %v7308_v45  ;;  %7144 = vmatprep.mubr.msk.f32.mxu0 %vm7289_vm0, %v8505_v23  ;;  %v6957_v4 = vpop.f32.mrf.mxu1 }
 0x17c   :  { %v5907_v7 = vrot.slane %v5885_v0, %v7308_v45  ;;  %v5915_v44 = vcombine.low %v5893_v54, %v5900_v58  ;;  %v6085_v56 = vrot.slane %v5783_v27, %v7308_v45  ;;  %v5607_v15 = vrot.slane %v5593_v62, %v7308_v45  ;;  %v6915_v54 = vpop.f32.mrf.mxu0 }
 0x17d   :  { %v6077_v43 = vrot.slane %v6063_v38, %v7308_v45  ;;  %v5914_v13 = vrot.slane %v5886_v20, %v7308_v45  ;;  %v5648_v18 = vrot.slane %v8471_v63, %v7308_v45  ;;  %v8606_v37 = vadd.f32 %v6913_v8, %v6912_v30  ;;  %v6959_v5 = vpop.f32.mrf.mxu1 }
 0x17e   :  { %v5923_v12 = vrot.slane %v5915_v44, %v7308_v45  ;;  %6870 = vst.sshfl [vmem:[#allocation3 + $0x1f0] sm:$0x1 pattern:$0x73625140] %v6085_v56  ;;  %v5609_v21 = vcombine.high %v5607_v15, %v5607_v15  ;;  %v5623_v22 = vrot.slane %v5607_v15, %v7308_v45  ;;  %v6916_v41 = vpop.f32.mrf.mxu0 }
 0x17f   :  { %v6078_v48 = vcombine.low %v6070_v3, %v6077_v43  ;;  %v5916_v19 = vcombine.low %v5907_v7, %v5914_v13  ;;  %v5656_v25 = vcombine.high %v5648_v18, %v5648_v18  ;;  %v5664_v40 = vrot.slane %v5648_v18, %v7308_v45  ;;  %8688 = vst [vmem:[#allocation7_spill] sm:$0xff] %v8606_v37  ;;  %v6960_v26 = vpop.f32.mrf.mxu1 }
 0x180   :  { %v5637_v60 = vrot.slane %v5609_v21, %v7308_v45  ;;  %v5639_v9 = vcombine.high %v5623_v22, %v5623_v22  ;;  %v5932_v36 = vcombine.low %v5640_v16, %v5623_v22  ;;  %v6918_v61 = vpop.f32.mrf.mxu0 }
 0x181   :  { %7154 = vmatmul.mubr.f32.gmra.mxu1 %v6078_v48  ;;  %v5930_v24 = vrot.slane %v5916_v19, %v7308_v45  ;;  %v5678_v63 = vrot.slane %v5656_v25, %v7308_v45  ;;  %v8615_v34 = vpop.f32.mrf.mxu1 }
 0x182   :  { %7156 = vmatprep.mubr.msk.f32.mxu1 %vm7289_vm0, %v8505_v23  ;;  %v5933_v46 = vcombine.low %v5637_v60, %v5639_v9  ;;  %v5942_v52 = vrot.slane %v5932_v36, %v7308_v45  ;;  %v6905_v36 = vadd.f32 %v8537_v28, %v8520_v6 }
 0x183   :  { %v5931_v29 = vcombine.low %v5923_v12, %v5930_v24  ;;  %v5934_v55 = vcombine.low %v5664_v40, %v5678_v63  ;;  %v6868_v31 = vcombine.high %v5664_v40, %v5678_v63  ;;  %v8617_v10 = vpop.f32.mrf.mxu1  ;;  %v6958_v63 = vadd.f32 %v6957_v4, %v6956_v51 }
 0x184   :  { %v5949_v32 = vrot.slane %v5933_v46, %v7308_v45  ;;  %v6908_v51 = vadd.f32 %v8559_v57, %v8543_v53  ;;  %v6961_v4 = vadd.f32 %v6960_v26, %v6959_v5  ;;  %v6911_v57 = vadd.f32 %v8582_v2, %v8572_v49 }
 0x185   :  { %7145 = vmatmul.mubr.f32.gmra.mxu0 %v5931_v29  ;;  %v6169_v59 = vld [vmem:[#allocation3 + $0x1f0] sm:$0x1]  ;;  %v5956_v33 = vrot.slane %v5934_v55, %v7308_v45  ;;  %v5963_v39 = vrot.slane %v6868_v31, %v7308_v45  ;;  %v6481_v55 = vadd.f32 %v6958_v63, %v6905_v36  ;;  %v6964_v5 = vadd.f32 %v8617_v10, %v8615_v34 }
 0x186   :  { %7157 = vmatmul.mubr.f32.gmra.mxu1 %v6169_v59  ;;  %7147 = vmatprep.mubr.msk.f32.mxu0 %vm7289_vm0, %v8505_v23  ;;  %v5964_v47 = vcombine.low %v5942_v52, %v5949_v32  ;;  %v8619_v23 = vpop.f32.mrf.mxu1  ;;  %v6917_v59 = vadd.f32 %v6916_v41, %v6915_v54 }
 0x187   :  { %v5965_v17 = vcombine.low %v5956_v33, %v5963_v39 }
 0x188   :  { %v5972_v50 = vrot.slane %v5964_v47, %v7308_v45  ;;  %v8621_v35 = vpop.f32.mrf.mxu1 }
 0x189   :  { %v5979_v42 = vrot.slane %v5965_v17, %v7308_v45  ;;  %v6919_v45 = vpop.f32.mrf.mxu0 }
 0x18a   :  { %v6968_v1 = vpop.f32.mrf.mxu1 }
 0x18b   :  { %v5980_v11 = vcombine.low %v5972_v50, %v5979_v42  ;;  %v8623_v58 = vpop.f32.mrf.mxu0 }
 0x18c   :  { %v6969_v14 = vpop.f32.mrf.mxu1 }
 0x18d   :  { %7148 = vmatmul.mubr.f32.gmra.mxu0 %v5980_v11  ;;  %v8625_v38 = vpop.f32.mrf.mxu0  ;;  %v6970_v32 = vadd.f32 %v6969_v14, %v6968_v1 }
 0x18e   :  { %v6971_v0 = vpop.f32.mrf.mxu1 }
 0x18f   :  { %v6501_v42 = vadd.f32 %v6970_v32, %v6917_v59 }
 0x190   :  { %v6972_v27 = vpop.f32.mrf.mxu1 }
 0x192   :  { %v8627_v20 = vpop.f32.mrf.mxu1 }
 0x194   :  { %v8629_v16 = vpop.f32.mrf.mxu1 }
 0x195   :  { %v7009_v62 = vpop.f32.mrf.mxu0 }
 0x197   :  { %v7010_v3 = vpop.f32.mrf.mxu0 }
 0x198   :  { %v7011_v46 = vadd.f32 %v7010_v3, %v7009_v62  ;;  %v6486_v62 = vadd.f32 %v6961_v4, %v6908_v51 }
 0x19a   :  { %v6581_v33 = vadd.f32 %v7011_v46, %v6481_v55  ;;  %v8693_v46 = vld [vmem:[#allocation7_spill] sm:$0xff] }
 0x1a2   :  { %v7062_v7 = vpop.f32.mrf.mxu1 }
 0x1a4   :  { %v7063_v56 = vpop.f32.mrf.mxu1 }
 0x1a5   :  { %v7064_v39 = vadd.f32 %v7063_v56, %v7062_v7  ;;  %v6920_v56 = vadd.f32 %v6919_v45, %v6918_v61  ;;  %v6976_v61 = vadd.f32 %v8629_v16, %v8627_v20 }
 0x1a7   :  { %v6681_v11 = vadd.f32 %v7064_v39, %v6581_v33 }
 0x1b1   :  { %v7012_v44 = vpop.f32.mrf.mxu0 }
 0x1b3   :  { %v7013_v30 = vpop.f32.mrf.mxu0 }
 0x1b4   :  { %v7014_v41 = vadd.f32 %v7013_v30, %v7012_v44  ;;  %v6923_v44 = vadd.f32 %v8625_v38, %v8623_v58 }
 0x1b6   :  { %v6511_v49 = vadd.f32 %v6976_v61, %v6923_v44 }
 0x1be   :  { %v7065_v43 = vpop.f32.mrf.mxu1 }
 0x1c0   :  { %v7066_v15 = vpop.f32.mrf.mxu1 }
 0x1ca   :  { %v7015_v13 = vpop.f32.mrf.mxu0 }
 0x1cc   :  { %v7016_v18 = vpop.f32.mrf.mxu0 }
 0x1d6   :  { %v8631_v12 = vpop.f32.mrf.mxu1 }
 0x1d8   :  { %v8635_v19 = vpop.f32.mrf.mxu1 }
 0x1d9   :  { %v7070_v34 = vadd.f32 %v8635_v19, %v8631_v12 }
 0x1e1   :  { %v8633_v48 = vpop.f32.mrf.mxu0 }
 0x1e3   :  { %v8637_v21 = vpop.f32.mrf.mxu0 }
 0x1e4   :  { %8689 = vst [vmem:[#allocation8_spill] sm:$0xff] %v8637_v21 }
 0x1ee   :  { %v8639_v22 = vpop.f32.mrf.mxu1 }
 0x1ef   :  { %8690 = vst [vmem:[#allocation9_spill] sm:$0xff] %v8639_v22 }
 0x1f0   :  { %v8641_v40 = vpop.f32.mrf.mxu1 }
 0x1f1   :  { %8691 = vst [vmem:[#allocation10_spill] sm:$0xff] %v8641_v40 }
 0x1f8   :  { %v8695_v59 = vld [vmem:[#allocation10_spill] sm:$0xff] }
 0x1fd   :  { %v7021_v25 = vpop.f32.mrf.mxu0 }
 0x1ff   :  { %v7022_v8 = vpop.f32.mrf.mxu0 }
 0x200   :  { %v7023_v17 = vadd.f32 %v7022_v8, %v7021_v25  ;;  %v6973_v25 = vadd.f32 %v6972_v27, %v6971_v0  ;;  %v6586_v8 = vadd.f32 %v7014_v41, %v6486_v62  ;;  %v7017_v0 = vadd.f32 %v7016_v18, %v7015_v13 }
 0x201   :  { %v6967_v13 = vadd.f32 %v8621_v35, %v8619_v23 }
 0x202   :  { %v6601_v37 = vadd.f32 %v7023_v17, %v6501_v42 }
 0x20a   :  { %v7074_v24 = vpop.f32.mrf.mxu1 }
 0x20c   :  { %v7075_v9 = vpop.f32.mrf.mxu1 }
 0x20d   :  { %v7076_v21 = vadd.f32 %v7075_v9, %v7074_v24  ;;  %v6491_v24 = vadd.f32 %v6964_v5, %v6911_v57  ;;  %v8692_v9 = vld [vmem:[#allocation8_spill] sm:$0xff] }
 0x20e   :  { %v7020_v36 = vadd.f32 %v8692_v9, %v8633_v48 }
 0x20f   :  { %v6701_v1 = vadd.f32 %v7076_v21, %v6601_v37  ;;  %v6506_v37 = vadd.f32 %v6973_v25, %v6920_v56  ;;  %v6591_v2 = vadd.f32 %v7017_v0, %v6491_v24 }
 0x217   :  { %v7024_v60 = vpop.f32.mrf.mxu0 }
 0x219   :  { %v7025_v29 = vpop.f32.mrf.mxu0 }
 0x21a   :  { %v7026_v53 = vadd.f32 %v7025_v29, %v7024_v60  ;;  %v6691_v60 = vadd.f32 %v7070_v34, %v6591_v2 }
 0x21c   :  { %v6606_v27 = vadd.f32 %v7026_v53, %v6506_v37 }
 0x223   :  { %v7077_v52 = vpop.f32.mrf.mxu1  ;;  %v7027_v31 = vpop.f32.mrf.mxu0 }
 0x225   :  { %v7078_v47 = vpop.f32.mrf.mxu1  ;;  %v7028_v50 = vpop.f32.mrf.mxu0 }
 0x226   :  { %v7079_v30 = vadd.f32 %v7078_v47, %v7077_v52 }
 0x227   :  { %v7080_v40 = vpop.f32.mrf.mxu1 }
 0x228   :  { %v6706_v10 = vadd.f32 %v7079_v30, %v6606_v27 }
 0x229   :  { %v7081_v54 = vpop.f32.mrf.mxu1 }
 0x22a   :  { %v7082_v38 = vadd.f32 %v7081_v54, %v7080_v40  ;;  %v6496_v40 = vadd.f32 %v6967_v13, %v8693_v46 }
 0x22c   :  { %v6596_v35 = vadd.f32 %v7020_v36, %v6496_v40 }
 0x22d   :  { %v6780_v22 = vpop.f32.mrf.mxu0 }
 0x22e   :  { %v6781_v6 = vadd.f32 %v6780_v22, %v6681_v11  ;;  %v7067_v22 = vadd.f32 %v7066_v15, %v7065_v43  ;;  %v7029_v15 = vadd.f32 %v7028_v50, %v7027_v31  ;;  %v8694_v31 = vld [vmem:[#allocation9_spill] sm:$0xff] }
 0x22f   :  { %v7140_v28 = vpop.f32.mrf.mxu0  ;;  %v7073_v32 = vadd.f32 %v8695_v59, %v8694_v31 }
 0x230   :  { %6814 = vst [vmem:[%s8687_s2] sm:$0xff] %v6781_v6  ;;  %v6686_v26 = vadd.f32 %v7067_v22, %v6586_v8  ;;  %v6611_v58 = vadd.f32 %v7029_v15, %v6511_v49 }
 0x231   :  { %v6696_v48 = vadd.f32 %v7073_v32, %v6596_v35 }
 0x232   :  { %v6711_v29 = vadd.f32 %v7082_v38, %v6611_v58 }
 0x233   :  { %v6800_v14 = vpop.f32.mrf.mxu1 }
 0x234   :  { %v6801_v3 = vadd.f32 %v6800_v14, %v6701_v1 }
 0x235   :  { %v7152_v7 = vpop.f32.mrf.mxu1 }
 0x236   :  { %6818 = vst [vmem:[%s8687_s2 + $0x20] sm:$0xff] %v6801_v3 }
 0x23a   :  { %v6785_v45 = vpop.f32.mrf.mxu0 }
 0x23b   :  { %v6786_v43 = vadd.f32 %v6785_v45, %v6686_v26 }
 0x23c   :  { %v7143_v21 = vpop.f32.mrf.mxu0 }
 0x23d   :  { %6815 = vst [vmem:[%s8687_s2 + $0x8] sm:$0xff] %v6786_v43 }
 0x241   :  { %v6805_v20 = vpop.f32.mrf.mxu1 }
 0x242   :  { %v6806_v16 = vadd.f32 %v6805_v20, %v6706_v10 }
 0x243   :  { %v7155_v18 = vpop.f32.mrf.mxu1 }
 0x244   :  { %6819 = vst [vmem:[%s8687_s2 + $0x28] sm:$0xff] %v6806_v16 }
 0x245   :  { %v6790_v63 = vpop.f32.mrf.mxu0 }
 0x246   :  { %v6791_v12 = vadd.f32 %v6790_v63, %v6691_v60  ;;  %v6810_v19 = vpop.f32.mrf.mxu1 }
 0x247   :  { %v7146_v52 = vpop.f32.mrf.mxu0  ;;  %v6811_v55 = vadd.f32 %v6810_v19, %v6711_v29 }
 0x248   :  { %6816 = vst [vmem:[%s8687_s2 + $0x10] sm:$0xff] %v6791_v12  ;;  %v7158_v23 = vpop.f32.mrf.mxu1 }
 0x249   :  { %6820 = vst [vmem:[%s8687_s2 + $0x30] sm:$0x1] %v6811_v55 }
 0x24d   :  { %v6795_v33 = vpop.f32.mrf.mxu0 }
 0x24e   :  { %v6796_v39 = vadd.f32 %v6795_v33, %v6696_v48 }
 0x24f   :  { %v7149_v47 = vpop.f32.mrf.mxu0 }
 0x250   :  { %6817 = vst [vmem:[%s8687_s2 + $0x18] sm:$0xff] %v6796_v39 }
 0x251   :  { %6825 = vsyncpa [#allocation5], 1 }

</bundles_post_ra>
